<compile_context>
chip_gen: v7x
topology: tpu7x:2x2x1
jax: 0.10.0
libtpu: 0.0.40
codegen_flags: <defaults>
</compile_context>

<pallas_src>
import functools
import math

import jax
import jax.numpy as jnp
from jax.experimental import pallas as pl
from jax.experimental.pallas import tpu as pltpu

F32 = jnp.float32
BF16 = jnp.bfloat16


# ----------------------------------------------------------------------------
# small helpers
# ----------------------------------------------------------------------------
@functools.lru_cache(maxsize=1)
def _vmem_limit_bytes():
    """Per-generation VMEM budget: ~7/8 of physical, capped at 112 MiB (v5e/v6e have 128 MiB,
    v7x only 64 MiB — leave headroom for compiler scratch / double buffering)."""
    cap = 64 * 1024 * 1024
    try:
        cap = int(pltpu.get_tpu_info().vmem_capacity_bytes)
    except Exception:
        pass
    return int(min(cap - cap // 8, 112 * 1024 * 1024))


def _largest_divisor_leq(n, cap):
    cap = max(1, min(n, cap))
    for t in range(cap, 0, -1):
        if n % t == 0:
            return t
    return 1


def _choose_bt(B, G, C, Hm, budget):
    """Pick how many batch elements to fold into one stage block (weight-DMA amortization)."""
    per_b = (10 * G * C * 4          # resident scratch (xs/pos/ao) + q/k/v/mlp intermediates
             + 5 * G * G * 4         # mask + per-head score/prob buffers
             + G * Hm * 4            # MLP hidden
             + 4 * G * C * 2)        # bf16 token / output double-buffers
    w_bytes = 2 * 2 * (4 * C * C + 2 * C * Hm)   # double-buffered bf16 per-depth weight slab
    avail = budget - w_bytes - (4 << 20)
    bt = max(1, avail // max(per_b, 1))
    bt = int(min(bt, B))
    if B >= 2:                       # keep >= 2 parallel grid steps so both v7x TCs get work
        bt = min(bt, B // 2)
    return _largest_divisor_leq(B, max(1, bt))


def _mm(a, w_bf16):
    """bf16 x bf16 MXU matmul with f32 accumulation."""
    return jnp.dot(a.astype(BF16), w_bf16, preferred_element_type=jnp.float32)


def _layernorm(x, g, b, eps):
    mu = jnp.mean(x, axis=-1, keepdims=True)
    xc = x - mu
    var = jnp.mean(xc * xc, axis=-1, keepdims=True)
    return xc * jax.lax.rsqrt(var + eps) * g + b


def _gelu(x):
    # tanh approximation (EUP slot); torch nn.GELU is the exact erf form — ~1e-3 abs difference.
    return jax.nn.gelu(x, approximate=True)


# ----------------------------------------------------------------------------
# fused TokenEmbed kernel:  (Tg, K, Cin) groups -> (Tg, Cout), K folded into matmul M dim
# ----------------------------------------------------------------------------
def _token_embed_kernel(x_ref, w1_ref, b1_ref, w2_ref, b2_ref,
                        w3a_ref, w3b_ref, b3_ref, w4_ref, b4_ref, o_ref):
    Tg, K, Cin = x_ref.shape
    C2 = w2_ref.shape[1]
    C3 = w3a_ref.shape[1]
    xf = x_ref[...].reshape(Tg * K, Cin).astype(BF16)

    # first PointNet MLP (conv1 + folded BN + ReLU, conv2), K folded into the row dimension
    h1 = jnp.maximum(jnp.dot(xf, w1_ref[...], preferred_element_type=F32) + b1_ref[...], 0.0)
    f = _mm(h1, w2_ref[...]) + b2_ref[...]                   # (Tg*K, 256)
    fg = jnp.max(f.reshape(Tg, K, C2), axis=1)               # global max over K -> (Tg, 256)

    # second PointNet MLP: concat([fg, f]) @ W3 == fg @ W3a + f @ W3b  (concat never built)
    hg = _mm(fg, w3a_ref[...])                                # (Tg, 512), once per group
    fb = _mm(f, w3b_ref[...]).reshape(Tg, K, C3)
    h2 = jnp.maximum(fb + hg[:, None, :] + b3_ref[...], 0.0)
    f2 = _mm(h2.reshape(Tg * K, C3), w4_ref[...]) + b4_ref[...]
    o_ref[...] = jnp.max(f2.reshape(Tg, K, -1), axis=1).astype(o_ref.dtype)


def token_embed_forward(p, x):
    """TokenEmbed: (B, G, K, Cin) -> (B, G, Cout) bf16."""
    B, G, K, Cin = x.shape
    BG = B * G
    Cout = p["W4"].shape[-1]
    Tg = _largest_divisor_leq(BG, max(1, min(512, 2048 // max(K, 1))))
    names = ("W1", "b1", "W2", "b2", "W3a", "W3b", "b3", "W4", "b4")
    out = pl.pallas_call(
        _token_embed_kernel,
        out_shape=jax.ShapeDtypeStruct((BG, Cout), BF16),
        grid=(BG // Tg,),
        in_specs=[pl.BlockSpec((Tg, K, Cin), lambda i: (i, 0, 0))]
                 + [pl.BlockSpec(p[n].shape, lambda i: (0, 0)) for n in names],
        out_specs=pl.BlockSpec((Tg, Cout), lambda i: (i, 0)),
        compiler_params=pltpu.CompilerParams(
            dimension_semantics=("parallel",), vmem_limit_bytes=_vmem_limit_bytes()),
    )(x.reshape(BG, K, Cin).astype(BF16), *[p[n] for n in names])
    return out.reshape(B, G, Cout)


# ----------------------------------------------------------------------------
# fused encoder stage kernel: grid=(B//Bt, depth)
#   d==0   : seed resident token slab, compute pos MLP + additive mask into VMEM scratch
#   every d: LN1 -> q/k/v -> per-head attention (batched over Bt) -> proj -> LN2 -> MLP
#   d==last: write raw tokens (bf16) + final stage LayerNorm (f32)
# ----------------------------------------------------------------------------
def _stage_kernel(*refs, num_heads, scale, radius2, use_mask, eps):
    if use_mask:
        (x_ref, cen_ref, dcen_ref,
         pw1_ref, pb1_ref, pw2_ref, pb2_ref,
         ln1g_ref, ln1b_ref, qw_ref, kw_ref, vw_ref, prw_ref, prb_ref,
         ln2g_ref, ln2b_ref, f1w_ref, f1b_ref, f2w_ref, f2b_ref,
         ng_ref, nb_ref,
         o_ref, on_ref, xs_ref, pos_ref, ao_ref, mask_ref) = refs
    else:
        (x_ref, cen_ref,
         pw1_ref, pb1_ref, pw2_ref, pb2_ref,
         ln1g_ref, ln1b_ref, qw_ref, kw_ref, vw_ref, prw_ref, prb_ref,
         ln2g_ref, ln2b_ref, f1w_ref, f1b_ref, f2w_ref, f2b_ref,
         ng_ref, nb_ref,
         o_ref, on_ref, xs_ref, pos_ref, ao_ref) = refs
        dcen_ref = None
        mask_ref = None

    d = pl.program_id(1)
    Bt, G, C = xs_ref.shape
    H = num_heads
    Dh = C // H
    BtG = Bt * G

    @pl.when(d == 0)
    def _init():
        # resident f32 working copy of the bf16 tokens
        xs_ref[...] = x_ref[...].astype(F32)
        # positional MLP: Linear(3,C) -> GELU -> Linear(C,C); computed once per batch tile
        cf = cen_ref[...].astype(F32).reshape(BtG, 3)
        hp = jnp.dot(cf, pw1_ref[...], preferred_element_type=F32) + pb1_ref[...]
        hp = _gelu(hp)
        pos = _mm(hp, pw2_ref[...]) + pb2_ref[...]
        pos_ref[...] = pos.reshape(Bt, G, C)
        if use_mask:
            # additive local-attention mask (0 / -1e30) from pairwise squared distances;
            # dist >= radius  <=>  d2 >= radius^2, so no sqrt and no per-depth compare.
            c = dcen_ref[...].astype(F32)                               # (Bt, G, 3)
            sq_i = jnp.sum(c * c, axis=-1, keepdims=True)               # (Bt, G, 1)
            sq_j = jnp.sum(c * c, axis=-1)[:, None, :]                  # (Bt, 1, G)
            gram = jnp.einsum("bid,bjd->bij", c, c, preferred_element_type=F32)
            d2 = sq_i + sq_j - 2.0 * gram
            mask_ref[...] = jnp.where(d2 >= radius2, -1e30, 0.0).astype(F32)

    x = xs_ref[...].reshape(BtG, C)
    pos = pos_ref[...].reshape(BtG, C)
    xin = x + pos                                     # pos is added before EVERY block
    h = _layernorm(xin, ln1g_ref[0], ln1b_ref[0], eps)

    # --- attention: three full-C matmuls; per-head batched QK^T / PV; single proj matmul ---
    q = _mm(h, qw_ref[0]) * scale                     # scale folded into q (O(N*C), not O(H*N^2))
    k = _mm(h, kw_ref[0])
    v = _mm(h, vw_ref[0])
    if use_mask:
        amask = mask_ref[...]                         # (Bt, G, G), precomputed additive mask
    for hh in range(H):
        sl = slice(hh * Dh, (hh + 1) * Dh)
        qh = q[:, sl].reshape(Bt, G, Dh)
        kh = k[:, sl].reshape(Bt, G, Dh)
        vh = v[:, sl].reshape(Bt, G, Dh)
        s = jnp.einsum("bqd,bkd->bqk", qh.astype(BF16), kh.astype(BF16),
                       preferred_element_type=F32)
        if use_mask:
            s = s + amask
        m = jnp.max(s, axis=-1, keepdims=True)
        e = jnp.exp(s - m)
        p = e * pl.reciprocal(jnp.sum(e, axis=-1, keepdims=True), approx=True)
        oh = jnp.einsum("bqk,bkd->bqd", p.astype(BF16), vh.astype(BF16),
                        preferred_element_type=F32)
        ao_ref[:, :, sl] = oh                         # head outputs assembled in VMEM scratch
    attn = _mm(ao_ref[...].reshape(BtG, C), prw_ref[0]) + prb_ref[0]

    x1 = xin + attn                                   # residual (DropPath = identity in eval)
    h2 = _layernorm(x1, ln2g_ref[0], ln2b_ref[0], eps)
    mh = _gelu(_mm(h2, f1w_ref[0]) + f1b_ref[0])
    xnew = x1 + _mm(mh, f2w_ref[0]) + f2b_ref[0]
    xs_ref[...] = xnew.reshape(Bt, G, C)              # stays resident in VMEM across depth

    @pl.when(d == pl.num_programs(1) - 1)
    def _finalize():
        o_ref[...] = xnew.reshape(Bt, G, C).astype(o_ref.dtype)          # raw tokens (bf16)
        on_ref[...] = _layernorm(xnew, ng_ref[...], nb_ref[...], eps) \
            .reshape(Bt, G, C).astype(on_ref.dtype)                       # fused stage norm


def encoder_stage_forward(bp, pp, norm_p, x, centers, dist_centers, radius, use_mask, num_heads):
    B, G, C = x.shape
    D = bp["q_w"].shape[0]
    Hm = bp["fc1_w"].shape[-1]
    assert C % num_heads == 0
    Dh = C // num_heads
    vmem_limit = _vmem_limit_bytes()
    Bt = _choose_bt(B, G, C, Hm, vmem_limit)

    def bmap(b, d):
        return (b, 0, 0)

    def dmap(b, d):
        return (d, 0, 0)

    def cmap(b, d):
        return (0, 0)

    in_specs = [pl.BlockSpec((Bt, G, C), bmap),            # tokens (bf16, read at d==0)
                pl.BlockSpec((Bt, G, 3), bmap)]            # centers (pos MLP input)
    operands = [x.astype(BF16), centers.astype(F32)]
    if use_mask:
        in_specs.append(pl.BlockSpec((Bt, G, 3), bmap))    # centers used for the distance mask
        operands.append(dist_centers.astype(F32))

    in_specs += [pl.BlockSpec((3, C), cmap), pl.BlockSpec((1, C), cmap),
                 pl.BlockSpec((C, C), cmap), pl.BlockSpec((1, C), cmap)]
    operands += [pp["W1"], pp["b1"], pp["W2"], pp["b2"]]

    per_depth = [("ln1_g", (1, 1, C)), ("ln1_b", (1, 1, C)),
                 ("q_w", (1, C, C)), ("k_w", (1, C, C)), ("v_w", (1, C, C)),
                 ("proj_w", (1, C, C)), ("proj_b", (1, 1, C)),
                 ("ln2_g", (1, 1, C)), ("ln2_b", (1, 1, C)),
                 ("fc1_w", (1, C, Hm)), ("fc1_b", (1, 1, Hm)),
                 ("fc2_w", (1, Hm, C)), ("fc2_b", (1, 1, C))]
    for name, blk in per_depth:
        in_specs.append(pl.BlockSpec(blk, dmap))
        operands.append(bp[name])

    in_specs += [pl.BlockSpec((1, C), cmap), pl.BlockSpec((1, C), cmap)]   # fused final norm
    operands += [norm_p["g"], norm_p["b"]]

    scratch = [pltpu.VMEM((Bt, G, C), F32),    # resident token slab
               pltpu.VMEM((Bt, G, C), F32),    # positional embedding
               pltpu.VMEM((Bt, G, C), F32)]    # assembled attention head outputs
    if use_mask:
        scratch.append(pltpu.VMEM((Bt, G, G), F32))

    kernel = functools.partial(_stage_kernel, num_heads=num_heads, scale=Dh ** -0.5,
                               radius2=float(radius) ** 2, use_mask=use_mask, eps=1e-5)
    x_out, x_norm = pl.pallas_call(
        kernel,
        out_shape=(jax.ShapeDtypeStruct((B, G, C), BF16),   # raw tokens for the next stage
                   jax.ShapeDtypeStruct((B, G, C), F32)),   # LayerNorm'd stage output
        grid=(B // Bt, D),
        in_specs=in_specs,
        out_specs=(pl.BlockSpec((Bt, G, C), bmap), pl.BlockSpec((Bt, G, C), bmap)),
        scratch_shapes=scratch,
        compiler_params=pltpu.CompilerParams(
            dimension_semantics=("parallel", "arbitrary"),
            vmem_limit_bytes=vmem_limit),
    )(*operands)
    return x_out, x_norm


# ----------------------------------------------------------------------------
# HEncoder forward
# ----------------------------------------------------------------------------
def hencoder_forward(params, neighborhoods, centers, idxs, local_radius, num_heads):
    outs = []
    dist_src = None
    x_vis = None
    for i in range(len(centers)):
        if i == 0:
            tokens = token_embed_forward(params["token_embed"][0], neighborhoods[0])
        else:
            b, g1, c1 = x_vis.shape
            _, g2, k2, _ = neighborhoods[i].shape
            flat = x_vis.reshape(b * g1, c1)
            # TODO(synk): data-dependent row gather kept in plain JAX (XLA gather); a Pallas
            # scalar-prefetch gather kernel is possible but not worthwhile at these sizes.
            neigh = jnp.take(flat, idxs[i], axis=0).reshape(b, g2, k2, c1)
            tokens = token_embed_forward(params["token_embed"][i], neigh)

        use_mask = local_radius[i] > 0
        dist_c = None
        if use_mask:
            # replicate the module's lazy xyz_dist reuse: keep the previous stage's centers
            # when the group count matches (torch reuses the stale distance matrix then).
            if dist_src is None or dist_src.shape[1] != centers[i].shape[1]:
                dist_src = centers[i]
            dist_c = dist_src

        x_vis, x_norm = encoder_stage_forward(
            params["blocks"][i], params["pos_embed"][i], params["norms"][i],
            tokens, centers[i], dist_c, local_radius[i], use_mask, num_heads)
        # TODO(synk): for G >= 128 this transpose could be fused into the stage kernel's final
        # write; at small group counts the XLA transpose is cheaper than masked lane stores.
        outs.append(jnp.transpose(x_norm, (0, 2, 1)))       # .transpose(-1,-2) -> (B, C, G)
    return outs


# ----------------------------------------------------------------------------
# deterministic synthetic parameters (mirrors _init_weights shapes; BN folded for eval)
# ----------------------------------------------------------------------------
def trunc_normal(key, shape, std=0.02):
    return (std * jax.random.truncated_normal(key, -2.0, 2.0, shape)).astype(F32)


def init_hencoder_params(key, encoder_dims, encoder_depths, mlp_ratio=4):
    params = {"token_embed": [], "pos_embed": [], "blocks": [], "norms": []}
    bn_fold = 1.0 / math.sqrt(1.0 + 1e-5)   # eval BatchNorm1d folded (running mean=0 / var=1)
    in_cs = [3] + list(encoder_dims[:-1])
    for i, (cin, cout) in enumerate(zip(in_cs, encoder_dims)):
        key, *ks = jax.random.split(key, 8)
        te = dict(
            W1=(trunc_normal(ks[0], (cin, 128)) * bn_fold).astype(BF16),
            b1=jnp.zeros((1, 128), F32),
            W2=trunc_normal(ks[1], (128, 256)).astype(BF16),
            b2=jnp.zeros((1, 256), F32),
            # W3 split: rows acting on the global feature (W3a) vs the local feature (W3b)
            W3a=(trunc_normal(ks[2], (256, 512)) * bn_fold).astype(BF16),
            W3b=(trunc_normal(ks[3], (256, 512)) * bn_fold).astype(BF16),
            b3=jnp.zeros((1, 512), F32),
            W4=trunc_normal(ks[4], (512, cout)).astype(BF16),
            b4=jnp.zeros((1, cout), F32),
        )
        pe = dict(
            W1=trunc_normal(ks[5], (3, cout)), b1=jnp.zeros((1, cout), F32),
            W2=trunc_normal(ks[6], (cout, cout)).astype(BF16), b2=jnp.zeros((1, cout), F32),
        )
        D = encoder_depths[i]
        hm = mlp_ratio * cout
        kb = jax.random.split(jax.random.fold_in(key, i), 6)
        blocks = dict(   # depth-stacked so one pallas_call covers the whole stage
            ln1_g=jnp.ones((D, 1, cout), F32), ln1_b=jnp.zeros((D, 1, cout), F32),
            q_w=trunc_normal(kb[0], (D, cout, cout)).astype(BF16),
            k_w=trunc_normal(kb[1], (D, cout, cout)).astype(BF16),
            v_w=trunc_normal(kb[2], (D, cout, cout)).astype(BF16),
            proj_w=trunc_normal(kb[3], (D, cout, cout)).astype(BF16),
            proj_b=jnp.zeros((D, 1, cout), F32),
            ln2_g=jnp.ones((D, 1, cout), F32), ln2_b=jnp.zeros((D, 1, cout), F32),
            fc1_w=trunc_normal(kb[4], (D, cout, hm)).astype(BF16),
            fc1_b=jnp.zeros((D, 1, hm), F32),
            fc2_w=trunc_normal(kb[5], (D, hm, cout)).astype(BF16),
            fc2_b=jnp.zeros((D, 1, cout), F32),
        )
        params["token_embed"].append(te)
        params["pos_embed"].append(pe)
        params["blocks"].append(blocks)
        params["norms"].append(dict(g=jnp.ones((1, cout), F32), b=jnp.zeros((1, cout), F32)))
    return params


# ----------------------------------------------------------------------------
# demo
# ----------------------------------------------------------------------------
if __name__ == "__main__":
    encoder_dims = [96, 192, 384]     # module defaults (divisible by num_heads=6)
    encoder_depths = [2, 2, 2]        # small depths for a quick demo
    local_radius = [0.32, 0.64, 1.28]
    num_heads = 6
    B = 2
    Gs = [16, 8, 4]                   # groups per stage
    Ks = [8, 4, 4]                    # neighborhood size per stage

    key = jax.random.PRNGKey(0)
    kp, kd = jax.random.split(key)
    params = init_hencoder_params(kp, encoder_dims, encoder_depths)

    dkeys = jax.random.split(kd, 8)
    neighborhoods = [
        jax.random.uniform(dkeys[0], (B, Gs[0], Ks[0], 3), F32),
        jax.random.uniform(dkeys[1], (B, Gs[1], Ks[1], 3), F32),   # only shape used for i>0
        jax.random.uniform(dkeys[2], (B, Gs[2], Ks[2], 3), F32),
    ]
    centers = [
        jax.random.uniform(dkeys[3], (B, Gs[0], 3), F32),
        jax.random.uniform(dkeys[4], (B, Gs[1], 3), F32),
        jax.random.uniform(dkeys[5], (B, Gs[2], 3), F32),
    ]
    idxs = [
        None,
        jax.random.randint(dkeys[6], (B * Gs[1] * Ks[1],), 0, B * Gs[0], dtype=jnp.int32),
        jax.random.randint(dkeys[7], (B * Gs[2] * Ks[2],), 0, B * Gs[1], dtype=jnp.int32),
    ]

    outs = hencoder_forward(params, neighborhoods, centers, idxs, local_radius, num_heads)
    outs = [jax.block_until_ready(o) for o in outs]

    for o, C, G in zip(outs, encoder_dims, Gs):
        assert o.shape == (B, C, G), o.shape
        assert o.dtype == F32
        assert bool(jnp.all(jnp.isfinite(o)))
    print("KERNEL_OK")
</pallas_src>

<mosaic_0001>
module attributes {stable_mosaic.version = 11 : i64} {
  func.func @_token_embed_kernel(%arg0: i32, %arg1: memref<32x8x3xbf16, #tpu.memory_space<vmem>>, %arg2: memref<3x128xbf16, #tpu.memory_space<vmem>>, %arg3: memref<1x128xf32, #tpu.memory_space<vmem>>, %arg4: memref<128x256xbf16, #tpu.memory_space<vmem>>, %arg5: memref<1x256xf32, #tpu.memory_space<vmem>>, %arg6: memref<256x512xbf16, #tpu.memory_space<vmem>>, %arg7: memref<256x512xbf16, #tpu.memory_space<vmem>>, %arg8: memref<1x512xf32, #tpu.memory_space<vmem>>, %arg9: memref<512x96xbf16, #tpu.memory_space<vmem>>, %arg10: memref<1x96xf32, #tpu.memory_space<vmem>>, %arg11: memref<32x96xbf16, #tpu.memory_space<vmem>>) attributes {dimension_semantics = [#tpu.dimension_semantics<parallel>], iteration_bounds = array<i64: 1>, scalar_prefetch = 0 : i64, scratch_operands = 0 : i64, tpu.core_type = #tpu.core_type<tc>, window_params = [{transform_indices = @transform_0, window_bounds = array<i64: 32, 8, 3>}, {pipeline_mode = #tpu.pipeline_mode<synchronous>, transform_indices = @transform_1, window_bounds = array<i64: 3, 128>}, {pipeline_mode = #tpu.pipeline_mode<synchronous>, transform_indices = @transform_2, window_bounds = array<i64: 1, 128>}, {pipeline_mode = #tpu.pipeline_mode<synchronous>, transform_indices = @transform_3, window_bounds = array<i64: 128, 256>}, {pipeline_mode = #tpu.pipeline_mode<synchronous>, transform_indices = @transform_4, window_bounds = array<i64: 1, 256>}, {pipeline_mode = #tpu.pipeline_mode<synchronous>, transform_indices = @transform_5, window_bounds = array<i64: 256, 512>}, {pipeline_mode = #tpu.pipeline_mode<synchronous>, transform_indices = @transform_6, window_bounds = array<i64: 256, 512>}, {pipeline_mode = #tpu.pipeline_mode<synchronous>, transform_indices = @transform_7, window_bounds = array<i64: 1, 512>}, {pipeline_mode = #tpu.pipeline_mode<synchronous>, transform_indices = @transform_8, window_bounds = array<i64: 512, 96>}, {pipeline_mode = #tpu.pipeline_mode<synchronous>, transform_indices = @transform_9, window_bounds = array<i64: 1, 96>}, {transform_indices = @transform_10, window_bounds = array<i64: 32, 96>}]} {
    %c0 = arith.constant 0 : index
    %c0_0 = arith.constant 0 : index
    %c0_1 = arith.constant 0 : index
    %0 = vector.load %arg1[%c0, %c0_0, %c0_1] : memref<32x8x3xbf16, #tpu.memory_space<vmem>>, vector<32x8x3xbf16>
    %1 = vector.shape_cast %0 : vector<32x8x3xbf16> to vector<256x3xbf16>
    %c0_2 = arith.constant 0 : index
    %c0_3 = arith.constant 0 : index
    %2 = vector.load %arg2[%c0_2, %c0_3] : memref<3x128xbf16, #tpu.memory_space<vmem>>, vector<3x128xbf16>
    %cst = arith.constant dense<0.000000e+00> : vector<256x128xf32>
    %3 = tpu.matmul %1, %2, %cst {dimension_numbers = #tpu.dot_dimension_numbers<[1], [0], [0], [1], [0, 0, 1, 1], [], []>} : vector<256x3xbf16>, vector<3x128xbf16>, vector<256x128xf32> -> vector<256x128xf32>
    %c0_4 = arith.constant 0 : index
    %c0_5 = arith.constant 0 : index
    %4 = vector.load %arg3[%c0_4, %c0_5] : memref<1x128xf32, #tpu.memory_space<vmem>>, vector<1x128xf32>
    %5 = vector.broadcast %4 : vector<1x128xf32> to vector<256x128xf32>
    %6 = arith.addf %3, %5 : vector<256x128xf32>
    %cst_6 = arith.constant 0.000000e+00 : f32
    %7 = vector.broadcast %cst_6 : f32 to vector<256x128xf32>
    %8 = arith.maximumf %6, %7 : vector<256x128xf32>
    %c0_7 = arith.constant 0 : index
    %c0_8 = arith.constant 0 : index
    %9 = vector.load %arg4[%c0_7, %c0_8] : memref<128x256xbf16, #tpu.memory_space<vmem>>, vector<128x256xbf16>
    %10 = arith.truncf %8 : vector<256x128xf32> to vector<256x128xbf16>
    %cst_9 = arith.constant dense<0.000000e+00> : vector<256x256xf32>
    %11 = tpu.matmul %10, %9, %cst_9 {dimension_numbers = #tpu.dot_dimension_numbers<[1], [0], [0], [1], [0, 0, 1, 1], [], []>} : vector<256x128xbf16>, vector<128x256xbf16>, vector<256x256xf32> -> vector<256x256xf32>
    %c0_10 = arith.constant 0 : index
    %c0_11 = arith.constant 0 : index
    %12 = vector.load %arg5[%c0_10, %c0_11] : memref<1x256xf32, #tpu.memory_space<vmem>>, vector<1x256xf32>
    %13 = vector.broadcast %12 : vector<1x256xf32> to vector<256x256xf32>
    %14 = arith.addf %11, %13 : vector<256x256xf32>
    %15 = vector.shape_cast %14 : vector<256x256xf32> to vector<32x8x256xf32>
    %cst_12 = arith.constant dense<0xFF800000> : vector<32x256xf32>
    %16 = vector.multi_reduction <maximumf>, %15, %cst_12 [1] : vector<32x8x256xf32> to vector<32x256xf32>
    %c0_13 = arith.constant 0 : index
    %c0_14 = arith.constant 0 : index
    %17 = vector.load %arg6[%c0_13, %c0_14] : memref<256x512xbf16, #tpu.memory_space<vmem>>, vector<256x512xbf16>
    %18 = arith.truncf %16 : vector<32x256xf32> to vector<32x256xbf16>
    %cst_15 = arith.constant dense<0.000000e+00> : vector<32x512xf32>
    %19 = tpu.matmul %18, %17, %cst_15 {dimension_numbers = #tpu.dot_dimension_numbers<[1], [0], [0], [1], [0, 0, 1, 1], [], []>} : vector<32x256xbf16>, vector<256x512xbf16>, vector<32x512xf32> -> vector<32x512xf32>
    %c0_16 = arith.constant 0 : index
    %c0_17 = arith.constant 0 : index
    %20 = vector.load %arg7[%c0_16, %c0_17] : memref<256x512xbf16, #tpu.memory_space<vmem>>, vector<256x512xbf16>
    %21 = arith.truncf %14 : vector<256x256xf32> to vector<256x256xbf16>
    %cst_18 = arith.constant dense<0.000000e+00> : vector<256x512xf32>
    %22 = tpu.matmul %21, %20, %cst_18 {dimension_numbers = #tpu.dot_dimension_numbers<[1], [0], [0], [1], [0, 0, 1, 1], [], []>} : vector<256x256xbf16>, vector<256x512xbf16>, vector<256x512xf32> -> vector<256x512xf32>
    %23 = vector.shape_cast %22 : vector<256x512xf32> to vector<32x8x512xf32>
    %24 = vector.shape_cast %19 : vector<32x512xf32> to vector<32x1x512xf32>
    %25 = vector.broadcast %24 : vector<32x1x512xf32> to vector<32x8x512xf32>
    %26 = arith.addf %23, %25 : vector<32x8x512xf32>
    %c0_19 = arith.constant 0 : index
    %c0_20 = arith.constant 0 : index
    %27 = vector.load %arg8[%c0_19, %c0_20] : memref<1x512xf32, #tpu.memory_space<vmem>>, vector<1x512xf32>
    %28 = vector.shape_cast %27 : vector<1x512xf32> to vector<1x1x512xf32>
    %29 = vector.broadcast %28 : vector<1x1x512xf32> to vector<32x8x512xf32>
    %30 = arith.addf %26, %29 : vector<32x8x512xf32>
    %cst_21 = arith.constant 0.000000e+00 : f32
    %31 = vector.broadcast %cst_21 : f32 to vector<32x8x512xf32>
    %32 = arith.maximumf %30, %31 : vector<32x8x512xf32>
    %33 = vector.shape_cast %32 : vector<32x8x512xf32> to vector<256x512xf32>
    %c0_22 = arith.constant 0 : index
    %c0_23 = arith.constant 0 : index
    %34 = vector.load %arg9[%c0_22, %c0_23] : memref<512x96xbf16, #tpu.memory_space<vmem>>, vector<512x96xbf16>
    %35 = arith.truncf %33 : vector<256x512xf32> to vector<256x512xbf16>
    %cst_24 = arith.constant dense<0.000000e+00> : vector<256x96xf32>
    %36 = tpu.matmul %35, %34, %cst_24 {dimension_numbers = #tpu.dot_dimension_numbers<[1], [0], [0], [1], [0, 0, 1, 1], [], []>} : vector<256x512xbf16>, vector<512x96xbf16>, vector<256x96xf32> -> vector<256x96xf32>
    %c0_25 = arith.constant 0 : index
    %c0_26 = arith.constant 0 : index
    %37 = vector.load %arg10[%c0_25, %c0_26] : memref<1x96xf32, #tpu.memory_space<vmem>>, vector<1x96xf32>
    %38 = vector.broadcast %37 : vector<1x96xf32> to vector<256x96xf32>
    %39 = arith.addf %36, %38 : vector<256x96xf32>
    %40 = vector.shape_cast %39 : vector<256x96xf32> to vector<32x8x96xf32>
    %cst_27 = arith.constant dense<0xFF800000> : vector<32x96xf32>
    %41 = vector.multi_reduction <maximumf>, %40, %cst_27 [1] : vector<32x8x96xf32> to vector<32x96xf32>
    %42 = arith.truncf %41 : vector<32x96xf32> to vector<32x96xbf16>
    %c0_28 = arith.constant 0 : index
    %c0_29 = arith.constant 0 : index
    %43 = vector.load %arg11[%c0_28, %c0_29] : memref<32x96xbf16, #tpu.memory_space<vmem>>, vector<32x96xbf16>
    tpu.vector_store %arg11[%c0_28, %c0_29], %42 {strides = array<i32>} : memref<32x96xbf16, #tpu.memory_space<vmem>>, vector<32x96xbf16>,
    return
  }
  func.func @transform_0(%arg0: i32) -> (i32, i32, i32) {
    %c0_i32 = arith.constant 0 : i32
    %c0_i32_0 = arith.constant 0 : i32
    %c0_i32_1 = arith.constant 0 : i32
    return %arg0, %c0_i32, %c0_i32_0 : i32, i32, i32
  }
  func.func @transform_1(%arg0: i32) -> (i32, i32) {
    %c0_i32 = arith.constant 0 : i32
    %c0_i32_0 = arith.constant 0 : i32
    %c0_i32_1 = arith.constant 0 : i32
    return %c0_i32, %c0_i32_0 : i32, i32
  }
  func.func @transform_2(%arg0: i32) -> (i32, i32) {
    %c0_i32 = arith.constant 0 : i32
    %c0_i32_0 = arith.constant 0 : i32
    %c0_i32_1 = arith.constant 0 : i32
    return %c0_i32, %c0_i32_0 : i32, i32
  }
  func.func @transform_3(%arg0: i32) -> (i32, i32) {
    %c0_i32 = arith.constant 0 : i32
    %c0_i32_0 = arith.constant 0 : i32
    %c0_i32_1 = arith.constant 0 : i32
    return %c0_i32, %c0_i32_0 : i32, i32
  }
  func.func @transform_4(%arg0: i32) -> (i32, i32) {
    %c0_i32 = arith.constant 0 : i32
    %c0_i32_0 = arith.constant 0 : i32
    %c0_i32_1 = arith.constant 0 : i32
    return %c0_i32, %c0_i32_0 : i32, i32
  }
  func.func @transform_5(%arg0: i32) -> (i32, i32) {
    %c0_i32 = arith.constant 0 : i32
    %c0_i32_0 = arith.constant 0 : i32
    %c0_i32_1 = arith.constant 0 : i32
    return %c0_i32, %c0_i32_0 : i32, i32
  }
  func.func @transform_6(%arg0: i32) -> (i32, i32) {
    %c0_i32 = arith.constant 0 : i32
    %c0_i32_0 = arith.constant 0 : i32
    %c0_i32_1 = arith.constant 0 : i32
    return %c0_i32, %c0_i32_0 : i32, i32
  }
  func.func @transform_7(%arg0: i32) -> (i32, i32) {
    %c0_i32 = arith.constant 0 : i32
    %c0_i32_0 = arith.constant 0 : i32
    %c0_i32_1 = arith.constant 0 : i32
    return %c0_i32, %c0_i32_0 : i32, i32
  }
  func.func @transform_8(%arg0: i32) -> (i32, i32) {
    %c0_i32 = arith.constant 0 : i32
    %c0_i32_0 = arith.constant 0 : i32
    %c0_i32_1 = arith.constant 0 : i32
    return %c0_i32, %c0_i32_0 : i32, i32
  }
  func.func @transform_9(%arg0: i32) -> (i32, i32) {
    %c0_i32 = arith.constant 0 : i32
    %c0_i32_0 = arith.constant 0 : i32
    %c0_i32_1 = arith.constant 0 : i32
    return %c0_i32, %c0_i32_0 : i32, i32
  }
  func.func @transform_10(%arg0: i32) -> (i32, i32) {
    %c0_i32 = arith.constant 0 : i32
    %c0_i32_0 = arith.constant 0 : i32
    return %arg0, %c0_i32 : i32, i32
  }
}

</mosaic_0001>

<bundles_post_ra>
// kernel: tpu_custom_call.1
= control target key start
LH: loop header
LB: loop body
LE: loop exit
PB: predicated region body
PF: predicated region fallthrough
CT: control target
= control target key end

     0   :  { %15 = vsyncpa [#allocation3], 0  ;;  %s8273_s0 = inlined_call_operand.vmem [shape: bf16[32,8,3], index: 0, kind: input, shape index: {}]   ;;  %s8274_s1 = inlined_call_operand.vmem [shape: bf16[3,128], index: 1, kind: input, shape index: {}]   ;;  %s8275_s2 = inlined_call_operand.vmem [shape: f32[1,128], index: 2, kind: input, shape index: {}]   ;;  %s8276_s3 = inlined_call_operand.hbm [shape: bf16[128,256], index: 3, kind: input, shape index: {}]   ;;  %s8277_s4 = inlined_call_operand.vmem [shape: f32[1,256], index: 4, kind: input, shape index: {}]   ;;  %s8278_s5 = inlined_call_operand.vmem [shape: bf16[256,512], index: 5, kind: input, shape index: {}]   ;;  %s8279_s6 = inlined_call_operand.hbm [shape: bf16[256,512], index: 6, kind: input, shape index: {}]   ;;  %s8280_s7 = inlined_call_operand.vmem [shape: f32[1,512], index: 7, kind: input, shape index: {}]   ;;  %s8281_s8 = inlined_call_operand.vmem [shape: bf16[512,96], index: 8, kind: input, shape index: {}]   ;;  %s8282_s9 = inlined_call_operand.vmem [shape: f32[1,96], index: 9, kind: input, shape index: {}]   ;;  %s8283_s10 = inlined_call_operand.hbm [shape: bf16[32,96], index: 10, kind: output, shape index: {}]  }
   0x1   :  { %16 = vsyncpa [#allocation6], 0 }
   0x2   :  { %17 = vsyncpa [#allocation4], 0  ;;  %s6030_s13 = smov [#allocation2]   ;;  %s5958_s17 = scalar_lea.hbm %s8276_s3, 2048 }
   0x3   :  { %s29_s14 = sshll.u32 %s6030_s13, 4  ;;  %p5959_p0 = scmp.ne.s32.totalorder %s8276_s3, %s5958_s17  ;;  %s30_s14 = int_to_ptr.vmem [resolvable:$true] %s29_s14 }
   0x4   :  { %p5962_p1 = scmp.lt.u32.totalorder %s5958_s17, %s8276_s3 }
   0x6   :  { %p5964_p2 = pnand %p5962_p1, %p5959_p0 }
   0x8   :  { %5967 = shalt.err (!%p5964_p2)
}
   0x9   :  { %s5968_s22 = scalar_lea.vmem %s30_s14, 2048  ;;  %p5973_p4 = scmp.lt.s32.totalorder %s30_s14, %s30_s14 }
   0xa   :  { %p5969_p3 = scmp.ne.s32.totalorder %s30_s14, %s5968_s22  ;;  %p5974_p5 = scmp.lt.s32.totalorder %s5968_s22, %s5968_s22 }
   0xc   :  { %p5975_p6 = por %p5974_p5, %p5973_p4 }
   0xe   :  { %p5976_p7 = pnand %p5975_p6, %p5969_p3 }
  0x10   :  { %5979 = shalt.err (!%p5976_p7)
}
  0x11   :  { %s6031_s23 = smov 128   ;;  %s6032_s24 = smov 8  }
  0x12   :  { %35 = dma.hbm_to_vmem [thread:$0]  %s8276_s3, 2048, %s30_s14, [#allocation3], %s6031_s23, %s6031_s23, %s6032_s24  }
  0x13   :  { %s6033_s27 = smov [#allocation5]   ;;  %s5980_s11 = scalar_lea.hbm %s8279_s6, 8192 }
  0x14   :  { %s45_s28 = sshll.u32 %s6033_s27, 4  ;;  %p5981_p8 = scmp.ne.s32.totalorder %s8279_s6, %s5980_s11  ;;  %s46_s28 = int_to_ptr.vmem [resolvable:$true] %s45_s28 }
  0x15   :  { %p5984_p9 = scmp.lt.u32.totalorder %s5980_s11, %s8279_s6 }
  0x17   :  { %p5986_p10 = pnand %p5984_p9, %p5981_p8 }
  0x19   :  { %5989 = shalt.err (!%p5986_p10)
}
  0x1a   :  { %s5990_s17 = scalar_lea.vmem %s46_s28, 8192  ;;  %p5995_p12 = scmp.lt.s32.totalorder %s46_s28, %s46_s28 }
  0x1b   :  { %p5991_p11 = scmp.ne.s32.totalorder %s46_s28, %s5990_s17  ;;  %p5996_p13 = scmp.lt.s32.totalorder %s5990_s17, %s5990_s17 }
  0x1d   :  { %p5997_p0 = por %p5996_p13, %p5995_p12 }
  0x1f   :  { %p5998_p1 = pnand %p5997_p0, %p5991_p11 }
  0x21   :  { %6001 = shalt.err (!%p5998_p1)
}
  0x22   :  { %s6034_s3 = smov 256   ;;  %s6035_s14 = smov 16  }
  0x23   :  { %51 = dma.hbm_to_vmem [thread:$0]  %s8279_s6, 8192, %s46_s28, [#allocation6], %s6034_s3, %s6034_s3, %s6035_s14  }
  0x24   :  { %6024 = dma.done.wait [#allocation3], 2048  }
  0x25   :  { %6025 = vsyncadd [#allocation3], 4294965248 }
  0x26   :  { %6026 = dma.done.wait [#allocation6], 8192  }
  0x27   :  { %6027 = vsyncadd [#allocation6], 4294959104  ;;  %vm234_vm0 = vcmask 1040384   ;;  %vm235_vm1 = vcmask 1041408   ;;  %v6036_v0 = vmov 65535   ;;  %vm185_vm2 = vcmask 23552  }
  0x28   :  { %v236_v1 = vsel %vm234_vm0, 4294967295, %v6036_v0  ;;  %v97_v3 = vld [vmem:[%s8274_s1] sm:$0x3]  ;;  %v5695_v6 = vld [vmem:[%s8273_s0 + $0x8] sm:$0xff]   ;;  %v5696_v7 = vld [vmem:[%s8273_s0 + $0x10] sm:$0xff]   ;;  %v6037_v37 = vmov 0  }
  0x29   :  { %v237_v2 = vsel %vm235_vm1, %v236_v1, 0  ;;  %v5694_v5 = vld [vmem:[%s8273_s0] sm:$0xff]   ;;  %v5697_v8 = vld [vmem:[%s8273_s0 + $0x18] sm:$0xff]   ;;  %v5699_v12 = vld [vmem:[%s8273_s0 + $0x28] sm:$0xff]   ;;  %590 = vmatprep.mubr.bf16.mxu1 %v6037_v37  ;;  %vm1391_vm3 = vcmask 1041409   ;;  %vm1393_vm4 = vcmask 1042434  }
  0x2a   :  { %v239_v4 = vand.u32 %v237_v2, %v97_v3  ;;  %5634 = vmatprep.mubr.msk.bf16.mxu0 %vm185_vm2, %v5694_v5  ;;  %v5698_v9 = vld [vmem:[%s8273_s0 + $0x20] sm:$0xff]   ;;  %v5713_v13 = vld [vmem:[#allocation2 + $0x14] ss:$8 sps:$4 sm:$0xff]   ;;  %v5715_v15 = vld [vmem:[#allocation2 + $0x10] ss:$8 sps:$4 sm:$0xff]   ;;  %vm1395_vm5 = vcmask 1043459  }
  0x2b   :  { %v5710_v10 = vld [vmem:[#allocation2 + $0x4] ss:$8 sps:$4 sm:$0xff]   ;;  %v5712_v11 = vld [vmem:[#allocation2] ss:$8 sps:$4 sm:$0xff]   ;;  %v5700_v14 = vld [vmem:[%s8273_s0 + $0x30] sm:$0xff]   ;;  %vm1397_vm6 = vcmask 1044484  }
  0x2c   :  { %5632 = vmatprep.subr.bf16.mxu0 %v239_v4  ;;  %558 = vmatprep.subr.bf16.mxu1 %v5710_v10  ;;  %v5716_v16 = vld [vmem:[#allocation2 + $0x24] ss:$8 sps:$4 sm:$0xff]   ;;  %v5718_v17 = vld [vmem:[#allocation2 + $0x20] ss:$8 sps:$4 sm:$0xff]   ;;  %v5719_v18 = vld [vmem:[#allocation2 + $0x34] ss:$8 sps:$4 sm:$0xff]  }
  0x2d   :  { %5633 = vmatpush3.bf16.msra.mxu0 %v239_v4  ;;  %559 = vmatpush1.bf16.msra.mxu1 %v5712_v11  ;;  %v5701_v19 = vld [vmem:[%s8273_s0 + $0x38] sm:$0xff]   ;;  %v5702_v20 = vld [vmem:[%s8273_s0 + $0x40] sm:$0xff]   ;;  %v5703_v25 = vld [vmem:[%s8273_s0 + $0x48] sm:$0xff]   ;;  %vm1399_vm7 = vcmask 1045509   ;;  %vm1401_vm8 = vcmask 1046534   ;;  %vm1403_vm9 = vcmask 1047559  }
  0x2e   :  { %560 = vmatprep.subr.bf16.mxu1 %v5713_v13  ;;  %v5721_v21 = vld [vmem:[#allocation2 + $0x30] ss:$8 sps:$4 sm:$0xff]   ;;  %v5722_v22 = vld [vmem:[#allocation2 + $0x44] ss:$8 sps:$4 sm:$0xff]   ;;  %v5724_v23 = vld [vmem:[#allocation2 + $0x40] ss:$8 sps:$4 sm:$0xff]  }
  0x2f   :  { %v5725_v24 = vld [vmem:[#allocation2 + $0x54] ss:$8 sps:$4 sm:$0xff]   ;;  %v5727_v27 = vld [vmem:[#allocation2 + $0x50] ss:$8 sps:$4 sm:$0xff]   ;;  %v5706_v29 = vld [vmem:[%s8273_s0 + $0x60] sm:$0xff]   ;;  %vm4673_vm10 = vcmask 785408  }
  0x30   :  { %5635 = vmatmul.mubr.msk.bf16.vlgmr.msra.gmra.mrb[0].mxu0 %vm185_vm2, %v5695_v6  ;;  %v5704_v26 = vld [vmem:[%s8273_s0 + $0x50] sm:$0xff]   ;;  %v5705_v28 = vld [vmem:[%s8273_s0 + $0x58] sm:$0xff]   ;;  %v5707_v30 = vld [vmem:[%s8273_s0 + $0x68] sm:$0xff]   ;;  %vm5094_vm11 = vcmask 781312  }
  0x31   :  { %5638 = vmatprep.mubr.msk.bf16.mxu0 %vm185_vm2, %v5696_v7  ;;  %561 = vmatpush1.bf16.msra.mxu1 %v5715_v15  ;;  %v5708_v31 = vld [vmem:[%s8273_s0 + $0x70] sm:$0xff]   ;;  %v5709_v32 = vld [vmem:[%s8273_s0 + $0x78] sm:$0xff]   ;;  %v5728_v33 = vld [vmem:[#allocation2 + $0x64] ss:$8 sps:$4 sm:$0xff]  }
  0x32   :  { %562 = vmatprep.subr.bf16.mxu1 %v5716_v16  ;;  %v5730_v34 = vld [vmem:[#allocation2 + $0x60] ss:$8 sps:$4 sm:$0xff]   ;;  %v5731_v35 = vld [vmem:[#allocation2 + $0x74] ss:$8 sps:$4 sm:$0xff]   ;;  %v5733_v36 = vld [vmem:[#allocation2 + $0x70] ss:$8 sps:$4 sm:$0xff]  }
  0x33   :  { %v6192_v38 = vld [vmem:[%s8275_s2] ss:$0 sm:$0xff]  ;;  %v5736_v44 = vld [vmem:[#allocation5 + $0x4] ss:$16 sps:$4 sm:$0xff]  }
  0x34   :  { %v5734_v53 = vld [vmem:[#allocation5] ss:$16 sps:$4 sm:$0xff]   ;;  %v5739_v56 = vld [vmem:[#allocation5 + $0x24] ss:$16 sps:$4 sm:$0xff]  }
  0x35   :  { %563 = vmatpush1.bf16.msra.mxu1 %v5718_v17  ;;  %v5737_v0 = vld [vmem:[#allocation5 + $0x20] ss:$16 sps:$4 sm:$0xff]   ;;  %v5742_v3 = vld [vmem:[#allocation5 + $0x44] ss:$16 sps:$4 sm:$0xff]  }
  0x36   :  { %564 = vmatprep.subr.bf16.mxu1 %v5719_v18  ;;  %v5740_v7 = vld [vmem:[#allocation5 + $0x40] ss:$16 sps:$4 sm:$0xff]   ;;  %v5745_v10 = vld [vmem:[#allocation5 + $0x64] ss:$16 sps:$4 sm:$0xff]  }
  0x37   :  { %v5743_v18 = vld [vmem:[#allocation5 + $0x60] ss:$16 sps:$4 sm:$0xff]  }
  0x38   :  { %5639 = vmatmul.mubr.msk.bf16.gmra.mrb[4].mxu0 %vm185_vm2, %v5697_v8 }
  0x39   :  { %5642 = vmatprep.mubr.msk.bf16.mxu0 %vm185_vm2, %v5698_v9  ;;  %565 = vmatpush1.bf16.msra.mxu1 %v5721_v21  ;;  %v5748_v21 = vld [vmem:[#allocation5 + $0x84] ss:$16 sps:$4 sm:$0xff]  }
  0x3a   :  { %566 = vmatprep.subr.bf16.mxu1 %v5722_v22 }
  0x3d   :  { %567 = vmatpush1.bf16.msra.mxu1 %v5724_v23 }
  0x3e   :  { %568 = vmatprep.subr.bf16.mxu1 %v5725_v24 }
  0x40   :  { %5643 = vmatmul.mubr.msk.bf16.gmra.mrb[8].mxu0 %vm185_vm2, %v5699_v12 }
  0x41   :  { %5646 = vmatprep.mubr.msk.bf16.mxu0 %vm185_vm2, %v5700_v14  ;;  %569 = vmatpush1.bf16.msra.mxu1 %v5727_v27 }
  0x42   :  { %570 = vmatprep.subr.bf16.mxu1 %v5728_v33 }
  0x45   :  { %571 = vmatpush1.bf16.msra.mxu1 %v5730_v34 }
  0x46   :  { %572 = vmatprep.subr.bf16.mxu1 %v5731_v35 }
  0x48   :  { %5647 = vmatmul.mubr.msk.bf16.gmra.mrb[12].mxu0 %vm185_vm2, %v5701_v19 }
  0x49   :  { %5650 = vmatprep.mubr.msk.bf16.mxu0 %vm185_vm2, %v5702_v20  ;;  %573 = vmatpush1.bf16.msra.mxu1 %v5733_v36  ;;  %v5749_v36 = vld [vmem:[#allocation5 + $0xa0] ss:$16 sps:$4 sm:$0xff]  }
  0x4a   :  { %2304 = vmatprep.subr.bf16.mxu1 %v5736_v44 }
  0x50   :  { %5651 = vmatmul.mubr.msk.bf16.gmra.mrb[16].mxu0 %vm185_vm2, %v5703_v25  ;;  %v5746_v25 = vld [vmem:[#allocation5 + $0x80] ss:$16 sps:$4 sm:$0xff]  }
  0x51   :  { %5654 = vmatprep.mubr.msk.bf16.mxu0 %vm185_vm2, %v5704_v26 }
  0x58   :  { %5655 = vmatmul.mubr.msk.bf16.gmra.mrb[20].mxu0 %vm185_vm2, %v5705_v28  ;;  %v5751_v28 = vld [vmem:[#allocation5 + $0xa4] ss:$16 sps:$4 sm:$0xff]  }
  0x59   :  { %5658 = vmatprep.mubr.msk.bf16.mxu0 %vm185_vm2, %v5706_v29 }
  0x60   :  { %5659 = vmatmul.mubr.msk.bf16.gmra.mrb[24].mxu0 %vm185_vm2, %v5707_v30 }
  0x61   :  { %5662 = vmatprep.mubr.msk.bf16.mxu0 %vm185_vm2, %v5708_v31 }
  0x68   :  { %5663 = vmatmul.mubr.msk.bf16.gmra.mrb[28].mxu0 %vm185_vm2, %v5709_v32 }
 0x103   :  { %v5636_v39 = vpop.f32.mrb[0].mxu0 }
 0x104   :  { %v284_v40 = vadd.f32 %v5636_v39, %v6192_v38  ;;  %v275_v41 = vpop.f32.mrb[1].mxu0 }
 0x105   :  { %v276_v42 = vadd.f32 %v6192_v38, %v275_v41  ;;  %v5637_v43 = vpop.f32.mrb[2].mxu0  ;;  %v5754_v41 = vld [vmem:[#allocation5 + $0xc4] ss:$16 sps:$4 sm:$0xff]  }
 0x106   :  { %v287_v45 = vadd.f32 %v5637_v43, %v6192_v38  ;;  %v278_v46 = vpop.f32.mrb[3].mxu0  ;;  %v404_v48 = vmax.f32 %v284_v40, 0.0 }
 0x107   :  { %v279_v47 = vadd.f32 %v6192_v38, %v278_v46  ;;  %v402_v50 = vmax.f32 %v276_v42, 0.0 }
 0x108   :  { %v405_v49 = vmax.f32 %v287_v45, 0.0  ;;  %v5752_v45 = vld [vmem:[#allocation5 + $0xc0] ss:$16 sps:$4 sm:$0xff]  }
 0x109   :  { %v403_v51 = vmax.f32 %v279_v47, 0.0 }
 0x10a   :  { %v451_v52 = vpack.c.bf16 %v405_v49, %v404_v48  ;;  %v5757_v48 = vld [vmem:[#allocation5 + $0xe4] ss:$16 sps:$4 sm:$0xff]  }
 0x10b   :  { %v450_v54 = vpack.c.bf16 %v403_v51, %v402_v50  ;;  %v5640_v55 = vpop.f32.mrb[4].mxu0 }
 0x10c   :  { %v300_v57 = vadd.f32 %v5640_v55, %v6192_v38  ;;  %v291_v58 = vpop.f32.mrb[5].mxu0 }
 0x10d   :  { %591 = vmatmul.mubr.bf16.vlgmr.msra.gmra.mrb[0].mxu1 %v450_v54  ;;  %v292_v59 = vadd.f32 %v6192_v38, %v291_v58  ;;  %v5641_v60 = vpop.f32.mrb[6].mxu0 }
 0x10e   :  { %v408_v61 = vmax.f32 %v300_v57, 0.0  ;;  %v303_v62 = vadd.f32 %v5641_v60, %v6192_v38  ;;  %v294_v63 = vpop.f32.mrb[7].mxu0  ;;  %600 = vmatprep.mubr.bf16.mxu1 %v6037_v37  ;;  %2305 = vmatpush1.bf16.msra.mxu1 %v5734_v53 }
 0x10f   :  { %v406_v1 = vmax.f32 %v292_v59, 0.0  ;;  %v295_v2 = vadd.f32 %v6192_v38, %v294_v63  ;;  %2306 = vmatprep.subr.bf16.mxu1 %v5739_v56  ;;  %v5755_v56 = vld [vmem:[#allocation5 + $0xe0] ss:$16 sps:$4 sm:$0xff]   ;;  %v5760_v59 = vld [vmem:[#allocation5 + $0x104] ss:$16 sps:$4 sm:$0xff]  }
 0x110   :  { %v409_v4 = vmax.f32 %v303_v62, 0.0  ;;  %v5758_v63 = vld [vmem:[#allocation5 + $0x100] ss:$16 sps:$4 sm:$0xff]  }
 0x111   :  { %v407_v5 = vmax.f32 %v295_v2, 0.0  ;;  %v5763_v2 = vld [vmem:[#allocation5 + $0x124] ss:$16 sps:$4 sm:$0xff]  }
 0x112   :  { %v453_v6 = vpack.c.bf16 %v409_v4, %v408_v61  ;;  %2307 = vmatpush1.bf16.msra.mxu1 %v5737_v0 }
 0x113   :  { %v452_v8 = vpack.c.bf16 %v407_v5, %v406_v1  ;;  %v5644_v9 = vpop.f32.mrb[8].mxu0  ;;  %2308 = vmatprep.subr.bf16.mxu1 %v5742_v3 }
 0x114   :  { %v316_v11 = vadd.f32 %v5644_v9, %v6192_v38  ;;  %v307_v12 = vpop.f32.mrb[9].mxu0 }
 0x115   :  { %601 = vmatmul.mubr.bf16.gmra.mrb[4].mxu1 %v451_v52  ;;  %v308_v13 = vadd.f32 %v6192_v38, %v307_v12  ;;  %v5645_v14 = vpop.f32.mrb[10].mxu0 }
 0x116   :  { %610 = vmatprep.mubr.bf16.mxu1 %v6037_v37  ;;  %v412_v15 = vmax.f32 %v316_v11, 0.0  ;;  %v319_v16 = vadd.f32 %v5645_v14, %v6192_v38  ;;  %v310_v17 = vpop.f32.mrb[11].mxu0  ;;  %2309 = vmatpush1.bf16.msra.mxu1 %v5740_v7 }
 0x117   :  { %v410_v19 = vmax.f32 %v308_v13, 0.0  ;;  %v311_v20 = vadd.f32 %v6192_v38, %v310_v17  ;;  %2310 = vmatprep.subr.bf16.mxu1 %v5745_v10  ;;  %v5761_v10 = vld [vmem:[#allocation5 + $0x120] ss:$16 sps:$4 sm:$0xff]   ;;  %v5766_v13 = vld [vmem:[#allocation5 + $0x144] ss:$16 sps:$4 sm:$0xff]  }
 0x118   :  { %v413_v22 = vmax.f32 %v319_v16, 0.0  ;;  %v5764_v17 = vld [vmem:[#allocation5 + $0x140] ss:$16 sps:$4 sm:$0xff]  }
 0x119   :  { %v411_v23 = vmax.f32 %v311_v20, 0.0  ;;  %v5769_v20 = vld [vmem:[#allocation5 + $0x164] ss:$16 sps:$4 sm:$0xff]  }
 0x11a   :  { %v6208_v24 = vpack.c.bf16 %v413_v22, %v412_v15  ;;  %2311 = vmatpush1.bf16.msra.mxu1 %v5743_v18 }
 0x11b   :  { %v454_v26 = vpack.c.bf16 %v411_v23, %v410_v19  ;;  %v5648_v27 = vpop.f32.mrb[12].mxu0  ;;  %2312 = vmatprep.subr.bf16.mxu1 %v5748_v21 }
 0x11c   :  { %v332_v29 = vadd.f32 %v5648_v27, %v6192_v38  ;;  %v323_v30 = vpop.f32.mrb[13].mxu0 }
 0x11d   :  { %611 = vmatmul.mubr.bf16.gmra.mrb[8].mxu1 %v452_v8  ;;  %v324_v31 = vadd.f32 %v6192_v38, %v323_v30  ;;  %v5649_v32 = vpop.f32.mrb[14].mxu0 }
 0x11e   :  { %620 = vmatprep.mubr.bf16.mxu1 %v6037_v37  ;;  %v416_v33 = vmax.f32 %v332_v29, 0.0  ;;  %v335_v34 = vadd.f32 %v5649_v32, %v6192_v38  ;;  %v326_v35 = vpop.f32.mrb[15].mxu0  ;;  %2313 = vmatpush1.bf16.msra.mxu1 %v5746_v25  ;;  %v5767_v29 = vld [vmem:[#allocation5 + $0x160] ss:$16 sps:$4 sm:$0xff]   ;;  %v5772_v32 = vld [vmem:[#allocation5 + $0x184] ss:$16 sps:$4 sm:$0xff]  }
 0x11f   :  { %v414_v39 = vmax.f32 %v324_v31, 0.0  ;;  %v327_v40 = vadd.f32 %v6192_v38, %v326_v35  ;;  %2314 = vmatprep.subr.bf16.mxu1 %v5751_v28 }
 0x120   :  { %v417_v42 = vmax.f32 %v335_v34, 0.0 }
 0x121   :  { %v415_v43 = vmax.f32 %v327_v40, 0.0  ;;  %v5775_v40 = vld [vmem:[#allocation5 + $0x1a4] ss:$16 sps:$4 sm:$0xff]  }
 0x122   :  { %v6215_v44 = vpack.c.bf16 %v417_v42, %v416_v33  ;;  %2315 = vmatpush1.bf16.msra.mxu1 %v5749_v36 }
 0x123   :  { %v6217_v46 = vpack.c.bf16 %v415_v43, %v414_v39  ;;  %v5652_v47 = vpop.f32.mrb[16].mxu0  ;;  %2316 = vmatprep.subr.bf16.mxu1 %v5754_v41 }
 0x124   :  { %v348_v49 = vadd.f32 %v5652_v47, %v6192_v38  ;;  %v339_v50 = vpop.f32.mrb[17].mxu0 }
 0x125   :  { %621 = vmatmul.mubr.bf16.gmra.mrb[12].mxu1 %v453_v6  ;;  %v340_v51 = vadd.f32 %v6192_v38, %v339_v50  ;;  %v5653_v52 = vpop.f32.mrb[18].mxu0  ;;  %v5773_v50 = vld [vmem:[#allocation5 + $0x1a0] ss:$16 sps:$4 sm:$0xff]  }
 0x126   :  { %630 = vmatprep.mubr.bf16.mxu1 %v6037_v37  ;;  %v420_v53 = vmax.f32 %v348_v49, 0.0  ;;  %v351_v54 = vadd.f32 %v5653_v52, %v6192_v38  ;;  %v342_v55 = vpop.f32.mrb[19].mxu0  ;;  %2317 = vmatpush1.bf16.msra.mxu1 %v5752_v45 }
 0x127   :  { %v418_v57 = vmax.f32 %v340_v51, 0.0  ;;  %v343_v58 = vadd.f32 %v6192_v38, %v342_v55  ;;  %2318 = vmatprep.subr.bf16.mxu1 %v5757_v48 }
 0x128   :  { %v421_v60 = vmax.f32 %v351_v54, 0.0 }
 0x129   :  { %v419_v61 = vmax.f32 %v343_v58, 0.0  ;;  %v5779_v58 = vld [vmem:[#allocation5 + $0x1e0] ss:$16 sps:$4 sm:$0xff]  }
 0x12a   :  { %v6224_v62 = vpack.c.bf16 %v421_v60, %v420_v53  ;;  %2319 = vmatpush1.bf16.msra.mxu1 %v5755_v56  ;;  %v5776_v56 = vld [vmem:[#allocation5 + $0x1c0] ss:$16 sps:$4 sm:$0xff]   ;;  %v5787_v60 = vld [vmem:[%s8278_s5 + $0x24] ss:$16 sps:$4 sm:$0xff]  }
 0x12b   :  { %v6226_v0 = vpack.c.bf16 %v419_v61, %v418_v57  ;;  %v5656_v1 = vpop.f32.mrb[20].mxu0  ;;  %2320 = vmatprep.subr.bf16.mxu1 %v5760_v59  ;;  %v5781_v57 = vld [vmem:[#allocation5 + $0x1e4] ss:$16 sps:$4 sm:$0xff]   ;;  %v5782_v59 = vld [vmem:[%s8278_s5] ss:$16 sps:$4 sm:$0xff]  }
 0x12c   :  { %v364_v3 = vadd.f32 %v5656_v1, %v6192_v38  ;;  %v355_v4 = vpop.f32.mrb[21].mxu0  ;;  %v5785_v61 = vld [vmem:[%s8278_s5 + $0x20] ss:$16 sps:$4 sm:$0xff]   ;;  %v5796_v1 = vld [vmem:[%s8278_s5 + $0x84] ss:$16 sps:$4 sm:$0xff]  }
 0x12d   :  { %631 = vmatmul.mubr.bf16.gmra.mrb[16].mxu1 %v454_v26  ;;  %v356_v5 = vadd.f32 %v6192_v38, %v355_v4  ;;  %v5657_v6 = vpop.f32.mrb[22].mxu0  ;;  %v5797_v4 = vld [vmem:[%s8278_s5 + $0xa0] ss:$16 sps:$4 sm:$0xff]  }
 0x12e   :  { %640 = vmatprep.mubr.bf16.mxu1 %v6037_v37  ;;  %v424_v7 = vmax.f32 %v364_v3, 0.0  ;;  %v367_v8 = vadd.f32 %v5657_v6, %v6192_v38  ;;  %v358_v9 = vpop.f32.mrb[23].mxu0  ;;  %2321 = vmatpush1.bf16.msra.mxu1 %v5758_v63  ;;  %v5788_v63 = vld [vmem:[%s8278_s5 + $0x40] ss:$16 sps:$4 sm:$0xff]   ;;  %v5799_v3 = vld [vmem:[%s8278_s5 + $0xa4] ss:$16 sps:$4 sm:$0xff]  }
 0x12f   :  { %v422_v11 = vmax.f32 %v356_v5, 0.0  ;;  %v359_v12 = vadd.f32 %v6192_v38, %v358_v9  ;;  %2322 = vmatprep.subr.bf16.mxu1 %v5763_v2  ;;  %v5794_v2 = vld [vmem:[%s8278_s5 + $0x80] ss:$16 sps:$4 sm:$0xff]   ;;  %v5802_v5 = vld [vmem:[%s8278_s5 + $0xc4] ss:$16 sps:$4 sm:$0xff]  }
 0x130   :  { %v425_v14 = vmax.f32 %v367_v8, 0.0  ;;  %v5800_v6 = vld [vmem:[%s8278_s5 + $0xc0] ss:$16 sps:$4 sm:$0xff]   ;;  %v5808_v9 = vld [vmem:[%s8278_s5 + $0x104] ss:$16 sps:$4 sm:$0xff]  }
 0x131   :  { %v423_v15 = vmax.f32 %v359_v12, 0.0  ;;  %v5803_v8 = vld [vmem:[%s8278_s5 + $0xe0] ss:$16 sps:$4 sm:$0xff]  }
 0x132   :  { %v6233_v16 = vpack.c.bf16 %v425_v14, %v424_v7  ;;  %2323 = vmatpush1.bf16.msra.mxu1 %v5761_v10  ;;  %v5805_v7 = vld [vmem:[%s8278_s5 + $0xe4] ss:$16 sps:$4 sm:$0xff]   ;;  %v5806_v10 = vld [vmem:[%s8278_s5 + $0x100] ss:$16 sps:$4 sm:$0xff]  }
 0x133   :  { %v460_v18 = vpack.c.bf16 %v423_v15, %v422_v11  ;;  %v5660_v19 = vpop.f32.mrb[24].mxu0  ;;  %2324 = vmatprep.subr.bf16.mxu1 %v5766_v13  ;;  %v5811_v11 = vld [vmem:[%s8278_s5 + $0x124] ss:$16 sps:$4 sm:$0xff]   ;;  %v5809_v12 = vld [vmem:[%s8278_s5 + $0x120] ss:$16 sps:$4 sm:$0xff]  }
 0x134   :  { %v380_v21 = vadd.f32 %v5660_v19, %v6192_v38  ;;  %v371_v22 = vpop.f32.mrb[25].mxu0  ;;  %v5814_v13 = vld [vmem:[%s8278_s5 + $0x144] ss:$16 sps:$4 sm:$0xff]   ;;  %v5812_v14 = vld [vmem:[%s8278_s5 + $0x140] ss:$16 sps:$4 sm:$0xff]  }
 0x135   :  { %641 = vmatmul.mubr.bf16.gmra.mrb[20].mxu1 %v6208_v24  ;;  %v372_v23 = vadd.f32 %v6192_v38, %v371_v22  ;;  %v5661_v25 = vpop.f32.mrb[26].mxu0  ;;  %v5770_v24 = vld [vmem:[#allocation5 + $0x180] ss:$16 sps:$4 sm:$0xff]   ;;  %v5817_v15 = vld [vmem:[%s8278_s5 + $0x164] ss:$16 sps:$4 sm:$0xff]  }
 0x136   :  { %650 = vmatprep.mubr.bf16.mxu1 %v6037_v37  ;;  %v428_v26 = vmax.f32 %v380_v21, 0.0  ;;  %v383_v27 = vadd.f32 %v5661_v25, %v6192_v38  ;;  %v374_v28 = vpop.f32.mrb[27].mxu0  ;;  %2325 = vmatpush1.bf16.msra.mxu1 %v5764_v17  ;;  %v5820_v17 = vld [vmem:[%s8278_s5 + $0x184] ss:$16 sps:$4 sm:$0xff]   ;;  %v5824_v22 = vld [vmem:[%s8278_s5 + $0x1c0] ss:$16 sps:$4 sm:$0xff]  }
 0x137   :  { %v426_v30 = vmax.f32 %v372_v23, 0.0  ;;  %v375_v31 = vadd.f32 %v6192_v38, %v374_v28  ;;  %2326 = vmatprep.subr.bf16.mxu1 %v5769_v20  ;;  %v5823_v19 = vld [vmem:[%s8278_s5 + $0x1a4] ss:$16 sps:$4 sm:$0xff]   ;;  %v5821_v20 = vld [vmem:[%s8278_s5 + $0x1a0] ss:$16 sps:$4 sm:$0xff]  }
 0x138   :  { %v429_v33 = vmax.f32 %v383_v27, 0.0  ;;  %v5826_v21 = vld [vmem:[%s8278_s5 + $0x1c4] ss:$16 sps:$4 sm:$0xff]   ;;  %v5827_v25 = vld [vmem:[%s8278_s5 + $0x1e0] ss:$16 sps:$4 sm:$0xff]  }
 0x139   :  { %v427_v34 = vmax.f32 %v375_v31, 0.0  ;;  %v5829_v23 = vld [vmem:[%s8278_s5 + $0x1e4] ss:$16 sps:$4 sm:$0xff]  }
 0x13a   :  { %v463_v35 = vpack.c.bf16 %v429_v33, %v428_v26  ;;  %2327 = vmatpush1.bf16.msra.mxu1 %v5767_v29  ;;  %v468_v26 = vlaneseq  ;;  %v466_v29 = vld [vmem:[%s8277_s4] sm:$0x3] }
 0x13b   :  { %v462_v36 = vpack.c.bf16 %v427_v34, %v426_v30  ;;  %v5664_v39 = vpop.f32.mrb[28].mxu0  ;;  %2328 = vmatprep.subr.bf16.mxu1 %v5772_v32 }
 0x13c   :  { %v396_v41 = vadd.f32 %v5664_v39, %v6192_v38  ;;  %v387_v42 = vpop.f32.mrb[29].mxu0  ;;  %v6355_v27 = vshrl.u32 %v468_v26, 7  ;;  %v5832_v39 = vld [vmem:[%s8278_s5 + $0xc] ss:$16 sps:$4 sm:$0xff]  }
 0x13d   :  { %651 = vmatmul.mubr.bf16.gmra.mrb[24].mxu1 %v6217_v46  ;;  %v388_v43 = vadd.f32 %v6192_v38, %v387_v42  ;;  %v5665_v45 = vpop.f32.mrb[30].mxu0 }
 0x13e   :  { %660 = vmatprep.mubr.bf16.mxu1 %v6037_v37  ;;  %v432_v47 = vmax.f32 %v396_v41, 0.0  ;;  %v399_v48 = vadd.f32 %v5665_v45, %v6192_v38  ;;  %v390_v49 = vpop.f32.mrb[31].mxu0  ;;  %2329 = vmatpush1.bf16.msra.mxu1 %v5770_v24  ;;  %8333 = vst [vmem:[#allocation11_spill] sm:$0xff] %v6355_v27  ;;  %v6358_v28 = vsub.s32 0, %v6355_v27  ;;  %v6364_v30 = vsub.s32 1, %v6355_v27 }
 0x13f   :  { %v430_v51 = vmax.f32 %v388_v43, 0.0  ;;  %v391_v52 = vadd.f32 %v6192_v38, %v390_v49  ;;  %2330 = vmatprep.subr.bf16.mxu1 %v5775_v40  ;;  %v5778_v38 = vld [vmem:[#allocation5 + $0x1c4] ss:$16 sps:$4 sm:$0xff]  }
 0x140   :  { %v433_v53 = vmax.f32 %v399_v48, 0.0  ;;  %8334 = vst [vmem:[#allocation12_spill] sm:$0xff] %v6358_v28  ;;  %8335 = vst [vmem:[#allocation13_spill] sm:$0xff] %v6364_v30  ;;  %v6367_v31 = vrot.slane %v466_v29, %v6358_v28  ;;  %v6370_v32 = vrot.slane %v466_v29, %v6364_v30 }
 0x141   :  { %v431_v54 = vmax.f32 %v391_v52, 0.0 }
 0x142   :  { %v465_v55 = vpack.c.bf16 %v433_v53, %v432_v47  ;;  %2331 = vmatpush1.bf16.msra.mxu1 %v5773_v50 }
 0x143   :  { %v464_v46 = vpack.c.bf16 %v431_v54, %v430_v51  ;;  %2332 = vmatprep.subr.bf16.mxu1 %v5778_v38 }
 0x145   :  { %661 = vmatmul.mubr.bf16.gmra.mrb[28].mxu1 %v6215_v44  ;;  %v5784_v44 = vld [vmem:[%s8278_s5 + $0x4] ss:$16 sps:$4 sm:$0xff]  }
 0x146   :  { %670 = vmatprep.mubr.bf16.mxu1 %v6037_v37  ;;  %2333 = vmatpush1.bf16.msra.mxu1 %v5776_v56 }
 0x147   :  { %2334 = vmatprep.subr.bf16.mxu1 %v5781_v57  ;;  %1782 = vmatprep.subr.bf16.mxu0 %v5784_v44 }
 0x148   :  { %1783 = vmatpush1.bf16.msra.mxu0 %v5782_v59 }
 0x149   :  { %1784 = vmatprep.subr.bf16.mxu0 %v5787_v60 }
 0x14a   :  { %2335 = vmatpush1.bf16.msra.mxu1 %v5779_v58 }
 0x14c   :  { %1785 = vmatpush1.bf16.msra.mxu0 %v5785_v61 }
 0x14d   :  { %671 = vmatmul.mubr.bf16.gmra.mrb[32].mxu1 %v6226_v0  ;;  %v5791_v0 = vld [vmem:[%s8278_s5 + $0x60] ss:$16 sps:$4 sm:$0xff]  }
 0x14e   :  { %680 = vmatprep.mubr.bf16.mxu1 %v6037_v37 }
 0x155   :  { %681 = vmatmul.mubr.bf16.gmra.mrb[36].mxu1 %v6224_v62  ;;  %v5790_v62 = vld [vmem:[%s8278_s5 + $0x44] ss:$16 sps:$4 sm:$0xff]  }
 0x156   :  { %690 = vmatprep.mubr.bf16.mxu1 %v6037_v37  ;;  %1786 = vmatprep.subr.bf16.mxu0 %v5790_v62 }
 0x157   :  { %1787 = vmatpush1.bf16.msra.mxu0 %v5788_v63 }
 0x15d   :  { %691 = vmatmul.mubr.bf16.gmra.mrb[40].mxu1 %v460_v18  ;;  %v5818_v18 = vld [vmem:[%s8278_s5 + $0x180] ss:$16 sps:$4 sm:$0xff]  }
 0x15e   :  { %700 = vmatprep.mubr.bf16.mxu1 %v6037_v37 }
 0x165   :  { %701 = vmatmul.mubr.bf16.gmra.mrb[44].mxu1 %v6233_v16  ;;  %v5815_v16 = vld [vmem:[%s8278_s5 + $0x160] ss:$16 sps:$4 sm:$0xff]  }
 0x166   :  { %710 = vmatprep.mubr.bf16.mxu1 %v6037_v37 }
 0x16d   :  { %711 = vmatmul.mubr.bf16.gmra.mrb[48].mxu1 %v462_v36 }
 0x16e   :  { %720 = vmatprep.mubr.bf16.mxu1 %v6037_v37 }
 0x175   :  { %721 = vmatmul.mubr.bf16.gmra.mrb[52].mxu1 %v463_v35 }
 0x176   :  { %730 = vmatprep.mubr.bf16.mxu1 %v6037_v37 }
 0x17d   :  { %731 = vmatmul.mubr.bf16.gmra.mrb[56].mxu1 %v464_v46 }
 0x17e   :  { %740 = vmatprep.mubr.bf16.mxu1 %v6037_v37  ;;  %v5793_v37 = vld [vmem:[%s8278_s5 + $0x64] ss:$16 sps:$4 sm:$0xff]  }
 0x17f   :  { %1788 = vmatprep.subr.bf16.mxu0 %v5793_v37 }
 0x180   :  { %1789 = vmatpush1.bf16.msra.mxu0 %v5791_v0 }
 0x181   :  { %1790 = vmatprep.subr.bf16.mxu0 %v5796_v1 }
 0x184   :  { %1791 = vmatpush1.bf16.msra.mxu0 %v5794_v2 }
 0x185   :  { %741 = vmatmul.mubr.bf16.gmra.mrb[60].mxu1 %v465_v55  ;;  %1792 = vmatprep.subr.bf16.mxu0 %v5799_v3 }
 0x188   :  { %1793 = vmatpush1.bf16.msra.mxu0 %v5797_v4 }
 0x189   :  { %1794 = vmatprep.subr.bf16.mxu0 %v5802_v5 }
 0x18c   :  { %1795 = vmatpush1.bf16.msra.mxu0 %v5800_v6 }
 0x18d   :  { %1796 = vmatprep.subr.bf16.mxu0 %v5805_v7 }
 0x190   :  { %1797 = vmatpush1.bf16.msra.mxu0 %v5803_v8 }
 0x191   :  { %1798 = vmatprep.subr.bf16.mxu0 %v5808_v9 }
 0x194   :  { %1799 = vmatpush1.bf16.msra.mxu0 %v5806_v10 }
 0x195   :  { %1800 = vmatprep.subr.bf16.mxu0 %v5811_v11 }
 0x198   :  { %1801 = vmatpush1.bf16.msra.mxu0 %v5809_v12 }
 0x199   :  { %1802 = vmatprep.subr.bf16.mxu0 %v5814_v13 }
 0x19c   :  { %1803 = vmatpush1.bf16.msra.mxu0 %v5812_v14 }
 0x19d   :  { %1804 = vmatprep.subr.bf16.mxu0 %v5817_v15 }
 0x1a0   :  { %1805 = vmatpush1.bf16.msra.mxu0 %v5815_v16 }
 0x1a1   :  { %1806 = vmatprep.subr.bf16.mxu0 %v5820_v17 }
 0x1a4   :  { %1807 = vmatpush1.bf16.msra.mxu0 %v5818_v18 }
 0x1a5   :  { %1808 = vmatprep.subr.bf16.mxu0 %v5823_v19 }
 0x1a8   :  { %1809 = vmatpush1.bf16.msra.mxu0 %v5821_v20 }
 0x1a9   :  { %1810 = vmatprep.subr.bf16.mxu0 %v5826_v21 }
 0x1ac   :  { %1811 = vmatpush1.bf16.msra.mxu0 %v5824_v22 }
 0x1ad   :  { %1812 = vmatprep.subr.bf16.mxu0 %v5829_v23 }
 0x1b0   :  { %1813 = vmatpush1.bf16.msra.mxu0 %v5827_v25 }
 0x1b1   :  { %1835 = vmatprep.subr.bf16.mxu0 %v5832_v39 }
 0x1e0   :  { %v592_v33 = vpop.f32.mrb[0].mxu1 }
 0x1e1   :  { %v593_v34 = vadd.f32 %v592_v33, %v6367_v31  ;;  %v594_v35 = vpop.f32.mrb[1].mxu1 }
 0x1e2   :  { %v595_v24 = vadd.f32 %v594_v35, %v6370_v32  ;;  %v596_v36 = vpop.f32.mrb[2].mxu1 }
 0x1e3   :  { %v751_v40 = vrot.slane %v593_v34, 4  ;;  %v597_v41 = vadd.f32 %v596_v36, %v6367_v31  ;;  %v598_v42 = vpop.f32.mrb[3].mxu1 }
 0x1e4   :  { %v757_v43 = vrot.slane %v595_v24, 4  ;;  %v599_v45 = vadd.f32 %v598_v42, %v6370_v32 }
 0x1e5   :  { %v752_v47 = vmax.f32 %v593_v34, %v751_v40  ;;  %v763_v48 = vrot.slane %v597_v41, 4  ;;  %v6379_v49 = vpack.c.bf16 %v597_v41, %v593_v34 }
 0x1e6   :  { %v758_v50 = vmax.f32 %v595_v24, %v757_v43  ;;  %v769_v51 = vrot.slane %v599_v45, 4  ;;  %v6381_v52 = vpack.c.bf16 %v599_v45, %v595_v24 }
 0x1e7   :  { %v753_v53 = vrot.slane %v752_v47, 2  ;;  %v764_v54 = vmax.f32 %v597_v41, %v763_v48 }
 0x1e8   :  { %v759_v55 = vrot.slane %v758_v50, 2  ;;  %v770_v46 = vmax.f32 %v599_v45, %v769_v51  ;;  %v602_v38 = vpop.f32.mrb[4].mxu1  ;;  %2336 = vmatprep.mubr.bf16.mxu1 %v6381_v52 }
 0x1e9   :  { %v754_v56 = vmax.f32 %v752_v47, %v753_v53  ;;  %v765_v57 = vrot.slane %v764_v54, 2  ;;  %v6385_v58 = vadd.f32 %v602_v38, %v6367_v31  ;;  %v604_v44 = vpop.f32.mrb[5].mxu1  ;;  %2337 = vmatmul.mubr.bf16.vlgmr.msra.gmra.mrb[64].mxu1 %v6379_v49 }
 0x1ea   :  { %v760_v59 = vmax.f32 %v758_v50, %v759_v55  ;;  %v771_v60 = vrot.slane %v770_v46, 2  ;;  %v605_v61 = vadd.f32 %v604_v44, %v6370_v32  ;;  %v606_v62 = vpop.f32.mrb[6].mxu1 }
 0x1eb   :  { %v755_v63 = vrot.slane %v754_v56, 1  ;;  %v766_v37 = vmax.f32 %v764_v54, %v765_v57  ;;  %v775_v0 = vrot.slane %v6385_v58, 4  ;;  %v607_v1 = vadd.f32 %v606_v62, %v6367_v31  ;;  %v608_v2 = vpop.f32.mrb[7].mxu1 }
 0x1ec   :  { %v761_v3 = vrot.slane %v760_v59, 1  ;;  %v772_v4 = vmax.f32 %v770_v46, %v771_v60  ;;  %v781_v5 = vrot.slane %v605_v61, 4  ;;  %v609_v6 = vadd.f32 %v608_v2, %v6370_v32 }
 0x1ed   :  { %v756_v7 = vmax.f32 %v754_v56, %v755_v63  ;;  %v767_v8 = vrot.slane %v766_v37, 1  ;;  %v776_v9 = vmax.f32 %v6385_v58, %v775_v0  ;;  %v787_v10 = vrot.slane %v607_v1, 4 }
 0x1ee   :  { %v762_v11 = vmax.f32 %v760_v59, %v761_v3  ;;  %v773_v12 = vrot.slane %v772_v4, 1  ;;  %v782_v13 = vmax.f32 %v605_v61, %v781_v5  ;;  %v793_v14 = vrot.slane %v609_v6, 4 }
 0x1ef   :  { %v1199_v15 = vpack.c.bf16 %v756_v7, %v756_v7  ;;  %v768_v16 = vmax.f32 %v766_v37, %v767_v8  ;;  %v777_v17 = vrot.slane %v776_v9, 2  ;;  %v788_v18 = vmax.f32 %v607_v1, %v787_v10 }
 0x1f0   :  { %v1200_v19 = vpack.c.bf16 %v762_v11, %v762_v11  ;;  %v774_v20 = vmax.f32 %v772_v4, %v773_v12  ;;  %v783_v21 = vrot.slane %v782_v13, 2  ;;  %v794_v22 = vmax.f32 %v609_v6, %v793_v14  ;;  %v612_v23 = vpop.f32.mrb[8].mxu1 }
 0x1f1   :  { %v1327_v25 = vunpack.c.l.b16 %v1199_v15  ;;  %v1201_v26 = vpack.c.bf16 %v768_v16, %v768_v16  ;;  %v778_v29 = vmax.f32 %v776_v9, %v777_v17  ;;  %v789_v33 = vrot.slane %v788_v18, 2  ;;  %v614_v34 = vpop.f32.mrb[9].mxu1 }
 0x1f2   :  { %v1328_v35 = vunpack.c.l.b16 %v1200_v19  ;;  %v1202_v24 = vpack.c.bf16 %v774_v20, %v774_v20  ;;  %v784_v36 = vmax.f32 %v782_v13, %v783_v21  ;;  %v795_v39 = vrot.slane %v794_v22, 2  ;;  %v616_v40 = vpop.f32.mrb[10].mxu1 }
 0x1f3   :  { %v1329_v41 = vunpack.c.l.b16 %v1201_v26  ;;  %v779_v42 = vrot.slane %v778_v29, 1  ;;  %v790_v43 = vmax.f32 %v788_v18, %v789_v33  ;;  %v613_v45 = vadd.f32 %v612_v23, %v6367_v31  ;;  %v618_v47 = vpop.f32.mrb[11].mxu1 }
 0x1f4   :  { %v1330_v48 = vunpack.c.l.b16 %v1202_v24  ;;  %v785_v50 = vrot.slane %v784_v36, 1  ;;  %v796_v51 = vmax.f32 %v794_v22, %v795_v39  ;;  %v6394_v53 = vpack.c.bf16 %v609_v6, %v605_v61 }
 0x1f5   :  { %v1392_v54 = vsel %vm1391_vm3, %v1329_v41, %v1327_v25  ;;  %v780_v55 = vmax.f32 %v778_v29, %v779_v42  ;;  %v791_v46 = vrot.slane %v790_v43, 1  ;;  %v799_v38 = vrot.slane %v613_v45, 4 }
 0x1f6   :  { %v1405_v56 = vsel %vm1391_vm3, %v1330_v48, %v1328_v35  ;;  %v786_v57 = vmax.f32 %v784_v36, %v785_v50  ;;  %v797_v44 = vrot.slane %v796_v51, 1  ;;  %2346 = vmatprep.mubr.bf16.mxu1 %v6394_v53  ;;  %v615_v59 = vadd.f32 %v614_v34, %v6370_v32 }
 0x1f7   :  { %v1203_v60 = vpack.c.bf16 %v780_v55, %v780_v55  ;;  %v792_v62 = vmax.f32 %v790_v43, %v791_v46  ;;  %v800_v63 = vmax.f32 %v613_v45, %v799_v38  ;;  %v6401_v37 = vpack.c.bf16 %v607_v1, %v6385_v58 }
 0x1f8   :  { %v1204_v61 = vpack.c.bf16 %v786_v57, %v786_v57  ;;  %v798_v0 = vmax.f32 %v796_v51, %v797_v44  ;;  %v805_v2 = vrot.slane %v615_v59, 4  ;;  %v617_v3 = vadd.f32 %v616_v40, %v6367_v31  ;;  %v622_v4 = vpop.f32.mrb[12].mxu1 }
 0x1f9   :  { %v1331_v5 = vunpack.c.l.b16 %v1203_v60  ;;  %v1205_v6 = vpack.c.bf16 %v792_v62, %v792_v62  ;;  %v801_v7 = vrot.slane %v800_v63, 2  ;;  %2347 = vmatmul.mubr.bf16.gmra.mrb[68].mxu1 %v6401_v37  ;;  %v619_v8 = vadd.f32 %v618_v47, %v6370_v32  ;;  %v624_v9 = vpop.f32.mrb[13].mxu1 }
 0x1fa   :  { %v1332_v10 = vunpack.c.l.b16 %v1204_v61  ;;  %v1206_v11 = vpack.c.bf16 %v798_v0, %v798_v0  ;;  %v806_v12 = vmax.f32 %v615_v59, %v805_v2  ;;  %v811_v58 = vrot.slane %v617_v3, 4  ;;  %v626_v1 = vpop.f32.mrb[14].mxu1 }
 0x1fb   :  { %v1394_v13 = vsel %vm1393_vm4, %v1331_v5, %v1392_v54  ;;  %v1333_v14 = vunpack.c.l.b16 %v1205_v6  ;;  %v802_v15 = vmax.f32 %v800_v63, %v801_v7  ;;  %v817_v16 = vrot.slane %v619_v8, 4  ;;  %v628_v17 = vpop.f32.mrb[15].mxu1 }
 0x1fc   :  { %v6408_v18 = vsel %vm1393_vm4, %v1332_v10, %v1405_v56  ;;  %v6410_v19 = vunpack.c.l.b16 %v1206_v11  ;;  %v807_v20 = vrot.slane %v806_v12, 2  ;;  %v812_v21 = vmax.f32 %v617_v3, %v811_v58 }
 0x1fd   :  { %v1396_v22 = vsel %vm1395_vm5, %v1333_v14, %v1394_v13  ;;  %v803_v23 = vrot.slane %v802_v15, 1  ;;  %v818_v25 = vmax.f32 %v619_v8, %v817_v16  ;;  %v6414_v26 = vadd.f32 %v622_v4, %v6367_v31 }
 0x1fe   :  { %v808_v29 = vmax.f32 %v806_v12, %v807_v20  ;;  %v813_v33 = vrot.slane %v812_v21, 2  ;;  %v6416_v34 = vpack.c.bf16 %v619_v8, %v615_v59  ;;  %v625_v35 = vadd.f32 %v624_v9, %v6370_v32 }
 0x1ff   :  { %v804_v24 = vmax.f32 %v802_v15, %v803_v23  ;;  %v819_v36 = vrot.slane %v818_v25, 2  ;;  %v823_v39 = vrot.slane %v6414_v26, 4  ;;  %v6420_v40 = vpack.c.bf16 %v617_v3, %v613_v45 }
 0x200   :  { %8336 = vst [vmem:[#allocation14_spill] sm:$0xff] %v6416_v34  ;;  %v809_v41 = vrot.slane %v808_v29, 1  ;;  %v814_v42 = vmax.f32 %v812_v21, %v813_v33  ;;  %2356 = vmatprep.mubr.bf16.mxu1 %v6416_v34  ;;  %v829_v43 = vrot.slane %v625_v35, 4  ;;  %v627_v47 = vadd.f32 %v626_v1, %v6367_v31  ;;  %v632_v48 = vpop.f32.mrb[16].mxu1 }
 0x201   :  { %8337 = vst [vmem:[#allocation15_spill] sm:$0xff] %v6420_v40  ;;  %v1207_v50 = vpack.c.bf16 %v804_v24, %v804_v24  ;;  %v820_v51 = vmax.f32 %v818_v25, %v819_v36  ;;  %v824_v54 = vmax.f32 %v6414_v26, %v823_v39  ;;  %2357 = vmatmul.mubr.bf16.gmra.mrb[72].mxu1 %v6420_v40  ;;  %v634_v46 = vpop.f32.mrb[17].mxu1 }
 0x202   :  { %v629_v55 = vadd.f32 %v628_v17, %v6370_v32  ;;  %v810_v38 = vmax.f32 %v808_v29, %v809_v41  ;;  %v815_v45 = vrot.slane %v814_v42, 1  ;;  %v830_v56 = vmax.f32 %v625_v35, %v829_v43  ;;  %v636_v44 = vpop.f32.mrb[18].mxu1 }
 0x203   :  { %v835_v57 = vrot.slane %v627_v47, 4  ;;  %v1335_v59 = vunpack.c.l.b16 %v1207_v50  ;;  %v821_v60 = vrot.slane %v820_v51, 1  ;;  %v825_v62 = vrot.slane %v824_v54, 2  ;;  %v638_v61 = vpop.f32.mrb[19].mxu1 }
 0x204   :  { %v841_v63 = vrot.slane %v629_v55, 4  ;;  %v1208_v0 = vpack.c.bf16 %v810_v38, %v810_v38  ;;  %v816_v2 = vmax.f32 %v814_v42, %v815_v45  ;;  %v831_v3 = vrot.slane %v830_v56, 2 }
 0x205   :  { %v836_v4 = vmax.f32 %v627_v47, %v835_v57  ;;  %v1398_v5 = vsel %vm1397_vm6, %v1335_v59, %v1396_v22  ;;  %v822_v6 = vmax.f32 %v820_v51, %v821_v60  ;;  %v826_v7 = vmax.f32 %v824_v54, %v825_v62 }
 0x206   :  { %v842_v8 = vmax.f32 %v629_v55, %v841_v63  ;;  %v6428_v9 = vunpack.c.l.b16 %v1208_v0  ;;  %v1209_v10 = vpack.c.bf16 %v816_v2, %v816_v2  ;;  %v832_v11 = vmax.f32 %v830_v56, %v831_v3 }
 0x207   :  { %v837_v12 = vrot.slane %v836_v4, 2  ;;  %v1210_v58 = vpack.c.bf16 %v822_v6, %v822_v6  ;;  %v827_v1 = vrot.slane %v826_v7, 1  ;;  %v633_v14 = vadd.f32 %v632_v48, %v6367_v31 }
 0x208   :  { %v843_v13 = vrot.slane %v842_v8, 2  ;;  %v1337_v15 = vunpack.c.l.b16 %v1209_v10  ;;  %v833_v16 = vrot.slane %v832_v11, 1  ;;  %v6431_v20 = vpack.c.bf16 %v629_v55, %v625_v35  ;;  %v642_v21 = vpop.f32.mrb[20].mxu1 }
 0x209   :  { %v838_v17 = vmax.f32 %v836_v4, %v837_v12  ;;  %v6433_v22 = vunpack.c.l.b16 %v1210_v58  ;;  %v828_v23 = vmax.f32 %v826_v7, %v827_v1  ;;  %v847_v29 = vrot.slane %v633_v14, 4  ;;  %v644_v33 = vpop.f32.mrb[21].mxu1 }
 0x20a   :  { %8338 = vst [vmem:[#allocation16_spill] sm:$0xff] %v6431_v20  ;;  %v844_v25 = vmax.f32 %v842_v8, %v843_v13  ;;  %v1400_v24 = vsel %vm1399_vm7, %v1337_v15, %v1398_v5  ;;  %v834_v36 = vmax.f32 %v832_v11, %v833_v16  ;;  %2366 = vmatprep.mubr.bf16.mxu1 %v6431_v20  ;;  %v646_v42 = vpop.f32.mrb[22].mxu1 }
 0x20b   :  { %v839_v39 = vrot.slane %v838_v17, 1  ;;  %v635_v41 = vadd.f32 %v634_v46, %v6370_v32  ;;  %v1211_v43 = vpack.c.bf16 %v828_v23, %v828_v23  ;;  %v848_v35 = vmax.f32 %v633_v14, %v847_v29  ;;  %v648_v51 = vpop.f32.mrb[23].mxu1 }
 0x20c   :  { %v845_v48 = vrot.slane %v844_v25, 1  ;;  %v6439_v50 = vpack.c.bf16 %v627_v47, %v6414_v26  ;;  %v1212_v54 = vpack.c.bf16 %v834_v36, %v834_v36  ;;  %v637_v45 = vadd.f32 %v636_v44, %v6367_v31 }
 0x20d   :  { %v840_v55 = vmax.f32 %v838_v17, %v839_v39  ;;  %v853_v38 = vrot.slane %v635_v41, 4  ;;  %v1339_v56 = vunpack.c.l.b16 %v1211_v43  ;;  %v849_v59 = vrot.slane %v848_v35, 2 }
 0x20e   :  { %8339 = vst [vmem:[#allocation17_spill] sm:$0xff] %v6439_v50  ;;  %v6442_v57 = vmax.f32 %v844_v25, %v845_v48  ;;  %2367 = vmatmul.mubr.bf16.gmra.mrb[76].mxu1 %v6439_v50  ;;  %v639_v46 = vadd.f32 %v638_v61, %v6370_v32  ;;  %v6446_v60 = vunpack.c.l.b16 %v1212_v54  ;;  %v859_v26 = vrot.slane %v637_v45, 4 }
 0x20f   :  { %v1213_v62 = vpack.c.bf16 %v840_v55, %v840_v55  ;;  %v854_v63 = vmax.f32 %v635_v41, %v853_v38  ;;  %v6449_v47 = vsel %vm1401_vm8, %v1339_v56, %v1400_v24  ;;  %v850_v44 = vmax.f32 %v848_v35, %v849_v59 }
 0x210   :  { %v865_v2 = vrot.slane %v639_v46, 4  ;;  %v860_v5 = vmax.f32 %v637_v45, %v859_v26  ;;  %v6456_v6 = vadd.f32 %v642_v21, %v6367_v31  ;;  %v652_v61 = vpop.f32.mrb[24].mxu1  ;;  %v6458_v10 = vpack.c.bf16 %v639_v46, %v635_v41 }
 0x211   :  { %v6453_v3 = vunpack.c.l.b16 %v1213_v62  ;;  %v855_v4 = vrot.slane %v854_v63, 2  ;;  %v851_v7 = vrot.slane %v850_v44, 1  ;;  %v645_v11 = vadd.f32 %v644_v33, %v6370_v32  ;;  %v654_v12 = vpop.f32.mrb[25].mxu1 }
 0x212   :  { %v866_v8 = vmax.f32 %v639_v46, %v865_v2  ;;  %8340 = vst [vmem:[#allocation18_spill] sm:$0xff] %v6458_v10  ;;  %v861_v1 = vrot.slane %v860_v5, 2  ;;  %v871_v13 = vrot.slane %v6456_v6, 4  ;;  %v6462_v15 = vpack.c.bf16 %v637_v45, %v633_v14  ;;  %v6464_v16 = vpop.f32.mrb[26].mxu1  ;;  %2376 = vmatprep.mubr.bf16.mxu1 %v6458_v10 }
 0x213   :  { %v856_v58 = vmax.f32 %v854_v63, %v855_v4  ;;  %v852_v17 = vmax.f32 %v850_v44, %v851_v7  ;;  %v877_v21 = vrot.slane %v645_v11, 4  ;;  %v647_v25 = vadd.f32 %v646_v42, %v6367_v31  ;;  %v6468_v29 = vpop.f32.mrb[27].mxu1 }
 0x214   :  { %8341 = vst [vmem:[#allocation19_spill] sm:$0xff] %v6462_v15  ;;  %v867_v23 = vrot.slane %v866_v8, 2  ;;  %v862_v33 = vmax.f32 %v860_v5, %v861_v1  ;;  %v872_v36 = vmax.f32 %v6456_v6, %v871_v13  ;;  %v649_v39 = vadd.f32 %v648_v51, %v6370_v32 }
 0x215   :  { %v857_v24 = vrot.slane %v856_v58, 1  ;;  %v1215_v41 = vpack.c.bf16 %v852_v17, %v852_v17  ;;  %v878_v43 = vmax.f32 %v645_v11, %v877_v21  ;;  %v883_v48 = vrot.slane %v647_v25, 4 }
 0x216   :  { %v868_v14 = vmax.f32 %v866_v8, %v867_v23  ;;  %2377 = vmatmul.mubr.bf16.gmra.mrb[80].mxu1 %v6462_v15  ;;  %v863_v54 = vrot.slane %v862_v33, 1  ;;  %v873_v55 = vrot.slane %v872_v36, 2  ;;  %v889_v38 = vrot.slane %v649_v39, 4 }
 0x217   :  { %v858_v35 = vmax.f32 %v856_v58, %v857_v24  ;;  %v1343_v45 = vunpack.c.l.b16 %v1215_v41  ;;  %v879_v56 = vrot.slane %v878_v43, 2  ;;  %v884_v59 = vmax.f32 %v647_v25, %v883_v48 }
 0x218   :  { %v869_v42 = vrot.slane %v868_v14, 1  ;;  %v864_v62 = vmax.f32 %v862_v33, %v863_v54  ;;  %v874_v63 = vmax.f32 %v872_v36, %v873_v55  ;;  %v890_v26 = vmax.f32 %v649_v39, %v889_v38  ;;  %v662_v44 = vpop.f32.mrb[28].mxu1 }
 0x219   :  { %v1216_v46 = vpack.c.bf16 %v858_v35, %v858_v35  ;;  %v880_v2 = vmax.f32 %v878_v43, %v879_v56  ;;  %v885_v4 = vrot.slane %v884_v59, 2  ;;  %v6474_v5 = vadd.f32 %v652_v61, %v6367_v31  ;;  %v664_v7 = vpop.f32.mrb[29].mxu1 }
 0x21a   :  { %v870_v51 = vmax.f32 %v868_v14, %v869_v42  ;;  %v1217_v58 = vpack.c.bf16 %v864_v62, %v864_v62  ;;  %v875_v1 = vrot.slane %v874_v63, 1  ;;  %v891_v13 = vrot.slane %v890_v26, 2  ;;  %v666_v17 = vpop.f32.mrb[30].mxu1 }
 0x21b   :  { %v1344_v8 = vunpack.c.l.b16 %v1216_v46  ;;  %v881_v21 = vrot.slane %v880_v2, 1  ;;  %v886_v24 = vmax.f32 %v884_v59, %v885_v4  ;;  %v895_v33 = vrot.slane %v6474_v5, 4  ;;  %v6477_v36 = vpop.f32.mrb[31].mxu1 }
 0x21c   :  { %v1218_v23 = vpack.c.bf16 %v870_v51, %v870_v51  ;;  %v1345_v41 = vunpack.c.l.b16 %v1217_v58  ;;  %v876_v14 = vmax.f32 %v874_v63, %v875_v1  ;;  %v892_v43 = vmax.f32 %v890_v26, %v891_v13 }
 0x21d   :  { %v6479_v48 = vpack.c.bf16 %v649_v39, %v645_v11  ;;  %v882_v35 = vmax.f32 %v880_v2, %v881_v21  ;;  %v887_v54 = vrot.slane %v886_v24, 1  ;;  %v896_v55 = vmax.f32 %v6474_v5, %v895_v33 }
 0x21e   :  { %v1346_v61 = vunpack.c.l.b16 %v1218_v23  ;;  %v1412_v38 = vsel %vm1391_vm3, %v1345_v41, %v1343_v45  ;;  %v1219_v42 = vpack.c.bf16 %v876_v14, %v876_v14  ;;  %v893_v56 = vrot.slane %v892_v43, 1 }
 0x21f   :  { %8342 = vst [vmem:[#allocation20_spill] sm:$0xff] %v6479_v48  ;;  %2386 = vmatprep.mubr.bf16.mxu1 %v6479_v48  ;;  %v655_v59 = vadd.f32 %v654_v12, %v6370_v32  ;;  %v1220_v62 = vpack.c.bf16 %v882_v35, %v882_v35  ;;  %v888_v63 = vmax.f32 %v886_v24, %v887_v54  ;;  %v897_v26 = vrot.slane %v896_v55, 2 }
 0x220   :  { %v1419_v46 = vsel %vm1391_vm3, %v1346_v61, %v1344_v8  ;;  %v1347_v11 = vunpack.c.l.b16 %v1219_v42  ;;  %v894_v39 = vmax.f32 %v892_v43, %v893_v56  ;;  %v6487_v2 = vpack.c.bf16 %v647_v25, %v6456_v6  ;;  %v672_v4 = vpop.f32.mrb[32].mxu1 }
 0x221   :  { %v901_v51 = vrot.slane %v655_v59, 4  ;;  %v1348_v58 = vunpack.c.l.b16 %v1220_v62  ;;  %v1221_v45 = vpack.c.bf16 %v888_v63, %v888_v63  ;;  %v898_v1 = vmax.f32 %v896_v55, %v897_v26  ;;  %v6491_v23 = vpop.f32.mrb[33].mxu1 }
 0x222   :  { %8343 = vst [vmem:[#allocation21_spill] sm:$0xff] %v6487_v2  ;;  %v657_v13 = vadd.f32 %v6464_v16, %v6367_v31  ;;  %v1413_v12 = vsel %vm1393_vm4, %v1347_v11, %v1412_v38  ;;  %v1222_v8 = vpack.c.bf16 %v894_v39, %v894_v39  ;;  %2387 = vmatmul.mubr.bf16.gmra.mrb[84].mxu1 %v6487_v2  ;;  %v6497_v6 = vpop.f32.mrb[34].mxu1 }
 0x223   :  { %v902_v21 = vmax.f32 %v655_v59, %v901_v51  ;;  %v659_v24 = vadd.f32 %v6468_v29, %v6370_v32  ;;  %v6500_v25 = vsel %vm1393_vm4, %v1348_v58, %v1419_v46  ;;  %v1349_v33 = vunpack.c.l.b16 %v1221_v45  ;;  %v6502_v16 = vpop.f32.mrb[35].mxu1 }
 0x224   :  { %v899_v41 = vrot.slane %v898_v1, 1  ;;  %v907_v14 = vrot.slane %v657_v13, 4  ;;  %v6504_v43 = vunpack.c.l.b16 %v1222_v8  ;;  %v6507_v54 = vadd.f32 %v662_v44, %v6367_v31 }
 0x225   :  { %v903_v61 = vrot.slane %v902_v21, 2  ;;  %v913_v35 = vrot.slane %v659_v24, 4  ;;  %v1414_v55 = vsel %vm1395_vm5, %v1349_v33, %v1413_v12  ;;  %v6510_v42 = vpack.c.bf16 %v659_v24, %v655_v59 }
 0x226   :  { %v900_v29 = vmax.f32 %v898_v1, %v899_v41  ;;  %v908_v38 = vmax.f32 %v657_v13, %v907_v14  ;;  %v919_v62 = vrot.slane %v6507_v54, 4  ;;  %v665_v63 = vadd.f32 %v664_v7, %v6370_v32 }
 0x227   :  { %8344 = vst [vmem:[#allocation22_spill] sm:$0xff] %v6510_v42  ;;  %v904_v56 = vmax.f32 %v902_v21, %v903_v61  ;;  %v914_v46 = vmax.f32 %v659_v24, %v913_v35  ;;  %2396 = vmatprep.mubr.bf16.mxu1 %v6510_v42  ;;  %v6516_v39 = vpack.c.bf16 %v657_v13, %v6474_v5 }
 0x228   :  { %v1223_v26 = vpack.c.bf16 %v900_v29, %v900_v29  ;;  %v909_v11 = vrot.slane %v908_v38, 2  ;;  %v667_v44 = vadd.f32 %v666_v17, %v6367_v31  ;;  %v920_v59 = vmax.f32 %v6507_v54, %v919_v62  ;;  %v6520_v1 = vpop.f32.mrb[36].mxu1 }
 0x229   :  { %8345 = vst [vmem:[#allocation23_spill] sm:$0xff] %v6516_v39  ;;  %v905_v51 = vrot.slane %v904_v56, 1  ;;  %v915_v58 = vrot.slane %v914_v46, 2  ;;  %v925_v45 = vrot.slane %v665_v63, 4  ;;  %v669_v7 = vadd.f32 %v6477_v36, %v6370_v32  ;;  %v6524_v24 = vpop.f32.mrb[37].mxu1 }
 0x22a   :  { %v1351_v12 = vunpack.c.l.b16 %v1223_v26  ;;  %v910_v8 = vmax.f32 %v908_v38, %v909_v11  ;;  %v931_v21 = vrot.slane %v667_v44, 4  ;;  %v921_v13 = vrot.slane %v920_v59, 2  ;;  %2397 = vmatmul.mubr.bf16.gmra.mrb[88].mxu1 %v6516_v39  ;;  %v6527_v17 = vpop.f32.mrb[38].mxu1 }
 0x22b   :  { %v906_v33 = vmax.f32 %v904_v56, %v905_v51  ;;  %v916_v5 = vmax.f32 %v914_v46, %v915_v58  ;;  %v926_v41 = vmax.f32 %v665_v63, %v925_v45  ;;  %v937_v29 = vrot.slane %v669_v7, 4  ;;  %v6530_v38 = vpop.f32.mrb[39].mxu1 }
 0x22c   :  { %v1415_v14 = vsel %vm1397_vm6, %v1351_v12, %v1414_v55  ;;  %v911_v61 = vrot.slane %v910_v8, 1  ;;  %v932_v35 = vmax.f32 %v667_v44, %v931_v21  ;;  %v922_v36 = vmax.f32 %v920_v59, %v921_v13 }
 0x22d   :  { %v1224_v62 = vpack.c.bf16 %v906_v33, %v906_v33  ;;  %v917_v26 = vrot.slane %v916_v5, 1  ;;  %v927_v11 = vrot.slane %v926_v41, 2  ;;  %v938_v46 = vmax.f32 %v669_v7, %v937_v29 }
 0x22e   :  { %v912_v0 = vmax.f32 %v910_v8, %v911_v61  ;;  %v933_v56 = vrot.slane %v932_v35, 2  ;;  %v673_v51 = vadd.f32 %v672_v4, %v6367_v31  ;;  %v923_v28 = vrot.slane %v922_v36, 1 }
 0x22f   :  { %v6533_v58 = vunpack.c.l.b16 %v1224_v62  ;;  %v918_v45 = vmax.f32 %v916_v5, %v917_v26  ;;  %v928_v30 = vmax.f32 %v926_v41, %v927_v11  ;;  %v939_v21 = vrot.slane %v938_v46, 2 }
 0x230   :  { %v1225_v55 = vpack.c.bf16 %v912_v0, %v912_v0  ;;  %v934_v12 = vmax.f32 %v932_v35, %v933_v56  ;;  %v943_v27 = vrot.slane %v673_v51, 4  ;;  %v924_v42 = vmax.f32 %v922_v36, %v923_v28  ;;  %v6537_v59 = vpop.f32.mrb[40].mxu1 }
 0x231   :  { %v1226_v39 = vpack.c.bf16 %v918_v45, %v918_v45  ;;  %v929_v33 = vrot.slane %v928_v30, 1  ;;  %v6535_v2 = vpack.c.bf16 %v669_v7, %v665_v63  ;;  %v940_v61 = vmax.f32 %v938_v46, %v939_v21  ;;  %v6539_v29 = vpop.f32.mrb[41].mxu1 }
 0x232   :  { %v1353_v8 = vunpack.c.l.b16 %v1225_v55  ;;  %v935_v13 = vrot.slane %v934_v12, 1  ;;  %v944_v4 = vmax.f32 %v673_v51, %v943_v27  ;;  %v1227_v41 = vpack.c.bf16 %v924_v42, %v924_v42  ;;  %v6546_v35 = vpop.f32.mrb[42].mxu1 }
 0x233   :  { %8346 = vst [vmem:[#allocation24_spill] sm:$0xff] %v6535_v2  ;;  %v6541_v5 = vunpack.c.l.b16 %v1226_v39  ;;  %v930_v0 = vmax.f32 %v928_v30, %v929_v33  ;;  %2406 = vmatprep.mubr.bf16.mxu1 %v6535_v2  ;;  %v675_v28 = vadd.f32 %v6491_v23, %v6370_v32  ;;  %v941_v62 = vrot.slane %v940_v61, 1  ;;  %v6549_v36 = vpop.f32.mrb[43].mxu1 }
 0x234   :  { %v1416_v63 = vsel %vm1399_vm7, %v1353_v8, %v1415_v14  ;;  %v936_v7 = vmax.f32 %v934_v12, %v935_v13  ;;  %v945_v26 = vrot.slane %v944_v4, 2  ;;  %v1355_v27 = vunpack.c.l.b16 %v1227_v41 }
 0x235   :  { %v1228_v11 = vpack.c.bf16 %v930_v0, %v930_v0  ;;  %v949_v39 = vrot.slane %v675_v28, 4  ;;  %v6552_v42 = vpack.c.bf16 %v667_v44, %v6507_v54  ;;  %v6554_v56 = vmax.f32 %v940_v61, %v941_v62 }
 0x236   :  { %v1229_v30 = vpack.c.bf16 %v936_v7, %v936_v7  ;;  %v946_v46 = vmax.f32 %v944_v4, %v945_v26  ;;  %v677_v23 = vadd.f32 %v6497_v6, %v6367_v31  ;;  %v6559_v14 = vsel %vm1401_vm8, %v1355_v27, %v1416_v63 }
 0x237   :  { %8347 = vst [vmem:[#allocation25_spill] sm:$0xff] %v6552_v42  ;;  %v6561_v45 = vunpack.c.l.b16 %v1228_v11  ;;  %v950_v55 = vmax.f32 %v675_v28, %v949_v39  ;;  %2407 = vmatmul.mubr.bf16.gmra.mrb[92].mxu1 %v6552_v42  ;;  %v679_v12 = vadd.f32 %v6502_v16, %v6370_v32  ;;  %v6572_v13 = vadd.f32 %v6520_v1, %v6367_v31 }
 0x238   :  { %v6566_v54 = vunpack.c.l.b16 %v1229_v30  ;;  %v947_v21 = vrot.slane %v946_v46, 1  ;;  %v955_v33 = vrot.slane %v677_v23, 4  ;;  %v6576_v4 = vpop.f32.mrb[44].mxu1  ;;  %v685_v16 = vadd.f32 %v6524_v24, %v6370_v32 }
 0x239   :  { %v951_v8 = vrot.slane %v950_v55, 2  ;;  %v961_v6 = vrot.slane %v679_v12, 4  ;;  %v6574_v61 = vpack.c.bf16 %v679_v12, %v675_v28  ;;  %v6580_v63 = vpack.c.bf16 %v677_v23, %v673_v51  ;;  %v6582_v7 = vpop.f32.mrb[45].mxu1 }
 0x23a   :  { %v948_v41 = vmax.f32 %v946_v46, %v947_v21  ;;  %v956_v0 = vmax.f32 %v677_v23, %v955_v33  ;;  %v967_v27 = vrot.slane %v6572_v13, 4  ;;  %v6588_v1 = vadd.f32 %v6527_v17, %v6367_v31  ;;  %v6590_v28 = vpop.f32.mrb[46].mxu1 }
 0x23b   :  { %8348 = vst [vmem:[#allocation26_spill] sm:$0xff] %v6574_v61  ;;  %8349 = vst [vmem:[#allocation27_spill] sm:$0xff] %v6580_v63  ;;  %v952_v62 = vmax.f32 %v950_v55, %v951_v8  ;;  %v962_v26 = vmax.f32 %v679_v12, %v961_v6  ;;  %2416 = vmatprep.mubr.bf16.mxu1 %v6574_v61  ;;  %v973_v30 = vrot.slane %v685_v16, 4  ;;  %v6594_v51 = vpop.f32.mrb[47].mxu1 }
 0x23c   :  { %v1231_v11 = vpack.c.bf16 %v948_v41, %v948_v41  ;;  %v957_v39 = vrot.slane %v956_v0, 2  ;;  %v689_v24 = vadd.f32 %v6530_v38, %v6370_v32  ;;  %v968_v55 = vmax.f32 %v6572_v13, %v967_v27 }
 0x23d   :  { %v953_v46 = vrot.slane %v952_v62, 1  ;;  %v963_v23 = vrot.slane %v962_v26, 2  ;;  %v979_v12 = vrot.slane %v6588_v1, 4  ;;  %v974_v17 = vmax.f32 %v685_v16, %v973_v30 }
 0x23e   :  { %v1359_v21 = vunpack.c.l.b16 %v1231_v11  ;;  %v958_v33 = vmax.f32 %v956_v0, %v957_v39  ;;  %v985_v8 = vrot.slane %v689_v24, 4  ;;  %v969_v41 = vrot.slane %v968_v55, 2 }
 0x23f   :  { %v954_v6 = vmax.f32 %v952_v62, %v953_v46  ;;  %v964_v44 = vmax.f32 %v962_v26, %v963_v23  ;;  %2417 = vmatmul.mubr.bf16.gmra.mrb[96].mxu1 %v6580_v63  ;;  %v980_v61 = vmax.f32 %v6588_v1, %v979_v12  ;;  %v975_v42 = vrot.slane %v974_v17, 2 }
 0x240   :  { %v959_v38 = vrot.slane %v958_v33, 1  ;;  %v986_v2 = vmax.f32 %v689_v24, %v985_v8  ;;  %v6602_v48 = vadd.f32 %v6537_v59, %v6367_v31  ;;  %v970_v11 = vmax.f32 %v968_v55, %v969_v41  ;;  %v6604_v39 = vpop.f32.mrb[48].mxu1 }
 0x241   :  { %v1232_v27 = vpack.c.bf16 %v954_v6, %v954_v6  ;;  %v965_v15 = vrot.slane %v964_v44, 1  ;;  %v981_v0 = vrot.slane %v980_v61, 2  ;;  %v976_v26 = vmax.f32 %v974_v17, %v975_v42  ;;  %v6607_v23 = vpop.f32.mrb[49].mxu1 }
 0x242   :  { %v960_v62 = vmax.f32 %v958_v33, %v959_v38  ;;  %v987_v30 = vrot.slane %v986_v2, 2  ;;  %v991_v46 = vrot.slane %v6602_v48, 4  ;;  %v971_v8 = vrot.slane %v970_v11, 1  ;;  %v6609_v50 = vpop.f32.mrb[50].mxu1 }
 0x243   :  { %v1360_v12 = vunpack.c.l.b16 %v1232_v27  ;;  %v966_v63 = vmax.f32 %v964_v44, %v965_v15  ;;  %v982_v10 = vmax.f32 %v980_v61, %v981_v0  ;;  %v977_v6 = vrot.slane %v976_v26, 1  ;;  %v6612_v41 = vpop.f32.mrb[51].mxu1 }
 0x244   :  { %v1233_v59 = vpack.c.bf16 %v960_v62, %v960_v62  ;;  %v988_v20 = vmax.f32 %v986_v2, %v987_v30  ;;  %v992_v55 = vmax.f32 %v6602_v48, %v991_v46  ;;  %v972_v33 = vmax.f32 %v970_v11, %v971_v8 }
 0x245   :  { %v1234_v42 = vpack.c.bf16 %v966_v63, %v966_v63  ;;  %v983_v17 = vrot.slane %v982_v10, 1  ;;  %v6614_v38 = vpack.c.bf16 %v689_v24, %v685_v16  ;;  %v978_v27 = vmax.f32 %v976_v26, %v977_v6 }
 0x246   :  { %v1361_v40 = vunpack.c.l.b16 %v1233_v59  ;;  %v989_v15 = vrot.slane %v988_v20, 1  ;;  %v993_v44 = vrot.slane %v992_v55, 2  ;;  %v1235_v0 = vpack.c.bf16 %v972_v33, %v972_v33 }
 0x247   :  { %v1362_v61 = vunpack.c.l.b16 %v1234_v42  ;;  %v984_v34 = vmax.f32 %v982_v10, %v983_v17  ;;  %2426 = vmatprep.mubr.bf16.mxu1 %v6614_v38  ;;  %v695_v2 = vadd.f32 %v6539_v29, %v6370_v32  ;;  %v1236_v30 = vpack.c.bf16 %v978_v27, %v978_v27 }
 0x248   :  { %v1426_v62 = vsel %vm1391_vm3, %v1361_v40, %v1359_v21  ;;  %v990_v63 = vmax.f32 %v988_v20, %v989_v15  ;;  %v994_v11 = vmax.f32 %v992_v55, %v993_v44  ;;  %v1363_v24 = vunpack.c.l.b16 %v1235_v0  ;;  %v6621_v8 = vpop.f32.mrb[52].mxu1 }
 0x249   :  { %v1433_v16 = vsel %vm1391_vm3, %v1362_v61, %v1360_v12  ;;  %v1237_v46 = vpack.c.bf16 %v984_v34, %v984_v34  ;;  %v997_v26 = vrot.slane %v695_v2, 4  ;;  %v1364_v59 = vunpack.c.l.b16 %v1236_v30  ;;  %v6626_v29 = vpop.f32.mrb[53].mxu1 }
 0x24a   :  { %v1238_v6 = vpack.c.bf16 %v990_v63, %v990_v63  ;;  %v995_v10 = vrot.slane %v994_v11, 1  ;;  %v8350_v42 = vpack.c.bf16 %v6442_v57, %v6442_v57  ;;  %v6629_v40 = vsel %vm1393_vm4, %v1363_v24, %v1426_v62  ;;  %v6636_v55 = vpop.f32.mrb[54].mxu1 }
 0x24b   :  { %v6631_v20 = vunpack.c.l.b16 %v1237_v46  ;;  %v998_v21 = vmax.f32 %v695_v2, %v997_v26  ;;  %v8351_v34 = vpack.c.bf16 %v6554_v56, %v6554_v56  ;;  %v6639_v17 = vsel %vm1393_vm4, %v1364_v59, %v1433_v16  ;;  %v6646_v44 = vpop.f32.mrb[55].mxu1  ;;  %v5830_v26 = vld [vmem:[%s8278_s5 + $0x8] ss:$16 sps:$4 sm:$0xff]  }
 0x24c   :  { %v1342_v33 = vunpack.c.l.b16 %v8350_v42  ;;  %v6641_v27 = vunpack.c.l.b16 %v1238_v6  ;;  %v996_v57 = vmax.f32 %v994_v11, %v995_v10  ;;  %v1407_v15 = vsel %vm1395_vm5, %v6410_v19, %v6408_v18  ;;  %v5835_v10 = vld [vmem:[%s8278_s5 + $0x2c] ss:$16 sps:$4 sm:$0xff]  }
 0x24d   :  { %v1358_v12 = vunpack.c.l.b16 %v8351_v34  ;;  %v999_v61 = vrot.slane %v998_v21, 2  ;;  %v1408_v0 = vsel %vm1397_vm6, %v6428_v9, %v1407_v15  ;;  %v1421_v56 = vsel %vm1395_vm5, %v6504_v43, %v6500_v25 }
 0x24e   :  { %v6655_v62 = vpack.c.bf16 %v6588_v1, %v6572_v13  ;;  %v1239_v30 = vpack.c.bf16 %v996_v57, %v996_v57  ;;  %v1409_v63 = vsel %vm1399_vm7, %v6433_v22, %v1408_v0  ;;  %v1422_v18 = vsel %vm1397_vm6, %v6533_v58, %v1421_v56 }
 0x24f   :  { %v697_v19 = vadd.f32 %v6546_v35, %v6367_v31  ;;  %v1000_v11 = vmax.f32 %v998_v21, %v999_v61  ;;  %v1410_v9 = vsel %vm1401_vm8, %v6446_v60, %v1409_v63  ;;  %v1423_v25 = vsel %vm1399_vm7, %v6541_v5, %v1422_v18 }
 0x250   :  { %2427 = vmatmul.mubr.bf16.gmra.mrb[100].mxu1 %v6655_v62  ;;  %v1404_v43 = vsel %vm1403_vm9, %v6453_v3, %v6449_v47  ;;  %v6671_v22 = vunpack.c.l.b16 %v1239_v30  ;;  %v1411_v58 = vsel %vm1403_vm9, %v1342_v33, %v1410_v9  ;;  %v1424_v35 = vsel %vm1401_vm8, %v6561_v45, %v1423_v25  ;;  %v6682_v24 = vpop.f32.mrb[56].mxu1 }
 0x251   :  { %v1003_v13 = vrot.slane %v697_v19, 4  ;;  %v1001_v1 = vrot.slane %v1000_v11, 1  ;;  %v1425_v60 = vsel %vm1403_vm9, %v1358_v12, %v1424_v35  ;;  %v1418_v5 = vsel %vm1403_vm9, %v6566_v54, %v6559_v14  ;;  %v6695_v59 = vpop.f32.mrb[57].mxu1 }
 0x252   :  { %v699_v16 = vadd.f32 %v6549_v36, %v6370_v32  ;;  %v6684_v47 = vpack.c.b16 %v1425_v60, %v1411_v58  ;;  %v6686_v46 = vpack.c.b16 %v1418_v5, %v1404_v43  ;;  %v6690_v45 = vadd.f32 %v6576_v4, %v6367_v31  ;;  %v6704_v42 = vpop.f32.mrb[58].mxu1 }
 0x253   :  { %v1004_v3 = vmax.f32 %v697_v19, %v1003_v13  ;;  %v1002_v14 = vmax.f32 %v1000_v11, %v1001_v1  ;;  %v705_v6 = vadd.f32 %v6582_v7, %v6370_v32  ;;  %v6709_v21 = vpack.c.bf16 %v697_v19, %v6602_v48  ;;  %v6715_v34 = vpop.f32.mrb[59].mxu1  ;;  %v5838_v19 = vld [vmem:[%s8278_s5 + $0x4c] ss:$16 sps:$4 sm:$0xff]  }
 0x254   :  { %v1009_v54 = vrot.slane %v699_v16, 4  ;;  %v6697_v36 = vpack.c.bf16 %v699_v16, %v695_v2  ;;  %1814 = vmatprep.mubr.bf16.mxu0 %v6684_v47  ;;  %v1015_v33 = vrot.slane %v6690_v45, 4  ;;  %v6713_v2 = vadd.f32 %v6590_v28, %v6367_v31  ;;  %v5833_v28 = vld [vmem:[%s8278_s5 + $0x28] ss:$16 sps:$4 sm:$0xff]  }
 0x255   :  { %v1005_v4 = vrot.slane %v1004_v3, 2  ;;  %v1240_v7 = vpack.c.bf16 %v1002_v14, %v1002_v14  ;;  %1815 = vmatmul.mubr.bf16.vlgmr.msra.gmra.mrb[32].mxu0 %v6686_v46  ;;  %v1021_v57 = vrot.slane %v705_v6, 4  ;;  %v709_v15 = vadd.f32 %v6594_v51, %v6370_v32 }
 0x256   :  { %v1010_v12 = vmax.f32 %v699_v16, %v1009_v54  ;;  %2436 = vmatprep.mubr.bf16.mxu1 %v6697_v36  ;;  %v1016_v48 = vmax.f32 %v6690_v45, %v1015_v33  ;;  %v1027_v0 = vrot.slane %v6713_v2, 4  ;;  %1836 = vmatpush1.bf16.msra.mxu0 %v5830_v26  ;;  %v6728_v56 = vadd.f32 %v6604_v39, %v6367_v31  ;;  %v5836_v26 = vld [vmem:[%s8278_s5 + $0x48] ss:$16 sps:$4 sm:$0xff]   ;;  %v5841_v33 = vld [vmem:[%s8278_s5 + $0x6c] ss:$16 sps:$4 sm:$0xff]  }
 0x257   :  { %v1006_v61 = vmax.f32 %v1004_v3, %v1005_v4  ;;  %v6730_v30 = vunpack.c.l.b16 %v1240_v7  ;;  %v1022_v18 = vmax.f32 %v705_v6, %v1021_v57  ;;  %v1033_v51 = vrot.slane %v709_v15, 4  ;;  %1837 = vmatprep.subr.bf16.mxu0 %v5835_v10 }
 0x258   :  { %v1011_v63 = vrot.slane %v1010_v12, 2  ;;  %2437 = vmatmul.mubr.bf16.gmra.mrb[104].mxu1 %v6709_v21  ;;  %v1017_v9 = vrot.slane %v1016_v48, 2  ;;  %v1028_v25 = vmax.f32 %v6713_v2, %v1027_v0  ;;  %v1039_v43 = vrot.slane %v6728_v56, 4  ;;  %v6740_v1 = vpop.f32.mrb[60].mxu1 }
 0x259   :  { %v1007_v11 = vrot.slane %v1006_v61, 1  ;;  %v1023_v58 = vrot.slane %v1022_v18, 2  ;;  %v1034_v35 = vmax.f32 %v709_v15, %v1033_v51  ;;  %v6738_v13 = vpack.c.bf16 %v709_v15, %v705_v6  ;;  %v6746_v14 = vpop.f32.mrb[61].mxu1 }
 0x25a   :  { %v1012_v39 = vmax.f32 %v1010_v12, %v1011_v63  ;;  %v1018_v5 = vmax.f32 %v1016_v48, %v1017_v9  ;;  %v1029_v16 = vrot.slane %v1028_v25, 2  ;;  %1838 = vmatpush1.bf16.msra.mxu0 %v5833_v28  ;;  %v1040_v3 = vmax.f32 %v6728_v56, %v1039_v43  ;;  %v6754_v7 = vpop.f32.mrb[62].mxu1  ;;  %v5839_v9 = vld [vmem:[%s8278_s5 + $0x68] ss:$16 sps:$4 sm:$0xff]  }
 0x25b   :  { %8352 = vst [vmem:[#allocation28_spill] sm:$0xff] %v6738_v13  ;;  %v1008_v60 = vmax.f32 %v1006_v61, %v1007_v11  ;;  %v1024_v10 = vmax.f32 %v1022_v18, %v1023_v58  ;;  %v1035_v4 = vrot.slane %v1034_v35, 2  ;;  %2446 = vmatprep.mubr.bf16.mxu1 %v6738_v13  ;;  %v715_v6 = vadd.f32 %v6607_v23, %v6370_v32  ;;  %v6756_v48 = vpop.f32.mrb[63].mxu1 }
 0x25c   :  { %v1013_v54 = vrot.slane %v1012_v39, 1  ;;  %1839 = vmatprep.subr.bf16.mxu0 %v5838_v19  ;;  %v1019_v57 = vrot.slane %v1018_v5, 1  ;;  %v1030_v15 = vmax.f32 %v1028_v25, %v1029_v16  ;;  %v1041_v61 = vrot.slane %v1040_v3, 2 }
 0x25d   :  { %v1241_v12 = vpack.c.bf16 %v1008_v60, %v1008_v60  ;;  %v1025_v28 = vrot.slane %v1024_v10, 1  ;;  %v1036_v63 = vmax.f32 %v1034_v35, %v1035_v4  ;;  %v1045_v18 = vrot.slane %v715_v6, 4 }
 0x25e   :  { %v1014_v0 = vmax.f32 %v1012_v39, %v1013_v54  ;;  %v1020_v23 = vmax.f32 %v1018_v5, %v1019_v57  ;;  %v1031_v19 = vrot.slane %v1030_v15, 1  ;;  %v1042_v11 = vmax.f32 %v1040_v3, %v1041_v61  ;;  %1840 = vmatpush1.bf16.msra.mxu0 %v5836_v26  ;;  %v5844_v39 = vld [vmem:[%s8278_s5 + $0x8c] ss:$16 sps:$4 sm:$0xff]  }
 0x25f   :  { %v6758_v51 = vunpack.c.l.b16 %v1241_v12  ;;  %v1026_v58 = vmax.f32 %v1024_v10, %v1025_v28  ;;  %v1037_v25 = vrot.slane %v1036_v63, 1  ;;  %v1046_v60 = vmax.f32 %v715_v6, %v1045_v18  ;;  %1841 = vmatprep.subr.bf16.mxu0 %v5841_v33 }
 0x260   :  { %v1242_v43 = vpack.c.bf16 %v1014_v0, %v1014_v0  ;;  %v1243_v35 = vpack.c.bf16 %v1020_v23, %v1020_v23  ;;  %v6766_v16 = vmax.f32 %v1030_v15, %v1031_v19  ;;  %v1043_v5 = vrot.slane %v1042_v11, 1  ;;  %v5847_v19 = vld [vmem:[%s8278_s5 + $0xac] ss:$16 sps:$4 sm:$0xff]  }
 0x261   :  { %v6770_v3 = vpack.c.bf16 %v6713_v2, %v6690_v45  ;;  %v1244_v54 = vpack.c.bf16 %v1026_v58, %v1026_v58  ;;  %v6774_v4 = vmax.f32 %v1036_v63, %v1037_v25  ;;  %v1047_v10 = vrot.slane %v1046_v60, 2  ;;  %v5842_v45 = vld [vmem:[%s8278_s5 + $0x88] ss:$16 sps:$4 sm:$0xff]  }
 0x262   :  { %v6772_v26 = vunpack.c.l.b16 %v1242_v43  ;;  %v6776_v12 = vunpack.c.l.b16 %v1243_v35  ;;  %v1044_v57 = vmax.f32 %v1042_v11, %v1043_v5  ;;  %v717_v15 = vadd.f32 %v6609_v50, %v6367_v31  ;;  %1842 = vmatpush1.bf16.msra.mxu0 %v5839_v9  ;;  %v5850_v5 = vld [vmem:[%s8278_s5 + $0xcc] ss:$16 sps:$4 sm:$0xff]  }
 0x263   :  { %8353 = vst [vmem:[#allocation29_spill] sm:$0xff] %v6770_v3  ;;  %2447 = vmatmul.mubr.bf16.gmra.mrb[108].mxu1 %v6770_v3  ;;  %v6786_v2 = vunpack.c.l.b16 %v1244_v54  ;;  %v1048_v0 = vmax.f32 %v1046_v60, %v1047_v10  ;;  %v719_v28 = vadd.f32 %v6612_v41, %v6370_v32  ;;  %1843 = vmatprep.subr.bf16.mxu0 %v5844_v39 }
 0x264   :  { %v1247_v63 = vpack.c.bf16 %v1044_v57, %v1044_v57  ;;  %v1051_v18 = vrot.slane %v717_v15, 4  ;;  %v6794_v50 = vadd.f32 %v6621_v8, %v6367_v31  ;;  %v725_v23 = vadd.f32 %v6626_v29, %v6370_v32  ;;  %v5845_v29 = vld [vmem:[%s8278_s5 + $0xa8] ss:$16 sps:$4 sm:$0xff]  }
 0x265   :  { %v1049_v11 = vrot.slane %v1048_v0, 1  ;;  %v1057_v9 = vrot.slane %v719_v28, 4  ;;  %v6801_v43 = vpack.c.bf16 %v719_v28, %v715_v6  ;;  %v6804_v41 = vpack.c.bf16 %v717_v15, %v6728_v56 }
 0x266   :  { %v6806_v58 = vunpack.c.l.b16 %v1247_v63  ;;  %v1052_v25 = vmax.f32 %v717_v15, %v1051_v18  ;;  %v1063_v8 = vrot.slane %v6794_v50, 4  ;;  %v1069_v60 = vrot.slane %v725_v23, 4  ;;  %1844 = vmatpush1.bf16.msra.mxu0 %v5842_v45 }
 0x267   :  { %8354 = vst [vmem:[#allocation30_spill] sm:$0xff] %v6801_v43  ;;  %8355 = vst [vmem:[#allocation31_spill] sm:$0xff] %v6804_v41  ;;  %v1050_v39 = vmax.f32 %v1048_v0, %v1049_v11  ;;  %v1058_v35 = vmax.f32 %v719_v28, %v1057_v9  ;;  %2456 = vmatprep.mubr.bf16.mxu1 %v6801_v43  ;;  %v6815_v6 = vadd.f32 %v6636_v55, %v6367_v31 }
 0x268   :  { %v729_v56 = vadd.f32 %v6646_v44, %v6370_v32  ;;  %v1053_v54 = vrot.slane %v1052_v25, 2  ;;  %v1064_v10 = vmax.f32 %v6794_v50, %v1063_v8  ;;  %v1070_v57 = vmax.f32 %v725_v23, %v1069_v60  ;;  %1845 = vmatprep.subr.bf16.mxu0 %v5847_v19  ;;  %v5848_v19 = vld [vmem:[%s8278_s5 + $0xc8] ss:$16 sps:$4 sm:$0xff]  }
 0x269   :  { %v6825_v15 = vadd.f32 %v6682_v24, %v6367_v31  ;;  %v1248_v45 = vpack.c.bf16 %v1050_v39, %v1050_v39  ;;  %v1059_v0 = vrot.slane %v1058_v35, 2  ;;  %v1075_v55 = vrot.slane %v6815_v6, 4 }
 0x26a   :  { %v1081_v28 = vrot.slane %v729_v56, 4  ;;  %v1054_v63 = vmax.f32 %v1052_v25, %v1053_v54  ;;  %v1065_v44 = vrot.slane %v1064_v10, 2  ;;  %v1071_v18 = vrot.slane %v1070_v57, 2  ;;  %1846 = vmatpush1.bf16.msra.mxu0 %v5845_v29  ;;  %v5853_v29 = vld [vmem:[%s8278_s5 + $0xec] ss:$16 sps:$4 sm:$0xff]  }
 0x26b   :  { %2457 = vmatmul.mubr.bf16.gmra.mrb[112].mxu1 %v6804_v41  ;;  %v1087_v11 = vrot.slane %v6825_v15, 4  ;;  %v1376_v9 = vunpack.c.l.b16 %v1248_v45  ;;  %v1060_v24 = vmax.f32 %v1058_v35, %v1059_v0  ;;  %v1076_v8 = vmax.f32 %v6815_v6, %v1075_v55  ;;  %1847 = vmatprep.subr.bf16.mxu0 %v5850_v5  ;;  %v5851_v5 = vld [vmem:[%s8278_s5 + $0xe8] ss:$16 sps:$4 sm:$0xff]  }
 0x26c   :  { %v1082_v60 = vmax.f32 %v729_v56, %v1081_v28  ;;  %v1055_v39 = vrot.slane %v1054_v63, 1  ;;  %v1066_v33 = vmax.f32 %v1064_v10, %v1065_v44  ;;  %v1072_v25 = vmax.f32 %v1070_v57, %v1071_v18 }
 0x26d   :  { %v1088_v54 = vmax.f32 %v6825_v15, %v1087_v11  ;;  %v1061_v61 = vrot.slane %v1060_v24, 1  ;;  %v1077_v41 = vrot.slane %v1076_v8, 2  ;;  %v6838_v3 = vpack.c.bf16 %v729_v56, %v725_v23  ;;  %v5856_v23 = vld [vmem:[%s8278_s5 + $0x10c] ss:$16 sps:$4 sm:$0xff]  }
 0x26e   :  { %v1083_v43 = vrot.slane %v1082_v60, 2  ;;  %v1056_v45 = vmax.f32 %v1054_v63, %v1055_v39  ;;  %v1067_v35 = vrot.slane %v1066_v33, 1  ;;  %v1073_v0 = vrot.slane %v1072_v25, 1  ;;  %1848 = vmatpush1.bf16.msra.mxu0 %v5848_v19 }
 0x26f   :  { %8356 = vst [vmem:[#allocation32_spill] sm:$0xff] %v6838_v3  ;;  %v1089_v55 = vrot.slane %v1088_v54, 2  ;;  %v1062_v10 = vmax.f32 %v1060_v24, %v1061_v61  ;;  %v1078_v57 = vmax.f32 %v1076_v8, %v1077_v41  ;;  %2466 = vmatprep.mubr.bf16.mxu1 %v6838_v3  ;;  %v735_v44 = vadd.f32 %v6695_v59, %v6370_v32  ;;  %v5854_v59 = vld [vmem:[%s8278_s5 + $0x108] ss:$16 sps:$4 sm:$0xff]  }
 0x270   :  { %v1084_v28 = vmax.f32 %v1082_v60, %v1083_v43  ;;  %v1249_v56 = vpack.c.bf16 %v1056_v45, %v1056_v45  ;;  %v1068_v63 = vmax.f32 %v1066_v33, %v1067_v35  ;;  %v1074_v18 = vmax.f32 %v1072_v25, %v1073_v0  ;;  %1849 = vmatprep.subr.bf16.mxu0 %v5853_v29  ;;  %v5859_v25 = vld [vmem:[%s8278_s5 + $0x12c] ss:$16 sps:$4 sm:$0xff]  }
 0x271   :  { %v1090_v11 = vmax.f32 %v1088_v54, %v1089_v55  ;;  %v1250_v19 = vpack.c.bf16 %v1062_v10, %v1062_v10  ;;  %v1079_v39 = vrot.slane %v1078_v57, 1  ;;  %v1093_v61 = vrot.slane %v735_v44, 4 }
 0x272   :  { %v1085_v13 = vrot.slane %v1084_v28, 1  ;;  %v1377_v41 = vunpack.c.l.b16 %v1249_v56  ;;  %v1251_v43 = vpack.c.bf16 %v1068_v63, %v1068_v63  ;;  %v1252_v24 = vpack.c.bf16 %v1074_v18, %v1074_v18  ;;  %1850 = vmatpush1.bf16.msra.mxu0 %v5851_v5 }
 0x273   :  { %v1091_v8 = vrot.slane %v1090_v11, 1  ;;  %v1378_v60 = vunpack.c.l.b16 %v1250_v19  ;;  %v1080_v3 = vmax.f32 %v1078_v57, %v1079_v39  ;;  %v1094_v33 = vmax.f32 %v735_v44, %v1093_v61  ;;  %1851 = vmatprep.subr.bf16.mxu0 %v5856_v23 }
 0x274   :  { %v1086_v45 = vmax.f32 %v1084_v28, %v1085_v13  ;;  %v1440_v54 = vsel %vm1391_vm3, %v1377_v41, %v6806_v58  ;;  %v1379_v29 = vunpack.c.l.b16 %v1251_v43  ;;  %v1380_v35 = vunpack.c.l.b16 %v1252_v24  ;;  %v5857_v58 = vld [vmem:[%s8278_s5 + $0x128] ss:$16 sps:$4 sm:$0xff]  }
 0x275   :  { %v1092_v0 = vmax.f32 %v1090_v11, %v1091_v8  ;;  %v1447_v55 = vsel %vm1391_vm3, %v1378_v60, %v1376_v9  ;;  %v1253_v5 = vpack.c.bf16 %v1080_v3, %v1080_v3  ;;  %v1095_v56 = vrot.slane %v1094_v33, 2  ;;  %v5862_v11 = vld [vmem:[%s8278_s5 + $0x14c] ss:$16 sps:$4 sm:$0xff]  }
 0x276   :  { %v1254_v10 = vpack.c.bf16 %v1086_v45, %v1086_v45  ;;  %v6859_v57 = vsel %vm1393_vm4, %v1379_v29, %v1440_v54  ;;  %v6862_v13 = vsel %vm1393_vm4, %v1380_v35, %v1447_v55  ;;  %v6866_v23 = vpack.c.bf16 %v6815_v6, %v6794_v50  ;;  %1852 = vmatpush1.bf16.msra.mxu0 %v5854_v59 }
 0x277   :  { %v1255_v28 = vpack.c.bf16 %v1092_v0, %v1092_v0  ;;  %v6871_v9 = vunpack.c.l.b16 %v1253_v5  ;;  %v1096_v63 = vmax.f32 %v1094_v33, %v1095_v56  ;;  %v737_v18 = vadd.f32 %v6704_v42, %v6367_v31  ;;  %1853 = vmatprep.subr.bf16.mxu0 %v5859_v25 }
 0x278   :  { %v6873_v3 = vunpack.c.l.b16 %v1254_v10  ;;  %2467 = vmatmul.mubr.bf16.gmra.mrb[116].mxu1 %v6866_v23  ;;  %v739_v6 = vadd.f32 %v6715_v34, %v6370_v32  ;;  %v743_v19 = vadd.f32 %v6740_v1, %v6367_v31  ;;  %v745_v39 = vadd.f32 %v6746_v14, %v6370_v32  ;;  %v5860_v34 = vld [vmem:[%s8278_s5 + $0x148] ss:$16 sps:$4 sm:$0xff]  }
 0x279   :  { %v6880_v50 = vunpack.c.l.b16 %v1255_v28  ;;  %v1097_v61 = vrot.slane %v1096_v63, 1  ;;  %v1099_v42 = vrot.slane %v737_v18, 4  ;;  %v6890_v41 = vpack.c.bf16 %v737_v18, %v6825_v15 }
 0x27a   :  { %v747_v43 = vadd.f32 %v6754_v7, %v6367_v31  ;;  %v1105_v24 = vrot.slane %v739_v6, 4  ;;  %v1111_v8 = vrot.slane %v743_v19, 4  ;;  %v6894_v59 = vpack.c.bf16 %v739_v6, %v735_v44  ;;  %1854 = vmatpush1.bf16.msra.mxu0 %v5857_v58  ;;  %v5865_v31 = vld [vmem:[%s8278_s5 + $0x16c] ss:$16 sps:$4 sm:$0xff]  }
 0x27b   :  { %v1117_v60 = vrot.slane %v745_v39, 4  ;;  %v1098_v1 = vmax.f32 %v1096_v63, %v1097_v61  ;;  %v1100_v14 = vmax.f32 %v737_v18, %v1099_v42  ;;  %v749_v15 = vadd.f32 %v6756_v48, %v6370_v32  ;;  %1855 = vmatprep.subr.bf16.mxu0 %v5862_v11  ;;  %v5863_v48 = vld [vmem:[%s8278_s5 + $0x168] ss:$16 sps:$4 sm:$0xff]   ;;  %v5868_v18 = vld [vmem:[%s8278_s5 + $0x18c] ss:$16 sps:$4 sm:$0xff]  }
 0x27c   :  { %v1123_v45 = vrot.slane %v747_v43, 4  ;;  %v1106_v7 = vmax.f32 %v739_v6, %v1105_v24  ;;  %v1112_v44 = vmax.f32 %v743_v19, %v1111_v8  ;;  %2476 = vmatprep.mubr.bf16.mxu1 %v6894_v59  ;;  %v6905_v25 = vpack.c.bf16 %v747_v43, %v743_v19 }
 0x27d   :  { %v1118_v33 = vmax.f32 %v745_v39, %v1117_v60  ;;  %v1256_v54 = vpack.c.bf16 %v1098_v1, %v1098_v1  ;;  %v1101_v29 = vrot.slane %v1100_v14, 2  ;;  %v1129_v0 = vrot.slane %v749_v15, 4 }
 0x27e   :  { %v1124_v35 = vmax.f32 %v747_v43, %v1123_v45  ;;  %v1107_v55 = vrot.slane %v1106_v7, 2  ;;  %v1113_v5 = vrot.slane %v1112_v44, 2  ;;  %v6907_v32 = vpack.c.bf16 %v749_v15, %v745_v39  ;;  %1856 = vmatpush1.bf16.msra.mxu0 %v5860_v34 }
 0x27f   :  { %v1119_v10 = vrot.slane %v1118_v33, 2  ;;  %v1384_v56 = vunpack.c.l.b16 %v1256_v54  ;;  %v1102_v28 = vmax.f32 %v1100_v14, %v1101_v29  ;;  %v1130_v63 = vmax.f32 %v749_v15, %v1129_v0  ;;  %1857 = vmatprep.subr.bf16.mxu0 %v5865_v31  ;;  %v5866_v14 = vld [vmem:[%s8278_s5 + $0x188] ss:$16 sps:$4 sm:$0xff]  }
 0x280   :  { %v1125_v58 = vrot.slane %v1124_v35, 2  ;;  %v1108_v11 = vmax.f32 %v1106_v7, %v1107_v55  ;;  %v1114_v6 = vmax.f32 %v1112_v44, %v1113_v5  ;;  %2477 = vmatmul.mubr.bf16.gmra.mrb[120].mxu1 %v6890_v41  ;;  %v8357_v39 = vpack.c.bf16 %v6774_v4, %v6774_v4  ;;  %v5871_v7 = vld [vmem:[%s8278_s5 + $0x1ac] ss:$16 sps:$4 sm:$0xff]  }
 0x281   :  { %v1120_v19 = vmax.f32 %v1118_v33, %v1119_v10  ;;  %v1103_v42 = vrot.slane %v1102_v28, 1  ;;  %v1131_v24 = vrot.slane %v1130_v63, 2  ;;  %2486 = vmatprep.mubr.bf16.mxu1 %v6907_v32  ;;  %v1435_v8 = vsel %vm1395_vm5, %v6641_v27, %v6639_v17 }
 0x282   :  { %v1374_v61 = vunpack.c.l.b16 %v8357_v39  ;;  %v1126_v43 = vmax.f32 %v1124_v35, %v1125_v58  ;;  %v1109_v60 = vrot.slane %v1108_v11, 1  ;;  %v1115_v34 = vrot.slane %v1114_v6, 1  ;;  %1858 = vmatpush1.bf16.msra.mxu0 %v5863_v48  ;;  %v5869_v48 = vld [vmem:[%s8278_s5 + $0x1a8] ss:$16 sps:$4 sm:$0xff]  }
 0x283   :  { %v1121_v1 = vrot.slane %v1120_v19, 1  ;;  %v1436_v4 = vsel %vm1397_vm6, %v6730_v30, %v1435_v8  ;;  %v1104_v45 = vmax.f32 %v1102_v28, %v1103_v42  ;;  %v1132_v31 = vmax.f32 %v1130_v63, %v1131_v24  ;;  %1859 = vmatprep.subr.bf16.mxu0 %v5868_v18  ;;  %v5874_v18 = vld [vmem:[%s8278_s5 + $0x1cc] ss:$16 sps:$4 sm:$0xff]   ;;  %v5872_v24 = vld [vmem:[%s8278_s5 + $0x1c8] ss:$16 sps:$4 sm:$0xff]  }
 0x284   :  { %v1127_v15 = vrot.slane %v1126_v43, 1  ;;  %v1437_v17 = vsel %vm1399_vm7, %v6772_v26, %v1436_v4  ;;  %v1110_v27 = vmax.f32 %v1108_v11, %v1109_v60  ;;  %v1116_v44 = vmax.f32 %v1114_v6, %v1115_v34 }
 0x285   :  { %v1122_v33 = vmax.f32 %v1120_v19, %v1121_v1  ;;  %v1438_v54 = vsel %vm1401_vm8, %v6786_v2, %v1437_v17  ;;  %v1257_v29 = vpack.c.bf16 %v1104_v45, %v1104_v45  ;;  %v1133_v30 = vrot.slane %v1132_v31, 1  ;;  %v5886_v17 = vld [vmem:[#allocation5 + $0x4c] ss:$16 sps:$4 sm:$0xff]  }
 0x286   :  { %v1128_v35 = vmax.f32 %v1126_v43, %v1127_v15  ;;  %v1439_v0 = vsel %vm1403_vm9, %v1374_v61, %v1438_v54  ;;  %v1258_v55 = vpack.c.bf16 %v1110_v27, %v1110_v27  ;;  %v1259_v5 = vpack.c.bf16 %v1116_v44, %v1116_v44  ;;  %1860 = vmatpush1.bf16.msra.mxu0 %v5866_v14  ;;  %v5880_v15 = vld [vmem:[#allocation5 + $0xc] ss:$16 sps:$4 sm:$0xff]   ;;  %v5884_v27 = vld [vmem:[#allocation5 + $0x48] ss:$16 sps:$4 sm:$0xff]  }
 0x287   :  { %v1260_v10 = vpack.c.bf16 %v1122_v33, %v1122_v33  ;;  %v1449_v26 = vsel %vm1395_vm5, %v6873_v3, %v6862_v13  ;;  %v1385_v28 = vunpack.c.l.b16 %v1257_v29  ;;  %v1134_v2 = vmax.f32 %v1132_v31, %v1133_v30  ;;  %1861 = vmatprep.subr.bf16.mxu0 %v5871_v7  ;;  %v5883_v31 = vld [vmem:[#allocation5 + $0x2c] ss:$16 sps:$4 sm:$0xff]   ;;  %v5881_v7 = vld [vmem:[#allocation5 + $0x28] ss:$16 sps:$4 sm:$0xff]  }
 0x288   :  { %v1261_v58 = vpack.c.bf16 %v1128_v35, %v1128_v35  ;;  %v1450_v63 = vsel %vm1397_vm6, %v1384_v56, %v1449_v26  ;;  %v1386_v11 = vunpack.c.l.b16 %v1258_v55  ;;  %v1387_v6 = vunpack.c.l.b16 %v1259_v5  ;;  %2487 = vmatmul.mubr.bf16.gmra.mrb[124].mxu1 %v6905_v25  ;;  %v5889_v44 = vld [vmem:[#allocation5 + $0x6c] ss:$16 sps:$4 sm:$0xff]   ;;  %v5890_v54 = vld [vmem:[#allocation5 + $0x88] ss:$16 sps:$4 sm:$0xff]  }
 0x289   :  { %v1388_v19 = vunpack.c.l.b16 %v1260_v10  ;;  %v8358_v39 = vpack.c.bf16 %v6766_v16, %v6766_v16  ;;  %v1262_v13 = vpack.c.bf16 %v1134_v2, %v1134_v2  ;;  %v1428_v42 = vsel %vm1395_vm5, %v6631_v20, %v6629_v40  ;;  %v5892_v33 = vld [vmem:[#allocation5 + $0x8c] ss:$16 sps:$4 sm:$0xff]   ;;  %v5893_v29 = vld [vmem:[#allocation5 + $0xa8] ss:$16 sps:$4 sm:$0xff]  }
 0x28a   :  { %v1389_v3 = vunpack.c.l.b16 %v1261_v58  ;;  %v1442_v56 = vsel %vm1395_vm5, %v6871_v9, %v6859_v57  ;;  %1862 = vmatpush1.bf16.msra.mxu0 %v5869_v48  ;;  %v1451_v43 = vsel %vm1399_vm7, %v1386_v11, %v1450_v63  ;;  %v1429_v16 = vsel %vm1397_vm6, %v6671_v22, %v1428_v42  ;;  %v5877_v9 = vld [vmem:[%s8278_s5 + $0x1ec] ss:$16 sps:$4 sm:$0xff]   ;;  %v5896_v30 = vld [vmem:[#allocation5 + $0xc8] ss:$16 sps:$4 sm:$0xff]  }
 0x28b   :  { %v1373_v61 = vunpack.c.l.b16 %v8358_v39  ;;  %v1443_v8 = vsel %vm1397_vm6, %v6880_v50, %v1442_v56  ;;  %v1390_v60 = vunpack.c.l.b16 %v1262_v13  ;;  %v1452_v40 = vsel %vm1401_vm8, %v1388_v19, %v1451_v43  ;;  %1863 = vmatprep.subr.bf16.mxu0 %v5874_v18  ;;  %v5898_v35 = vld [vmem:[#allocation5 + $0xcc] ss:$16 sps:$4 sm:$0xff]   ;;  %v5899_v5 = vld [vmem:[#allocation5 + $0xe8] ss:$16 sps:$4 sm:$0xff]  }
 0x28c   :  { %v1430_v20 = vsel %vm1399_vm7, %v6758_v51, %v1429_v16  ;;  %v1444_v57 = vsel %vm1399_vm7, %v1385_v28, %v1443_v8  ;;  %v5875_v51 = vld [vmem:[%s8278_s5 + $0x1e8] ss:$16 sps:$4 sm:$0xff]   ;;  %v5901_v55 = vld [vmem:[#allocation5 + $0xec] ss:$16 sps:$4 sm:$0xff]  }
 0x28d   :  { %v1431_v34 = vsel %vm1401_vm8, %v6776_v12, %v1430_v20  ;;  %v1445_v22 = vsel %vm1401_vm8, %v1387_v6, %v1444_v57  ;;  %v1453_v50 = vsel %vm1403_vm9, %v1390_v60, %v1452_v40  ;;  %v5878_v12 = vld [vmem:[#allocation5 + $0x8] ss:$16 sps:$4 sm:$0xff]   ;;  %v5904_v10 = vld [vmem:[#allocation5 + $0x10c] ss:$16 sps:$4 sm:$0xff]   ;;  %v5932_v40 = vld [vmem:[%s8281_s8 + $0x50] sm:$0xff]  }
 0x28e   :  { %v1432_v1 = vsel %vm1403_vm9, %v1373_v61, %v1431_v34  ;;  %v1446_v14 = vsel %vm1403_vm9, %v1389_v3, %v1445_v22  ;;  %v1457_v4 = vpack.c.b16 %v1453_v50, %v1439_v0  ;;  %1864 = vmatpush1.bf16.msra.mxu0 %v5872_v24  ;;  %v5926_v0 = vld [vmem:[%s8281_s8 + $0x40] sm:$0xff]   ;;  %v5902_v48 = vld [vmem:[#allocation5 + $0x108] ss:$16 sps:$4 sm:$0xff]   ;;  %v5907_v26 = vld [vmem:[#allocation5 + $0x12c] ss:$16 sps:$4 sm:$0xff]  }
 0x28f   :  { %v1456_v45 = vpack.c.b16 %v1446_v14, %v1432_v1  ;;  %1865 = vmatprep.subr.bf16.mxu0 %v5877_v9  ;;  %5408 = vmatprep.subr.bf16.mxu1 %v5926_v0  ;;  %v5928_v28 = vld [vmem:[%s8281_s8 + $0x48] sm:$0xff]   ;;  %v5933_v20 = vld [vmem:[%s8281_s8 + $0x10] sm:$0xff]   ;;  %v7020_v50 = vld [vmem:[%s8281_s8 + $0xc0] sm:$0xff]  }
 0x290   :  { %1824 = vmatprep.mubr.bf16.mxu0 %v1457_v4  ;;  %v5929_v58 = vld [vmem:[%s8281_s8 + $0x8] sm:$0xff]  }
 0x291   :  { %1825 = vmatmul.mubr.bf16.gmra.mrb[36].mxu0 %v1456_v45  ;;  %v5905_v2 = vld [vmem:[#allocation5 + $0x128] ss:$16 sps:$4 sm:$0xff]   ;;  %v5910_v63 = vld [vmem:[#allocation5 + $0x14c] ss:$16 sps:$4 sm:$0xff]  }
 0x292   :  { %1867 = vmatprep.mubr.bf16.mxu0 %v6684_v47  ;;  %1866 = vmatpush1.bf16.msra.mxu0 %v5875_v51  ;;  %v5887_v47 = vld [vmem:[#allocation5 + $0x68] ss:$16 sps:$4 sm:$0xff]   ;;  %v5913_v19 = vld [vmem:[#allocation5 + $0x16c] ss:$16 sps:$4 sm:$0xff]  }
 0x293   :  { %2497 = vmatprep.subr.bf16.mxu0 %v5880_v15  ;;  %v5908_v11 = vld [vmem:[#allocation5 + $0x148] ss:$16 sps:$4 sm:$0xff]   ;;  %v5916_v3 = vld [vmem:[#allocation5 + $0x18c] ss:$16 sps:$4 sm:$0xff]  }
 0x294   :  { %v5911_v13 = vld [vmem:[#allocation5 + $0x168] ss:$16 sps:$4 sm:$0xff]   ;;  %v5919_v56 = vld [vmem:[#allocation5 + $0x1ac] ss:$16 sps:$4 sm:$0xff]  }
 0x295   :  { %v5914_v42 = vld [vmem:[#allocation5 + $0x188] ss:$16 sps:$4 sm:$0xff]   ;;  %v5922_v24 = vld [vmem:[#allocation5 + $0x1cc] ss:$16 sps:$4 sm:$0xff]  }
 0x296   :  { %v5917_v43 = vld [vmem:[#allocation5 + $0x1a8] ss:$16 sps:$4 sm:$0xff]   ;;  %v5925_v57 = vld [vmem:[#allocation5 + $0x1ec] ss:$16 sps:$4 sm:$0xff]  }
 0x297   :  { %v5920_v8 = vld [vmem:[#allocation5 + $0x1c8] ss:$16 sps:$4 sm:$0xff]  }
 0x298   :  { %v5923_v22 = vld [vmem:[#allocation5 + $0x1e8] ss:$16 sps:$4 sm:$0xff]  }
 0x299   :  { %1868 = vmatmul.mubr.bf16.vlgmr.msra.gmra.mrb[40].mxu0 %v6686_v46  ;;  %v5895_v46 = vld [vmem:[#allocation5 + $0xac] ss:$16 sps:$4 sm:$0xff]  }
 0x29a   :  { %2498 = vmatpush1.bf16.msra.mxu0 %v5878_v12  ;;  %1877 = vmatprep.mubr.bf16.mxu0 %v1457_v4  ;;  %v7029_v4 = vld [vmem:[%s8281_s8 + $0x80] sm:$0xff]   ;;  %v7042_v15 = vld [vmem:[%s8281_s8 + $0xc8] sm:$0xff]  }
 0x29b   :  { %2499 = vmatprep.subr.bf16.mxu0 %v5883_v31  ;;  %v7047_v12 = vld [vmem:[%s8281_s8 + $0x88] sm:$0xff]   ;;  %v7060_v31 = vld [vmem:[%s8281_s8 + $0xd0] sm:$0xff]  }
 0x29e   :  { %2500 = vmatpush1.bf16.msra.mxu0 %v5881_v7 }
 0x29f   :  { %2501 = vmatprep.subr.bf16.mxu0 %v5886_v17  ;;  %v8359_v17 = vld [vmem:[#allocation14_spill] sm:$0xff] }
 0x2a1   :  { %1878 = vmatmul.mubr.bf16.gmra.mrb[44].mxu0 %v1456_v45 }
 0x2a2   :  { %2502 = vmatpush1.bf16.msra.mxu0 %v5884_v27  ;;  %2529 = vmatprep.mubr.bf16.mxu0 %v6381_v52  ;;  %v5927_v52 = vld [vmem:[%s8281_s8] sm:$0xff]  }
 0x2a3   :  { %2503 = vmatprep.subr.bf16.mxu0 %v5889_v44  ;;  %5409 = vmatpush3.bf16.msra.mxu1 %v5927_v52 }
 0x2a4   :  { %5410 = vmatprep.subr.bf16.mxu1 %v5928_v28  ;;  %v7109_v28 = vld [vmem:[%s8281_s8 + $0x98] sm:$0xff]  }
 0x2a6   :  { %2504 = vmatpush1.bf16.msra.mxu0 %v5887_v47 }
 0x2a7   :  { %2505 = vmatprep.subr.bf16.mxu0 %v5892_v33  ;;  %5411 = vmatpush3.bf16.msra.mxu1 %v5929_v58  ;;  %v7076_v33 = vld [vmem:[%s8281_s8 + $0x90] sm:$0xff]  }
 0x2a8   :  { %5412 = vmatprep.subr.bf16.mxu1 %v5932_v40  ;;  %v8370_v40 = vld [vmem:[#allocation21_spill] sm:$0xff] }
 0x2aa   :  { %2506 = vmatpush1.bf16.msra.mxu0 %v5890_v54  ;;  %v8360_v54 = vld [vmem:[#allocation15_spill] sm:$0xff] }
 0x2ab   :  { %2507 = vmatprep.subr.bf16.mxu0 %v5895_v46  ;;  %5413 = vmatpush3.bf16.msra.mxu1 %v5933_v20  ;;  %v8361_v46 = vld [vmem:[#allocation16_spill] sm:$0xff] }
 0x2ae   :  { %2508 = vmatpush1.bf16.msra.mxu0 %v5893_v29 }
 0x2af   :  { %2509 = vmatprep.subr.bf16.mxu0 %v5898_v35  ;;  %v5940_v35 = vld [vmem:[%s8281_s8 + $0x60] sm:$0xff]  }
 0x2b2   :  { %2510 = vmatpush1.bf16.msra.mxu0 %v5896_v30  ;;  %v5941_v30 = vld [vmem:[%s8281_s8 + $0x20] sm:$0xff]  }
 0x2b3   :  { %2511 = vmatprep.subr.bf16.mxu0 %v5901_v55  ;;  %v8362_v55 = vld [vmem:[#allocation17_spill] sm:$0xff] }
 0x2b6   :  { %2512 = vmatpush1.bf16.msra.mxu0 %v5899_v5  ;;  %v8363_v5 = vld [vmem:[#allocation18_spill] sm:$0xff] }
 0x2b7   :  { %2513 = vmatprep.subr.bf16.mxu0 %v5904_v10 }
 0x2ba   :  { %2514 = vmatpush1.bf16.msra.mxu0 %v5902_v48 }
 0x2bb   :  { %2515 = vmatprep.subr.bf16.mxu0 %v5907_v26  ;;  %v7104_v26 = vld [vmem:[%s8281_s8 + $0xd8] sm:$0xff]  }
 0x2bc   :  { %v6995_v18 = vpop.f32.mrb[64].mxu1 }
 0x2bd   :  { %v6997_v6 = vpop.f32.mrb[65].mxu1 }
 0x2be   :  { %2516 = vmatpush1.bf16.msra.mxu0 %v5905_v2  ;;  %v6999_v39 = vpop.f32.mrb[66].mxu1  ;;  %v8366_v2 = vld [vmem:[#allocation19_spill] sm:$0xff] }
 0x2bf   :  { %2517 = vmatprep.subr.bf16.mxu0 %v5910_v63  ;;  %v7001_v61 = vpop.f32.mrb[67].mxu1 }
 0x2c2   :  { %2518 = vmatpush1.bf16.msra.mxu0 %v5908_v11  ;;  %v8367_v11 = vld [vmem:[#allocation20_spill] sm:$0xff] }
 0x2c3   :  { %2519 = vmatprep.subr.bf16.mxu0 %v5913_v19  ;;  %v5944_v19 = vld [vmem:[%s8281_s8 + $0x68] sm:$0xff]  }
 0x2c6   :  { %2520 = vmatpush1.bf16.msra.mxu0 %v5911_v13  ;;  %v5945_v13 = vld [vmem:[%s8281_s8 + $0x28] sm:$0xff]  }
 0x2c7   :  { %2521 = vmatprep.subr.bf16.mxu0 %v5916_v3 }
 0x2ca   :  { %2522 = vmatpush1.bf16.msra.mxu0 %v5914_v42 }
 0x2cb   :  { %2523 = vmatprep.subr.bf16.mxu0 %v5919_v56  ;;  %v5946_v56 = vld [vmem:[%s8281_s8 + $0x70] sm:$0xff]  }
 0x2cc   :  { %v7003_v16 = vpop.f32.mrb[68].mxu1 }
 0x2cd   :  { %v7005_v60 = vpop.f32.mrb[69].mxu1 }
 0x2ce   :  { %2524 = vmatpush1.bf16.msra.mxu0 %v5917_v43  ;;  %v7013_v9 = vpop.f32.mrb[70].mxu1  ;;  %v5947_v43 = vld [vmem:[%s8281_s8 + $0x30] sm:$0xff]  }
 0x2cf   :  { %2525 = vmatprep.subr.bf16.mxu0 %v5922_v24  ;;  %v7015_v34 = vpop.f32.mrb[71].mxu1 }
 0x2d2   :  { %2526 = vmatpush1.bf16.msra.mxu0 %v5920_v8  ;;  %v5948_v8 = vld [vmem:[%s8281_s8 + $0x78] sm:$0xff]  }
 0x2d3   :  { %2527 = vmatprep.subr.bf16.mxu0 %v5925_v57  ;;  %v8372_v57 = vld [vmem:[#allocation22_spill] sm:$0xff] }
 0x2d4   :  { %v7022_v1 = vpop.f32.mrb[72].mxu1 }
 0x2d5   :  { %v7024_v14 = vpop.f32.mrb[73].mxu1 }
 0x2d6   :  { %2528 = vmatpush1.bf16.msra.mxu0 %v5923_v22  ;;  %v7031_v45 = vpop.f32.mrb[74].mxu1  ;;  %v5949_v22 = vld [vmem:[%s8281_s8 + $0x38] sm:$0xff]  }
 0x2d7   :  { %5520 = vmatprep.subr.bf16.mxu0 %v7020_v50  ;;  %v7034_v51 = vpop.f32.mrb[75].mxu1 }
 0x2d9   :  { %2530 = vmatmul.mubr.bf16.vlgmr.msra.gmra.mrb[48].mxu0 %v6379_v49  ;;  %v5936_v49 = vld [vmem:[%s8281_s8 + $0x58] sm:$0xff]  }
 0x2da   :  { %2539 = vmatprep.mubr.bf16.mxu0 %v6394_v53  ;;  %5521 = vmatpush3.bf16.msra.mxu0 %v7029_v4  ;;  %v5937_v53 = vld [vmem:[%s8281_s8 + $0x18] sm:$0xff]  }
 0x2db   :  { %5522 = vmatprep.subr.bf16.mxu0 %v7042_v15  ;;  %5414 = vmatprep.subr.bf16.mxu1 %v5936_v49  ;;  %v8373_v49 = vld [vmem:[#allocation23_spill] sm:$0xff] }
 0x2dc   :  { %5415 = vmatpush3.bf16.msra.mxu1 %v5937_v53  ;;  %v8374_v53 = vld [vmem:[#allocation24_spill] sm:$0xff] }
 0x2dd   :  { %5416 = vmatprep.subr.bf16.mxu1 %v5940_v35 }
 0x2de   :  { %5523 = vmatpush3.bf16.msra.mxu0 %v7047_v12 }
 0x2df   :  { %5524 = vmatprep.subr.bf16.mxu0 %v7060_v31 }
 0x2e0   :  { %5417 = vmatpush3.bf16.msra.mxu1 %v5941_v30  ;;  %v7161_v30 = vld [vmem:[%s8281_s8 + $0xe0] sm:$0xff]  }
 0x2e1   :  { %2540 = vmatmul.mubr.bf16.gmra.mrb[52].mxu0 %v6401_v37  ;;  %v7064_v7 = vpop.f32.mrb[76].mxu1  ;;  %5418 = vmatprep.subr.bf16.mxu1 %v5944_v19 }
 0x2e2   :  { %2549 = vmatprep.mubr.bf16.mxu0 %v8359_v17  ;;  %v7067_v27 = vpop.f32.mrb[77].mxu1  ;;  %5525 = vmatpush3.bf16.msra.mxu0 %v7076_v33 }
 0x2e3   :  { %v7069_v44 = vpop.f32.mrb[78].mxu1  ;;  %5526 = vmatprep.subr.bf16.mxu0 %v7104_v26 }
 0x2e4   :  { %v7071_v47 = vpop.f32.mrb[79].mxu1  ;;  %5419 = vmatpush3.bf16.msra.mxu1 %v5945_v13 }
 0x2e5   :  { %5420 = vmatprep.subr.bf16.mxu1 %v5946_v56  ;;  %v7183_v56 = vld [vmem:[%s8281_s8 + $0xe8] sm:$0xff]  }
 0x2e6   :  { %5527 = vmatpush3.bf16.msra.mxu0 %v7109_v28  ;;  %8386 = vst [vmem:[#allocation34_spill] sm:$0xff] %v7183_v56 }
 0x2e7   :  { %5528 = vmatprep.subr.bf16.mxu0 %v7161_v30 }
 0x2e8   :  { %5421 = vmatpush3.bf16.msra.mxu1 %v5947_v43  ;;  %v7188_v43 = vld [vmem:[%s8281_s8 + $0xa8] sm:$0xff]  }
 0x2e9   :  { %2550 = vmatmul.mubr.bf16.gmra.mrb[56].mxu0 %v8360_v54  ;;  %v7080_v37 = vpop.f32.mrb[80].mxu1  ;;  %5422 = vmatprep.subr.bf16.mxu1 %v5948_v8  ;;  %8387 = vst [vmem:[#allocation35_spill] sm:$0xff] %v7188_v43  ;;  %v8388_v8 = vld [vmem:[#allocation27_spill] sm:$0xff] }
 0x2ea   :  { %2559 = vmatprep.mubr.bf16.mxu0 %v8361_v46  ;;  %v7083_v29 = vpop.f32.mrb[81].mxu1 }
 0x2eb   :  { %v7091_v0 = vpop.f32.mrb[82].mxu1 }
 0x2ec   :  { %v7093_v52 = vpop.f32.mrb[83].mxu1  ;;  %5423 = vmatpush3.bf16.msra.mxu1 %v5949_v22 }
 0x2ed   :  { %5666 = vmatprep.subr.bf16.mxu1 %v7020_v50  ;;  %v7166_v50 = vld [vmem:[%s8281_s8 + $0xa0] sm:$0xff]  }
 0x2ee   :  { %8379 = vst [vmem:[#allocation23_spill] sm:$0xff] %v7166_v50  ;;  %5529 = vmatpush3.bf16.msra.mxu0 %v7166_v50 }
 0x2ef   :  { %5530 = vmatprep.subr.bf16.mxu0 %v7183_v56 }
 0x2f1   :  { %2560 = vmatmul.mubr.bf16.gmra.mrb[60].mxu0 %v8362_v55  ;;  %v8380_v55 = vld [vmem:[#allocation25_spill] sm:$0xff] }
 0x2f2   :  { %2569 = vmatprep.mubr.bf16.mxu0 %v8363_v5  ;;  %v8381_v5 = vld [vmem:[#allocation26_spill] sm:$0xff]  ;;  %5531 = vmatpush3.bf16.msra.mxu0 %v7188_v43 }
 0x2f5   :  { %v7097_v10 = vpop.f32.mrb[84].mxu1 }
 0x2f6   :  { %8364 = vst [vmem:[#allocation14_spill] sm:$0xff] %v7097_v10  ;;  %v7099_v48 = vpop.f32.mrb[85].mxu1 }
 0x2f7   :  { %v7111_v58 = vpop.f32.mrb[86].mxu1 }
 0x2f8   :  { %8365 = vst [vmem:[#allocation15_spill] sm:$0xff] %v7111_v58  ;;  %v7114_v63 = vpop.f32.mrb[87].mxu1 }
 0x2f9   :  { %2570 = vmatmul.mubr.bf16.gmra.mrb[64].mxu0 %v8366_v2 }
 0x2fa   :  { %2579 = vmatprep.mubr.bf16.mxu0 %v8367_v11 }
 0x2fd   :  { %v7125_v3 = vpop.f32.mrb[88].mxu1 }
 0x2fe   :  { %8368 = vst [vmem:[#allocation16_spill] sm:$0xff] %v7125_v3  ;;  %v7127_v42 = vpop.f32.mrb[89].mxu1 }
 0x2ff   :  { %v7135_v24 = vpop.f32.mrb[90].mxu1 }
 0x300   :  { %8369 = vst [vmem:[#allocation17_spill] sm:$0xff] %v7135_v24  ;;  %v7141_v20 = vpop.f32.mrb[91].mxu1 }
 0x301   :  { %2580 = vmatmul.mubr.bf16.gmra.mrb[68].mxu0 %v8370_v40  ;;  %8371 = vst [vmem:[#allocation18_spill] sm:$0xff] %v7141_v20 }
 0x302   :  { %2589 = vmatprep.mubr.bf16.mxu0 %v8372_v57 }
 0x309   :  { %2590 = vmatmul.mubr.bf16.gmra.mrb[72].mxu0 %v8373_v49 }
 0x30a   :  { %2599 = vmatprep.mubr.bf16.mxu0 %v8374_v53  ;;  %v7150_v17 = vpop.f32.mrb[92].mxu1  ;;  %v7207_v53 = vld [vmem:[%s8281_s8 + $0xf0] sm:$0xff]  }
 0x30b   :  { %8375 = vst [vmem:[#allocation19_spill] sm:$0xff] %v7150_v17  ;;  %v7152_v54 = vpop.f32.mrb[93].mxu1  ;;  %8393 = vst [vmem:[#allocation39_spill] sm:$0xff] %v7207_v53  ;;  %5532 = vmatprep.subr.bf16.mxu0 %v7207_v53  ;;  %v8430_v53 = vld [vmem:[#allocation12_spill] sm:$0xff] }
 0x30c   :  { %8376 = vst [vmem:[#allocation20_spill] sm:$0xff] %v7152_v54  ;;  %v7154_v46 = vpop.f32.mrb[94].mxu1  ;;  %v8429_v54 = vld [vmem:[#allocation13_spill] sm:$0xff] }
 0x30d   :  { %8377 = vst [vmem:[#allocation21_spill] sm:$0xff] %v7154_v46  ;;  %v7156_v35 = vpop.f32.mrb[95].mxu1 }
 0x30e   :  { %8378 = vst [vmem:[#allocation22_spill] sm:$0xff] %v7156_v35 }
 0x311   :  { %2600 = vmatmul.mubr.bf16.gmra.mrb[76].mxu0 %v8380_v55  ;;  %v7256_v55 = vld [vmem:[%s8281_s8 + $0xf8] sm:$0xff]  }
 0x312   :  { %2609 = vmatprep.mubr.bf16.mxu0 %v8381_v5  ;;  %v7172_v2 = vpop.f32.mrb[96].mxu1 }
 0x313   :  { %8382 = vst [vmem:[#allocation24_spill] sm:$0xff] %v7172_v2  ;;  %v7174_v11 = vpop.f32.mrb[97].mxu1  ;;  %v8400_v2 = vld [vmem:[#allocation29_spill] sm:$0xff] }
 0x314   :  { %8383 = vst [vmem:[#allocation25_spill] sm:$0xff] %v7174_v11  ;;  %v7176_v19 = vpop.f32.mrb[98].mxu1 }
 0x315   :  { %8384 = vst [vmem:[#allocation26_spill] sm:$0xff] %v7176_v19  ;;  %v7178_v13 = vpop.f32.mrb[99].mxu1 }
 0x316   :  { %8385 = vst [vmem:[#allocation33_spill] sm:$0xff] %v7178_v13 }
 0x319   :  { %2610 = vmatmul.mubr.bf16.gmra.mrb[80].mxu0 %v8388_v8 }
 0x31a   :  { %2619 = vmatprep.mubr.bf16.mxu0 %v6614_v38  ;;  %v7212_v38 = vld [vmem:[%s8281_s8 + $0xb0] sm:$0xff]  }
 0x31b   :  { %8394 = vst [vmem:[#allocation40_spill] sm:$0xff] %v7212_v38  ;;  %5533 = vmatpush3.bf16.msra.mxu0 %v7212_v38 }
 0x31c   :  { %5534 = vmatprep.subr.bf16.mxu0 %v7256_v55 }
 0x321   :  { %2620 = vmatmul.mubr.bf16.gmra.mrb[84].mxu0 %v6655_v62 }
 0x322   :  { %2629 = vmatprep.mubr.bf16.mxu0 %v6697_v36 }
 0x323   :  { %v7196_v40 = vpop.f32.mrb[100].mxu1 }
 0x324   :  { %8389 = vst [vmem:[#allocation27_spill] sm:$0xff] %v7196_v40  ;;  %v7198_v57 = vpop.f32.mrb[101].mxu1 }
 0x325   :  { %8390 = vst [vmem:[#allocation36_spill] sm:$0xff] %v7198_v57  ;;  %v7200_v22 = vpop.f32.mrb[102].mxu1 }
 0x326   :  { %8391 = vst [vmem:[#allocation37_spill] sm:$0xff] %v7200_v22  ;;  %v7202_v49 = vpop.f32.mrb[103].mxu1  ;;  %v8395_v22 = vld [vmem:[#allocation28_spill] sm:$0xff] }
 0x327   :  { %8392 = vst [vmem:[#allocation38_spill] sm:$0xff] %v7202_v49 }
 0x328   :  { %v7214_v62 = vpop.f32.mrb[32].mxu0 }
 0x329   :  { %v7216_v36 = vpop.f32.mrb[33].mxu0  ;;  %2630 = vmatmul.mubr.bf16.gmra.mrb[88].mxu0 %v6709_v21  ;;  %v8406_v21 = vld [vmem:[#allocation31_spill] sm:$0xff] }
 0x32a   :  { %v7224_v8 = vpop.f32.mrb[34].mxu0  ;;  %2639 = vmatprep.mubr.bf16.mxu0 %v8395_v22  ;;  %v8401_v22 = vld [vmem:[#allocation30_spill] sm:$0xff]  ;;  %8407 = vst [vmem:[#allocation31_spill] sm:$0xff] %v7256_v55 }
 0x32b   :  { %v7227_v40 = vpop.f32.mrb[104].mxu1  ;;  %v7230_v49 = vpop.f32.mrb[35].mxu0 }
 0x32c   :  { %8396 = vst [vmem:[#allocation28_spill] sm:$0xff] %v7227_v40  ;;  %v7232_v57 = vpop.f32.mrb[105].mxu1 }
 0x32d   :  { %8397 = vst [vmem:[#allocation41_spill] sm:$0xff] %v7232_v57  ;;  %v7238_v19 = vpop.f32.mrb[106].mxu1 }
 0x32e   :  { %8398 = vst [vmem:[#allocation42_spill] sm:$0xff] %v7238_v19  ;;  %v7240_v5 = vpop.f32.mrb[107].mxu1  ;;  %v8408_v19 = vld [vmem:[#allocation32_spill] sm:$0xff] }
 0x32f   :  { %8399 = vst [vmem:[#allocation43_spill] sm:$0xff] %v7240_v5 }
 0x331   :  { %2640 = vmatmul.mubr.bf16.gmra.mrb[92].mxu0 %v8400_v2  ;;  %v7262_v2 = vld [vmem:[%s8281_s8 + $0xb8] sm:$0xff]  }
 0x332   :  { %2649 = vmatprep.mubr.bf16.mxu0 %v8401_v22  ;;  %8409 = vst [vmem:[#allocation32_spill] sm:$0xff] %v7262_v2  ;;  %5535 = vmatpush3.bf16.msra.mxu0 %v7262_v2 }
 0x336   :  { %v7244_v40 = vpop.f32.mrb[108].mxu1 }
 0x337   :  { %8402 = vst [vmem:[#allocation29_spill] sm:$0xff] %v7244_v40  ;;  %v7246_v13 = vpop.f32.mrb[109].mxu1 }
 0x338   :  { %8403 = vst [vmem:[#allocation30_spill] sm:$0xff] %v7246_v13  ;;  %v7248_v11 = vpop.f32.mrb[110].mxu1 }
 0x339   :  { %8404 = vst [vmem:[#allocation44_spill] sm:$0xff] %v7248_v11  ;;  %v7250_v57 = vpop.f32.mrb[111].mxu1  ;;  %2650 = vmatmul.mubr.bf16.gmra.mrb[96].mxu0 %v8406_v21 }
 0x33a   :  { %8405 = vst [vmem:[#allocation45_spill] sm:$0xff] %v7250_v57  ;;  %2659 = vmatprep.mubr.bf16.mxu0 %v8408_v19 }
 0x33e   :  { %v7266_v22 = vpop.f32.mrb[112].mxu1 }
 0x33f   :  { %8410 = vst [vmem:[#allocation46_spill] sm:$0xff] %v7266_v22  ;;  %v7268_v11 = vpop.f32.mrb[113].mxu1 }
 0x340   :  { %8411 = vst [vmem:[#allocation47_spill] sm:$0xff] %v7268_v11  ;;  %v7270_v21 = vpop.f32.mrb[114].mxu1 }
 0x341   :  { %8412 = vst [vmem:[#allocation48_spill] sm:$0xff] %v7270_v21  ;;  %v7272_v40 = vpop.f32.mrb[115].mxu1  ;;  %2660 = vmatmul.mubr.bf16.gmra.mrb[100].mxu0 %v6866_v23 }
 0x342   :  { %8413 = vst [vmem:[#allocation49_spill] sm:$0xff] %v7272_v40  ;;  %2669 = vmatprep.mubr.bf16.mxu0 %v6894_v59 }
 0x349   :  { %2670 = vmatmul.mubr.bf16.gmra.mrb[104].mxu0 %v6890_v41 }
 0x34a   :  { %2679 = vmatprep.mubr.bf16.mxu0 %v6907_v32 }
 0x34b   :  { %v7278_v19 = vpop.f32.mrb[116].mxu1 }
 0x34c   :  { %8414 = vst [vmem:[#allocation50_spill] sm:$0xff] %v7278_v19  ;;  %v7280_v57 = vpop.f32.mrb[117].mxu1 }
 0x34d   :  { %8415 = vst [vmem:[#allocation51_spill] sm:$0xff] %v7280_v57  ;;  %v7282_v13 = vpop.f32.mrb[118].mxu1 }
 0x34e   :  { %8416 = vst [vmem:[#allocation52_spill] sm:$0xff] %v7282_v13  ;;  %v7284_v22 = vpop.f32.mrb[119].mxu1  ;;  %v6038_v13 = vmov 1966171168  }
 0x34f   :  { %8417 = vst [vmem:[#allocation53_spill] sm:$0xff] %v7284_v22  ;;  %v2711_v22 = vunpack.c.l.s4 %v6038_v13  ;;  %v3746_v13 = vld [vmem:[%s8280_s7] sm:$0xf] }
 0x350   :  { %v7320_v24 = vrot.slane %v3746_v13, %v8429_v54  ;;  %v7323_v43 = vrot.slane %v3746_v13, %v8430_v53 }
 0x351   :  { %2680 = vmatmul.mubr.bf16.gmra.mrb[108].mxu0 %v6905_v25 }
 0x353   :  { %v7287_v21 = vpop.f32.mrb[120].mxu1 }
 0x354   :  { %8418 = vst [vmem:[#allocation54_spill] sm:$0xff] %v7287_v21  ;;  %v7289_v40 = vpop.f32.mrb[121].mxu1 }
 0x355   :  { %8419 = vst [vmem:[#allocation55_spill] sm:$0xff] %v7289_v40  ;;  %v7291_v23 = vpop.f32.mrb[122].mxu1  ;;  %v2712_v40 = vunpack.c.0.s8 %v2711_v22 }
 0x356   :  { %8420 = vst [vmem:[#allocation56_spill] sm:$0xff] %v7291_v23  ;;  %v7293_v59 = vpop.f32.mrb[123].mxu1 }
 0x357   :  { %8421 = vst [vmem:[#allocation57_spill] sm:$0xff] %v7293_v59  ;;  %v8426_v59 = vld [vmem:[#allocation11_spill] sm:$0xff] }
 0x358   :  { %v7304_v55 = vsub.s32 %v2712_v40, %v8426_v59  ;;  %v7329_v3 = vsub.s32 3, %v8426_v59 }
 0x35a   :  { %8432 = vst [vmem:[#allocation13_spill] sm:$0xff] %v7329_v3 }
 0x35b   :  { %v7295_v41 = vpop.f32.mrb[124].mxu1 }
 0x35c   :  { %8422 = vst [vmem:[#allocation58_spill] sm:$0xff] %v7295_v41  ;;  %v7297_v32 = vpop.f32.mrb[125].mxu1 }
 0x35d   :  { %8423 = vst [vmem:[#allocation59_spill] sm:$0xff] %v7297_v32  ;;  %v7299_v19 = vpop.f32.mrb[126].mxu1 }
 0x35e   :  { %8424 = vst [vmem:[#allocation60_spill] sm:$0xff] %v7299_v19  ;;  %v7301_v57 = vpop.f32.mrb[127].mxu1 }
 0x35f   :  { %8425 = vst [vmem:[#allocation61_spill] sm:$0xff] %v7301_v57 }
 0x364   :  { %v1826_v11 = vpop.f32.mrb[36].mxu0 }
 0x365   :  { %v1828_v25 = vpop.f32.mrb[37].mxu0 }
 0x366   :  { %v2842_v5 = vcombine.low %v1826_v11, %v1828_v25  ;;  %v2843_v21 = vcombine.high %v1826_v11, %v1828_v25  ;;  %v1830_v2 = vpop.f32.mrb[38].mxu0  ;;  %v8427_v11 = vcombine.low %v7214_v62, %v7216_v36 }
 0x367   :  { %v1832_v46 = vpop.f32.mrb[39].mxu0 }
 0x368   :  { %v2910_v23 = vcombine.low %v1830_v2, %v1832_v46  ;;  %v2911_v17 = vcombine.high %v1830_v2, %v1832_v46  ;;  %v2716_v22 = vrot.slane %v8427_v11, %v7304_v55  ;;  %v8428_v46 = vcombine.high %v7214_v62, %v7216_v36 }
 0x369   :  { %v7326_v11 = vsub.s32 2, %v8426_v59 }
 0x36a   :  { %v2723_v40 = vrot.slane %v8428_v46, %v7304_v55 }
 0x36b   :  { %8431 = vst [vmem:[#allocation11_spill] sm:$0xff] %v7326_v11 }
 0x36c   :  { %v1869_v41 = vpop.f32.mrb[40].mxu0 }
 0x36d   :  { %v1871_v32 = vpop.f32.mrb[41].mxu0 }
 0x36e   :  { %v2708_v35 = vcombine.low %v1869_v41, %v1871_v32  ;;  %v2709_v19 = vcombine.high %v1869_v41, %v1871_v32  ;;  %v1873_v38 = vpop.f32.mrb[42].mxu0 }
 0x36f   :  { %v1875_v2 = vpop.f32.mrb[43].mxu0 }
 0x370   :  { %v2730_v25 = vrot.slane %v2708_v35, %v7304_v55  ;;  %v2737_v41 = vrot.slane %v2709_v19, %v7304_v55  ;;  %v2776_v32 = vcombine.low %v1873_v38, %v1875_v2  ;;  %v2777_v57 = vcombine.high %v1873_v38, %v1875_v2 }
 0x371   :  { %v8433_v38 = vcombine.low %v7224_v8, %v7230_v49  ;;  %v8434_v2 = vcombine.high %v7224_v8, %v7230_v49 }
 0x372   :  { %v2738_v62 = vcombine.low %v2716_v22, %v2730_v25  ;;  %v2739_v36 = vcombine.high %v2716_v22, %v2730_v25  ;;  %v2740_v46 = vcombine.low %v2723_v40, %v2737_v41  ;;  %v2741_v35 = vcombine.high %v2723_v40, %v2737_v41 }
 0x373   :  { %v2784_v19 = vrot.slane %v8433_v38, %v7304_v55  ;;  %v2791_v56 = vrot.slane %v8434_v2, %v7304_v55  ;;  %v2798_v50 = vrot.slane %v2776_v32, %v7304_v55  ;;  %v2805_v20 = vrot.slane %v2777_v57, %v7304_v55 }
 0x374   :  { %v7342_v59 = vrot.slane %v2738_v62, %v7304_v55  ;;  %v7345_v22 = vrot.slane %v2739_v36, %v7304_v55  ;;  %v1879_v40 = vpop.f32.mrb[44].mxu0  ;;  %v7348_v25 = vrot.slane %v3746_v13, %v7326_v11  ;;  %v7351_v41 = vrot.slane %v3746_v13, %v7329_v3 }
 0x375   :  { %v2806_v38 = vcombine.low %v2784_v19, %v2798_v50  ;;  %v2807_v49 = vcombine.high %v2784_v19, %v2798_v50  ;;  %v2808_v8 = vcombine.low %v2791_v56, %v2805_v20  ;;  %v2809_v2 = vcombine.high %v2791_v56, %v2805_v20  ;;  %v1881_v32 = vpop.f32.mrb[45].mxu0 }
 0x376   :  { %8435 = vst [vmem:[#allocation12_spill] sm:$0xff] %v7345_v22  ;;  %8436 = vst [vmem:[#allocation62_spill] sm:$0xff] %v7348_v25  ;;  %v2844_v58 = vcombine.low %v1879_v40, %v1881_v32  ;;  %v2845_v57 = vcombine.high %v1879_v40, %v1881_v32  ;;  %v1883_v10 = vpop.f32.mrb[46].mxu0  ;;  %v2985_v62 = vrot.slane %v7342_v59, %v8429_v54 }
 0x377   :  { %8437 = vst [vmem:[#allocation63_spill] sm:$0xff] %v7351_v41  ;;  %v3001_v36 = vrot.slane %v7345_v22, %v8429_v54  ;;  %v7358_v11 = vrot.slane %v2842_v5, %v7304_v55  ;;  %v7361_v13 = vrot.slane %v2843_v21, %v7304_v55  ;;  %v7364_v50 = vrot.slane %v2910_v23, %v7304_v55  ;;  %v1885_v56 = vpop.f32.mrb[47].mxu0 }
 0x378   :  { %v7367_v20 = vrot.slane %v2911_v17, %v7304_v55  ;;  %v7370_v19 = vrot.slane %v2844_v58, %v7304_v55  ;;  %v7373_v40 = vrot.slane %v2845_v57, %v7304_v55  ;;  %v2912_v32 = vcombine.low %v1883_v10, %v1885_v56 }
 0x379   :  { %v2913_v41 = vcombine.high %v1883_v10, %v1885_v56  ;;  %v3619_v5 = vadd.f32 %v2985_v62, %v6997_v6  ;;  %v3623_v21 = vadd.f32 %v3001_v36, %v7001_v61  ;;  %v2981_v23 = vrot.slane %v7342_v59, %v8430_v53 }
 0x37a   :  { %8438 = vst [vmem:[#allocation64_spill] sm:$0xff] %v7373_v40  ;;  %v2997_v17 = vrot.slane %v7345_v22, %v8430_v53  ;;  %v2874_v25 = vcombine.low %v7358_v11, %v7370_v19  ;;  %v2876_v57 = vcombine.low %v7361_v13, %v7373_v40  ;;  %v7390_v61 = vrot.slane %v2912_v32, %v7304_v55 }
 0x37b   :  { %v7393_v10 = vrot.slane %v2913_v41, %v7304_v55  ;;  %v3769_v62 = vadd.f32 %v7320_v24, %v3619_v5  ;;  %v3773_v36 = vadd.f32 %v7320_v24, %v3623_v21  ;;  %v7398_v56 = vrot.slane %v2740_v46, %v7304_v55 }
 0x37c   :  { %8439 = vst [vmem:[#allocation65_spill] sm:$0xff] %v7390_v61  ;;  %v7401_v58 = vrot.slane %v2741_v35, %v7304_v55  ;;  %v7404_v3 = vrot.slane %v2806_v38, %v7304_v55  ;;  %v7407_v6 = vrot.slane %v2808_v8, %v7304_v55  ;;  %v3618_v38 = vadd.f32 %v2981_v23, %v6995_v18 }
 0x37d   :  { %v3897_v35 = vmax.f32 %v3769_v62, 0.0  ;;  %v3901_v21 = vmax.f32 %v3773_v36, 0.0  ;;  %v3622_v40 = vadd.f32 %v2997_v17, %v6999_v39  ;;  %v7420_v8 = vrot.slane %v2807_v49, %v7304_v55 }
 0x37e   :  { %v7423_v41 = vrot.slane %v2809_v2, %v7304_v55  ;;  %v7426_v32 = vrot.slane %v2874_v25, %v7304_v55  ;;  %v7429_v5 = vrot.slane %v2876_v57, %v7304_v55  ;;  %v3768_v62 = vadd.f32 %v7323_v43, %v3618_v38 }
 0x37f   :  { %v4089_v61 = vpack.c.bf16 %v3901_v21, %v3897_v35  ;;  %v3772_v36 = vadd.f32 %v7323_v43, %v3622_v40  ;;  %v7435_v18 = vcombine.high %v7342_v59, %v7342_v59  ;;  %v7439_v39 = vcombine.high %v7345_v22, %v7345_v22 }
 0x380   :  { %8440 = vst [vmem:[#allocation66_spill] sm:$0xff] %v7426_v32  ;;  %8441 = vst [vmem:[#allocation67_spill] sm:$0xff] %v7429_v5  ;;  %v3049_v25 = vrot.slane %v7398_v56, %v8429_v54  ;;  %v3065_v49 = vrot.slane %v7401_v58, %v8429_v54  ;;  %v3045_v2 = vrot.slane %v7398_v56, %v8430_v53  ;;  %v3896_v23 = vmax.f32 %v3768_v62, 0.0 }
 0x381   :  { %8442 = vst [vmem:[#allocation68_spill] sm:$0xff] %v7435_v18  ;;  %8443 = vst [vmem:[#allocation69_spill] sm:$0xff] %v7439_v39  ;;  %4383 = vmatprep.mubr.bf16.mxu1 %v4089_v61  ;;  %v3900_v40 = vmax.f32 %v3772_v36, 0.0  ;;  %v3017_v17 = vrot.slane %v7435_v18, %v8429_v54  ;;  %v3013_v57 = vrot.slane %v7435_v18, %v8430_v53 }
 0x382   :  { %v3033_v35 = vrot.slane %v7439_v39, %v8429_v54  ;;  %v3029_v21 = vrot.slane %v7439_v39, %v8430_v53  ;;  %v3635_v38 = vadd.f32 %v3049_v25, %v7024_v14  ;;  %v3639_v46 = vadd.f32 %v3065_v49, %v7034_v51 }
 0x383   :  { %v4088_v5 = vpack.c.bf16 %v3900_v40, %v3896_v23  ;;  %v3627_v61 = vadd.f32 %v3017_v17, %v7005_v60  ;;  %v3626_v62 = vadd.f32 %v3013_v57, %v7003_v16  ;;  %v3061_v36 = vrot.slane %v7401_v58, %v8430_v53 }
 0x384   :  { %v3631_v18 = vadd.f32 %v3033_v35, %v7015_v34  ;;  %v3630_v22 = vadd.f32 %v3029_v21, %v7013_v9  ;;  %v3785_v32 = vadd.f32 %v7320_v24, %v3635_v38  ;;  %v3789_v39 = vadd.f32 %v7320_v24, %v3639_v46 }
 0x385   :  { %4384 = vmatmul.mubr.bf16.vlgmr.msra.gmra.mrb[128].mxu1 %v4088_v5  ;;  %v3777_v14 = vadd.f32 %v7320_v24, %v3627_v61  ;;  %v3776_v51 = vadd.f32 %v7323_v43, %v3626_v62  ;;  %v3634_v60 = vadd.f32 %v3045_v2, %v7022_v1  ;;  %v3638_v16 = vadd.f32 %v3061_v36, %v7031_v45 }
 0x386   :  { %v3781_v25 = vadd.f32 %v7320_v24, %v3631_v18  ;;  %v3780_v49 = vadd.f32 %v7323_v43, %v3630_v22  ;;  %v3913_v34 = vmax.f32 %v3785_v32, 0.0  ;;  %v3917_v23 = vmax.f32 %v3789_v39, 0.0  ;;  %5674 = vmatpush3.bf16.msra.mxu1 %v7029_v4 }
 0x387   :  { %v3905_v9 = vmax.f32 %v3777_v14, 0.0  ;;  %v3904_v40 = vmax.f32 %v3776_v51, 0.0  ;;  %v3784_v5 = vadd.f32 %v7323_v43, %v3634_v60  ;;  %v3788_v46 = vadd.f32 %v7323_v43, %v3638_v16  ;;  %5667 = vmatprep.subr.bf16.mxu1 %v7042_v15 }
 0x388   :  { %v3909_v17 = vmax.f32 %v3781_v25, 0.0  ;;  %v3908_v1 = vmax.f32 %v3780_v49, 0.0  ;;  %v4097_v2 = vpack.c.bf16 %v3917_v23, %v3913_v34  ;;  %v7477_v45 = vcombine.high %v7398_v56, %v7398_v56 }
 0x389   :  { %v3912_v22 = vmax.f32 %v3784_v5, 0.0  ;;  %v3916_v32 = vmax.f32 %v3788_v46, 0.0  ;;  %v7481_v4 = vcombine.high %v7401_v58, %v7401_v58  ;;  %v3113_v18 = vrot.slane %v7404_v3, %v8429_v54 }
 0x38a   :  { %v4093_v39 = vpack.c.bf16 %v3909_v17, %v3905_v9  ;;  %v4092_v57 = vpack.c.bf16 %v3908_v1, %v3904_v40  ;;  %v3081_v15 = vrot.slane %v7477_v45, %v8429_v54  ;;  %v3077_v35 = vrot.slane %v7477_v45, %v8430_v53  ;;  %5675 = vmatpush3.bf16.msra.mxu1 %v7047_v12 }
 0x38b   :  { %v4096_v21 = vpack.c.bf16 %v3916_v32, %v3912_v22  ;;  %v3097_v38 = vrot.slane %v7481_v4, %v8429_v54  ;;  %v3093_v61 = vrot.slane %v7481_v4, %v8430_v53  ;;  %v3129_v62 = vrot.slane %v7420_v8, %v8429_v54  ;;  %5668 = vmatprep.subr.bf16.mxu1 %v7060_v31 }
 0x38c   :  { %4391 = vmatprep.mubr.bf16.mxu1 %v4093_v39  ;;  %v3643_v36 = vadd.f32 %v3081_v15, %v7067_v27  ;;  %v3642_v14 = vadd.f32 %v3077_v35, %v7064_v7  ;;  %v3651_v51 = vadd.f32 %v3113_v18, %v7083_v29  ;;  %v3109_v12 = vrot.slane %v7404_v3, %v8430_v53 }
 0x38d   :  { %4392 = vmatmul.mubr.bf16.gmra.mrb[132].mxu1 %v4092_v57  ;;  %v3647_v60 = vadd.f32 %v3097_v38, %v7071_v47  ;;  %v3646_v16 = vadd.f32 %v3093_v61, %v7069_v44  ;;  %v3655_v25 = vadd.f32 %v3129_v62, %v7093_v52  ;;  %v3125_v31 = vrot.slane %v7420_v8, %v8430_v53 }
 0x38e   :  { %4399 = vmatprep.mubr.bf16.mxu1 %v4097_v2  ;;  %v3793_v27 = vadd.f32 %v7320_v24, %v3643_v36  ;;  %v3792_v7 = vadd.f32 %v7323_v43, %v3642_v14  ;;  %v3801_v29 = vadd.f32 %v7320_v24, %v3651_v51  ;;  %v3650_v49 = vadd.f32 %v3109_v12, %v7080_v37 }
 0x38f   :  { %v3797_v34 = vadd.f32 %v7320_v24, %v3647_v60  ;;  %v3796_v47 = vadd.f32 %v7323_v43, %v3646_v16  ;;  %v3805_v44 = vadd.f32 %v7320_v24, %v3655_v25  ;;  %v3654_v52 = vadd.f32 %v3125_v31, %v7091_v0  ;;  %5676 = vmatpush3.bf16.msra.mxu1 %v7076_v33  ;;  %v8446_v16 = vld [vmem:[#allocation15_spill] sm:$0xff]  ;;  %v8449_v31 = vld [vmem:[#allocation65_spill] sm:$0xff] }
 0x390   :  { %v3921_v23 = vmax.f32 %v3793_v27, 0.0  ;;  %v3920_v9 = vmax.f32 %v3792_v7, 0.0  ;;  %v3929_v40 = vmax.f32 %v3801_v29, 0.0  ;;  %v3800_v5 = vadd.f32 %v7323_v43, %v3650_v49  ;;  %5669 = vmatprep.subr.bf16.mxu1 %v7104_v26  ;;  %v8451_v7 = vld [vmem:[#allocation18_spill] sm:$0xff]  ;;  %v8452_v29 = vld [vmem:[#allocation23_spill] sm:$0xff] }
 0x391   :  { %v3925_v46 = vmax.f32 %v3797_v34, 0.0  ;;  %v3924_v17 = vmax.f32 %v3796_v47, 0.0  ;;  %v3933_v37 = vmax.f32 %v3805_v44, 0.0  ;;  %v3804_v1 = vadd.f32 %v7323_v43, %v3654_v52  ;;  %v8453_v44 = vld [vmem:[#allocation34_spill] sm:$0xff] }
 0x392   :  { %v3928_v2 = vmax.f32 %v3800_v5, 0.0  ;;  %v7521_v22 = vcombine.high %v7404_v3, %v7404_v3  ;;  %v7525_v33 = vcombine.high %v7420_v8, %v7420_v8  ;;  %v3177_v0 = vrot.slane %v7407_v6, %v8429_v54 }
 0x393   :  { %v4101_v32 = vpack.c.bf16 %v3925_v46, %v3921_v23  ;;  %v4100_v18 = vpack.c.bf16 %v3924_v17, %v3920_v9  ;;  %v4105_v26 = vpack.c.bf16 %v3933_v37, %v3929_v40  ;;  %v3932_v39 = vmax.f32 %v3804_v1, 0.0  ;;  %5677 = vmatpush3.bf16.msra.mxu1 %v7109_v28 }
 0x394   :  { %v3145_v57 = vrot.slane %v7521_v22, %v8429_v54  ;;  %v3161_v15 = vrot.slane %v7525_v33, %v8429_v54  ;;  %v3141_v35 = vrot.slane %v7521_v22, %v8430_v53  ;;  %v3157_v38 = vrot.slane %v7525_v33, %v8430_v53  ;;  %5670 = vmatprep.subr.bf16.mxu1 %v7161_v30  ;;  %v8445_v30 = vld [vmem:[#allocation14_spill] sm:$0xff] }
 0x395   :  { %v8444_v61 = vcombine.high %v7358_v11, %v7370_v19  ;;  %4400 = vmatmul.mubr.bf16.gmra.mrb[136].mxu1 %v4096_v21  ;;  %v7545_v28 = vpack.c.bf16 %v3932_v39, %v3928_v2  ;;  %v3193_v36 = vrot.slane %v7423_v41, %v8429_v54  ;;  %v3667_v14 = vadd.f32 %v3177_v0, %v7127_v42  ;;  %v8447_v11 = vld [vmem:[#allocation64_spill] sm:$0xff] }
 0x396   :  { %4407 = vmatprep.mubr.bf16.mxu1 %v4101_v32  ;;  %v3659_v51 = vadd.f32 %v3145_v57, %v7099_v48  ;;  %v3663_v12 = vadd.f32 %v3161_v15, %v7114_v63  ;;  %v3658_v60 = vadd.f32 %v3141_v35, %v8445_v30  ;;  %v3662_v25 = vadd.f32 %v3157_v38, %v8446_v16  ;;  %v8455_v32 = vld [vmem:[#allocation16_spill] sm:$0xff]  ;;  %v8456_v15 = vld [vmem:[#allocation35_spill] sm:$0xff]  ;;  %v8459_v30 = vld [vmem:[#allocation17_spill] sm:$0xff] }
 0x397   :  { %v7543_v62 = vrot.slane %v8444_v61, %v7304_v55  ;;  %v8448_v19 = vcombine.high %v7361_v13, %v8447_v11  ;;  %v8450_v27 = vcombine.low %v7364_v50, %v8449_v31  ;;  %v3671_v48 = vadd.f32 %v3193_v36, %v8451_v7  ;;  %5678 = vmatpush3.bf16.msra.mxu1 %v8452_v29  ;;  %v8463_v29 = vld [vmem:[#allocation20_spill] sm:$0xff] }
 0x398   :  { %v3817_v63 = vadd.f32 %v7320_v24, %v3667_v14  ;;  %v3809_v49 = vadd.f32 %v7320_v24, %v3659_v51  ;;  %v3813_v34 = vadd.f32 %v7320_v24, %v3663_v12  ;;  %v3808_v13 = vadd.f32 %v7323_v43, %v3658_v60  ;;  %5671 = vmatprep.subr.bf16.mxu1 %v8453_v44  ;;  %v8458_v51 = vld [vmem:[#allocation39_spill] sm:$0xff] }
 0x399   :  { %v7558_v21 = vrot.slane %v8448_v19, %v7304_v55  ;;  %v7564_v42 = vrot.slane %v8450_v27, %v7304_v55  ;;  %v3812_v47 = vadd.f32 %v7323_v43, %v3662_v25  ;;  %v8454_v52 = vcombine.low %v7367_v20, %v7393_v10  ;;  %v8461_v19 = vld [vmem:[#allocation11_spill] sm:$0xff] }
 0x39a   :  { %v3821_v9 = vadd.f32 %v7320_v24, %v3671_v48  ;;  %v3945_v40 = vmax.f32 %v3817_v63, 0.0  ;;  %v3173_v5 = vrot.slane %v7407_v6, %v8430_v53  ;;  %v3937_v46 = vmax.f32 %v3809_v49, 0.0 }
 0x39b   :  { %v7578_v23 = vrot.slane %v8454_v52, %v7304_v55  ;;  %v3941_v17 = vmax.f32 %v3813_v34, 0.0  ;;  %v3936_v37 = vmax.f32 %v3808_v13, 0.0  ;;  %v3940_v1 = vmax.f32 %v3812_v47, 0.0  ;;  %5679 = vmatpush3.bf16.msra.mxu1 %v8456_v15  ;;  %v8466_v13 = vld [vmem:[#allocation66_spill] sm:$0xff]  ;;  %v8467_v52 = vld [vmem:[#allocation31_spill] sm:$0xff]  ;;  %v8472_v15 = vld [vmem:[#allocation33_spill] sm:$0xff] }
 0x39c   :  { %v3949_v2 = vmax.f32 %v3821_v9, 0.0  ;;  %v3189_v0 = vrot.slane %v7423_v41, %v8430_v53  ;;  %v3666_v39 = vadd.f32 %v3173_v5, %v8455_v32  ;;  %v7588_v57 = vcombine.high %v7407_v6, %v7407_v6  ;;  %5672 = vmatprep.subr.bf16.mxu1 %v8458_v51  ;;  %v8468_v9 = vld [vmem:[#allocation12_spill] sm:$0xff]  ;;  %v8471_v32 = vld [vmem:[#allocation25_spill] sm:$0xff] }
 0x39d   :  { %v8457_v35 = vcombine.high %v7364_v50, %v8449_v31  ;;  %v4109_v61 = vpack.c.bf16 %v3941_v17, %v3937_v46  ;;  %v7597_v36 = vpack.c.bf16 %v3940_v1, %v3936_v37  ;;  %v7601_v14 = vcombine.high %v7423_v41, %v7423_v41  ;;  %4408 = vmatmul.mubr.bf16.gmra.mrb[140].mxu1 %v4100_v18  ;;  %v8462_v18 = vld [vmem:[#allocation13_spill] sm:$0xff]  ;;  %v8469_v17 = vld [vmem:[#allocation19_spill] sm:$0xff] }
 0x39e   :  { %v7604_v12 = vpack.c.bf16 %v3949_v2, %v3945_v40  ;;  %v3670_v60 = vadd.f32 %v3189_v0, %v8459_v30  ;;  %v3816_v16 = vadd.f32 %v7323_v43, %v3666_v39  ;;  %v3209_v50 = vrot.slane %v7588_v57, %v8429_v54  ;;  %4415 = vmatprep.mubr.bf16.mxu1 %v4105_v26  ;;  %v8470_v2 = vld [vmem:[#allocation21_spill] sm:$0xff] }
 0x39f   :  { %v7595_v38 = vrot.slane %v8457_v35, %v7304_v55  ;;  %v8460_v25 = vcombine.high %v7367_v20, %v7393_v10  ;;  %v2989_v31 = vrot.slane %v7342_v59, %v8461_v19  ;;  %v2993_v27 = vrot.slane %v7342_v59, %v8462_v18  ;;  %v8465_v10 = vld [vmem:[#allocation22_spill] sm:$0xff] }
 0x3a0   :  { %v3225_v7 = vrot.slane %v7601_v14, %v8429_v54  ;;  %v3820_v48 = vadd.f32 %v7323_v43, %v3670_v60  ;;  %v3944_v63 = vmax.f32 %v3816_v16, 0.0  ;;  %v3675_v49 = vadd.f32 %v3209_v50, %v8463_v29  ;;  %v8473_v50 = vld [vmem:[#allocation32_spill] sm:$0xff] }
 0x3a1   :  { %v7614_v11 = vrot.slane %v8460_v25, %v7304_v55  ;;  %v3205_v20 = vrot.slane %v7588_v57, %v8430_v53  ;;  %v8464_v55 = vld [vmem:[#allocation40_spill] sm:$0xff]  ;;  %v3221_v34 = vrot.slane %v7601_v14, %v8430_v53  ;;  %v3241_v47 = vrot.slane %v8466_v13, %v8429_v54 }
 0x3a2   :  { %5680 = vmatpush3.bf16.msra.mxu1 %v8464_v55  ;;  %v3679_v26 = vadd.f32 %v3225_v7, %v8465_v10  ;;  %v3257_v44 = vrot.slane %v7543_v62, %v8429_v54  ;;  %v3005_v40 = vrot.slane %v8468_v9, %v8461_v19  ;;  %v3948_v5 = vmax.f32 %v3820_v48, 0.0 }
 0x3a3   :  { %5673 = vmatprep.subr.bf16.mxu1 %v8467_v52  ;;  %v3825_v46 = vadd.f32 %v7320_v24, %v3675_v49  ;;  %v3674_v37 = vadd.f32 %v3205_v20, %v8469_v17  ;;  %v3678_v0 = vadd.f32 %v3221_v34, %v8470_v2  ;;  %v3683_v39 = vadd.f32 %v3241_v47, %v8471_v32  ;;  %v8474_v49 = vld [vmem:[#allocation68_spill] sm:$0xff] }
 0x3a4   :  { %v3829_v1 = vadd.f32 %v7320_v24, %v3679_v26  ;;  %v3687_v35 = vadd.f32 %v3257_v44, %v8472_v15  ;;  %v3009_v51 = vrot.slane %v8468_v9, %v8462_v18  ;;  %v7645_v30 = vpack.c.bf16 %v3948_v5, %v3944_v63 }
 0x3a5   :  { %v3953_v60 = vmax.f32 %v3825_v46, 0.0  ;;  %v3824_v16 = vadd.f32 %v7323_v43, %v3674_v37  ;;  %v3828_v7 = vadd.f32 %v7323_v43, %v3678_v0  ;;  %v3833_v48 = vadd.f32 %v7320_v24, %v3683_v39  ;;  %4416 = vmatmul.mubr.bf16.gmra.mrb[144].mxu1 %v7545_v28  ;;  %v8475_v28 = vld [vmem:[#allocation24_spill] sm:$0xff]  ;;  %v8477_v0 = vld [vmem:[#allocation26_spill] sm:$0xff] }
 0x3a6   :  { %5681 = vmatpush3.bf16.msra.mxu1 %v8473_v50  ;;  %v3957_v25 = vmax.f32 %v3829_v1, 0.0  ;;  %v3837_v29 = vadd.f32 %v7320_v24, %v3687_v35  ;;  %v3021_v20 = vrot.slane %v8474_v49, %v8461_v19  ;;  %v3025_v63 = vrot.slane %v8474_v49, %v8462_v18  ;;  %4423 = vmatprep.mubr.bf16.mxu1 %v4109_v61  ;;  %v8476_v61 = vld [vmem:[#allocation69_spill] sm:$0xff] }
 0x3a7   :  { %v3952_v55 = vmax.f32 %v3824_v16, 0.0  ;;  %v3237_v10 = vrot.slane %v8466_v13, %v8430_v53  ;;  %v3956_v34 = vmax.f32 %v3828_v7, 0.0  ;;  %v3961_v47 = vmax.f32 %v3833_v48, 0.0 }
 0x3a8   :  { %v7659_v26 = vpack.c.bf16 %v3957_v25, %v3953_v60  ;;  %v3965_v44 = vmax.f32 %v3837_v29, 0.0  ;;  %v3253_v52 = vrot.slane %v7543_v62, %v8430_v53  ;;  %v7666_v5 = vcombine.high %v8466_v13, %v8466_v13  ;;  %v8482_v60 = vld [vmem:[#allocation67_spill] sm:$0xff] }
 0x3a9   :  { %v3682_v9 = vadd.f32 %v3237_v10, %v8475_v28  ;;  %v7670_v46 = vcombine.high %v7543_v62, %v7543_v62  ;;  %v7676_v1 = vpack.c.bf16 %v3956_v34, %v3952_v55  ;;  %v8478_v55 = vld [vmem:[#allocation36_spill] sm:$0xff]  ;;  %v8479_v34 = vld [vmem:[#allocation38_spill] sm:$0xff]  ;;  %v8480_v28 = vld [vmem:[#allocation27_spill] sm:$0xff]  ;;  %v3305_v37 = vrot.slane %v8482_v60, %v8429_v54 }
 0x3aa   :  { %v7678_v2 = vpack.c.bf16 %v3965_v44, %v3961_v47  ;;  %v3686_v32 = vadd.f32 %v3253_v52, %v8477_v0  ;;  %v3273_v15 = vrot.slane %v7666_v5, %v8429_v54  ;;  %v3269_v50 = vrot.slane %v7666_v5, %v8430_v53  ;;  %v8481_v0 = vld [vmem:[#allocation37_spill] sm:$0xff] }
 0x3ab   :  { %v3832_v39 = vadd.f32 %v7323_v43, %v3682_v9  ;;  %v3289_v35 = vrot.slane %v7670_v46, %v8429_v54  ;;  %v3285_v25 = vrot.slane %v7670_v46, %v8430_v53  ;;  %v3301_v49 = vrot.slane %v8482_v60, %v8430_v53 }
 0x3ac   :  { %v2531_v7 = vpop.f32.mrb[48].mxu0  ;;  %v3836_v48 = vadd.f32 %v7323_v43, %v3686_v32  ;;  %v3691_v10 = vadd.f32 %v3273_v15, %v8478_v55  ;;  %v3690_v9 = vadd.f32 %v3269_v50, %v8480_v28 }
 0x3ad   :  { %v3960_v29 = vmax.f32 %v3832_v39, 0.0  ;;  %v3695_v47 = vadd.f32 %v3289_v35, %v8479_v34  ;;  %v3620_v44 = vadd.f32 %v2989_v31, %v2531_v7  ;;  %v2533_v52 = vpop.f32.mrb[49].mxu0  ;;  %v3694_v16 = vadd.f32 %v3285_v25, %v8481_v0  ;;  %4424 = vmatmul.mubr.bf16.gmra.mrb[148].mxu1 %v7597_v36  ;;  %v8483_v35 = vld [vmem:[#allocation62_spill] sm:$0xff]  ;;  %v8484_v34 = vld [vmem:[#allocation63_spill] sm:$0xff]  ;;  %v8485_v0 = vld [vmem:[#allocation41_spill] sm:$0xff] }
 0x3ae   :  { %v3621_v32 = vadd.f32 %v2993_v27, %v2533_v52  ;;  %v2535_v39 = vpop.f32.mrb[50].mxu0  ;;  %v3964_v17 = vmax.f32 %v3836_v48, 0.0  ;;  %v3841_v15 = vadd.f32 %v7320_v24, %v3691_v10  ;;  %4431 = vmatprep.mubr.bf16.mxu1 %v7604_v12  ;;  %v3840_v55 = vadd.f32 %v7323_v43, %v3690_v9 }
 0x3af   :  { %v3845_v31 = vadd.f32 %v7320_v24, %v3695_v47  ;;  %v3770_v50 = vadd.f32 %v8483_v35, %v3620_v44  ;;  %v3624_v25 = vadd.f32 %v3005_v40, %v2535_v39  ;;  %v2537_v7 = vpop.f32.mrb[51].mxu0  ;;  %v3844_v36 = vadd.f32 %v7323_v43, %v3694_v16 }
 0x3b0   :  { %v3771_v28 = vadd.f32 %v8484_v34, %v3621_v32  ;;  %v3625_v59 = vadd.f32 %v3009_v51, %v2537_v7  ;;  %v7712_v27 = vpack.c.bf16 %v3964_v17, %v3960_v29  ;;  %v3969_v48 = vmax.f32 %v3841_v15, 0.0  ;;  %v8486_v7 = vld [vmem:[#allocation43_spill] sm:$0xff] }
 0x3b1   :  { %v3774_v10 = vadd.f32 %v8483_v35, %v3624_v25  ;;  %v3069_v47 = vrot.slane %v7401_v58, %v8461_v19  ;;  %v3973_v12 = vmax.f32 %v3845_v31, 0.0  ;;  %v3968_v52 = vmax.f32 %v3840_v55, 0.0 }
 0x3b2   :  { %v3775_v40 = vadd.f32 %v8484_v34, %v3625_v59  ;;  %v3972_v9 = vmax.f32 %v3844_v36, 0.0  ;;  %v3321_v16 = vrot.slane %v7558_v21, %v8429_v54  ;;  %v3898_v51 = vmax.f32 %v3770_v50, 0.0 }
 0x3b3   :  { %v3902_v17 = vmax.f32 %v3774_v10, 0.0  ;;  %v7722_v29 = vpack.c.bf16 %v3973_v12, %v3969_v48  ;;  %v3699_v32 = vadd.f32 %v3305_v37, %v8485_v0  ;;  %v3899_v39 = vmax.f32 %v3771_v28, 0.0 }
 0x3b4   :  { %v3903_v15 = vmax.f32 %v3775_v40, 0.0  ;;  %v2541_v25 = vpop.f32.mrb[52].mxu0  ;;  %v7725_v31 = vpack.c.bf16 %v3972_v9, %v3968_v52  ;;  %v3703_v55 = vadd.f32 %v3321_v16, %v8486_v7  ;;  %v3085_v50 = vrot.slane %v7477_v45, %v8461_v19 }
 0x3b5   :  { %v4090_v59 = vpack.c.bf16 %v3902_v17, %v3898_v51  ;;  %v3628_v36 = vadd.f32 %v3021_v20, %v2541_v25  ;;  %v2543_v44 = vpop.f32.mrb[53].mxu0  ;;  %v3849_v48 = vadd.f32 %v7320_v24, %v3699_v32  ;;  %4432 = vmatmul.mubr.bf16.gmra.mrb[152].mxu1 %v7645_v30  ;;  %v3089_v12 = vrot.slane %v7477_v45, %v8462_v18 }
 0x3b6   :  { %v3629_v37 = vadd.f32 %v3025_v63, %v2543_v44  ;;  %v2545_v28 = vpop.f32.mrb[54].mxu0  ;;  %v4091_v10 = vpack.c.bf16 %v3903_v15, %v3899_v39  ;;  %v3853_v52 = vadd.f32 %v7320_v24, %v3703_v55  ;;  %4439 = vmatprep.mubr.bf16.mxu1 %v7659_v26  ;;  %v8487_v40 = vrot.slane %v8476_v61, %v8461_v19  ;;  %v8489_v39 = vld [vmem:[#allocation28_spill] sm:$0xff] }
 0x3b7   :  { %v3778_v20 = vadd.f32 %v8483_v35, %v3628_v36  ;;  %v2547_v30 = vpop.f32.mrb[55].mxu0  ;;  %v3977_v16 = vmax.f32 %v3849_v48, 0.0  ;;  %v8488_v44 = vrot.slane %v8476_v61, %v8462_v18  ;;  %v3317_v26 = vrot.slane %v7558_v21, %v8430_v53  ;;  %v8490_v36 = vld [vmem:[#allocation42_spill] sm:$0xff] }
 0x3b8   :  { %v3632_v9 = vadd.f32 %v8487_v40, %v2545_v28  ;;  %v3779_v63 = vadd.f32 %v8484_v34, %v3629_v37  ;;  %4544 = vmatprep.mubr.bf16.mxu0 %v4091_v10  ;;  %v3981_v17 = vmax.f32 %v3853_v52, 0.0  ;;  %v3101_v32 = vrot.slane %v7481_v4, %v8461_v19 }
 0x3b9   :  { %v3633_v51 = vadd.f32 %v8488_v44, %v2547_v30  ;;  %4545 = vmatmul.mubr.bf16.vlgmr.msra.gmra.mrb[112].mxu0 %v4090_v59  ;;  %v3698_v15 = vadd.f32 %v3301_v49, %v8489_v39  ;;  %v7760_v25 = vcombine.high %v8482_v60, %v8482_v60  ;;  %v3906_v7 = vmax.f32 %v3778_v20, 0.0 }
 0x3ba   :  { %v3782_v0 = vadd.f32 %v8483_v35, %v3632_v9  ;;  %v7763_v55 = vpack.c.bf16 %v3981_v17, %v3977_v16  ;;  %v3702_v48 = vadd.f32 %v3317_v26, %v8490_v36  ;;  %v7769_v59 = vcombine.high %v7558_v21, %v7558_v21  ;;  %v8493_v36 = vld [vmem:[#allocation30_spill] sm:$0xff] }
 0x3bb   :  { %v3783_v61 = vadd.f32 %v8484_v34, %v3633_v51  ;;  %v3848_v28 = vadd.f32 %v7323_v43, %v3698_v15  ;;  %v3337_v10 = vrot.slane %v7760_v25, %v8429_v54  ;;  %v3907_v52 = vmax.f32 %v3779_v63, 0.0 }
 0x3bc   :  { %v3910_v37 = vmax.f32 %v3782_v0, 0.0  ;;  %v2551_v9 = vpop.f32.mrb[56].mxu0  ;;  %v3105_v20 = vrot.slane %v7481_v4, %v8462_v18  ;;  %v3852_v30 = vadd.f32 %v7323_v43, %v3702_v48  ;;  %v8491_v16 = vrot.slane %v7398_v56, %v8461_v19 }
 0x3bd   :  { %v3911_v40 = vmax.f32 %v3783_v61, 0.0  ;;  %v2553_v44 = vpop.f32.mrb[57].mxu0  ;;  %v3976_v17 = vmax.f32 %v3848_v28, 0.0  ;;  %v3353_v26 = vrot.slane %v7769_v59, %v8429_v54  ;;  %4440 = vmatmul.mubr.bf16.gmra.mrb[156].mxu1 %v7676_v1  ;;  %v8492_v63 = vrot.slane %v7398_v56, %v8462_v18  ;;  %v8494_v28 = vld [vmem:[#allocation45_spill] sm:$0xff] }
 0x3be   :  { %v3636_v49 = vadd.f32 %v8491_v16, %v2551_v9  ;;  %v4094_v51 = vpack.c.bf16 %v3910_v37, %v3906_v7  ;;  %v2555_v39 = vpop.f32.mrb[58].mxu0  ;;  %v3980_v61 = vmax.f32 %v3852_v30, 0.0  ;;  %v3707_v48 = vadd.f32 %v3337_v10, %v8493_v36  ;;  %4447 = vmatprep.mubr.bf16.mxu1 %v7678_v2 }
 0x3bf   :  { %v3637_v0 = vadd.f32 %v8492_v63, %v2553_v44  ;;  %v4095_v15 = vpack.c.bf16 %v3911_v40, %v3907_v52  ;;  %v3640_v7 = vadd.f32 %v3069_v47, %v2555_v39  ;;  %v2557_v37 = vpop.f32.mrb[59].mxu0  ;;  %v3117_v1 = vrot.slane %v7404_v3, %v8461_v19 }
 0x3c0   :  { %v3786_v9 = vadd.f32 %v8483_v35, %v3636_v49  ;;  %v3711_v56 = vadd.f32 %v3353_v26, %v8494_v28  ;;  %v8495_v52 = vrot.slane %v7401_v58, %v8462_v18  ;;  %v7798_v2 = vpack.c.bf16 %v3980_v61, %v3976_v17 }
 0x3c1   :  { %v3787_v16 = vadd.f32 %v8484_v34, %v3637_v0  ;;  %4552 = vmatprep.mubr.bf16.mxu0 %v4095_v15  ;;  %v3857_v40 = vadd.f32 %v7320_v24, %v3707_v48  ;;  %v3790_v30 = vadd.f32 %v8483_v35, %v3640_v7  ;;  %v3121_v47 = vrot.slane %v7404_v3, %v8462_v18  ;;  %v8496_v7 = vld [vmem:[#allocation29_spill] sm:$0xff] }
 0x3c2   :  { %v3641_v10 = vadd.f32 %v8495_v52, %v2557_v37  ;;  %4553 = vmatmul.mubr.bf16.gmra.mrb[116].mxu0 %v4094_v51  ;;  %v3861_v44 = vadd.f32 %v7320_v24, %v3711_v56  ;;  %v3914_v26 = vmax.f32 %v3786_v9, 0.0  ;;  %v3333_v17 = vrot.slane %v7760_v25, %v8430_v53 }
 0x3c3   :  { %v3985_v63 = vmax.f32 %v3857_v40, 0.0  ;;  %v3918_v0 = vmax.f32 %v3790_v30, 0.0  ;;  %v3349_v51 = vrot.slane %v7769_v59, %v8430_v53  ;;  %v3369_v15 = vrot.slane %v7564_v42, %v8429_v54  ;;  %v8497_v40 = vld [vmem:[#allocation44_spill] sm:$0xff] }
 0x3c4   :  { %v3791_v58 = vadd.f32 %v8484_v34, %v3641_v10  ;;  %v3989_v39 = vmax.f32 %v3861_v44, 0.0  ;;  %v3915_v61 = vmax.f32 %v3787_v16, 0.0  ;;  %v2561_v48 = vpop.f32.mrb[60].mxu0  ;;  %v3706_v37 = vadd.f32 %v3333_v17, %v8496_v7  ;;  %v8498_v7 = vld [vmem:[#allocation47_spill] sm:$0xff] }
 0x3c5   :  { %v3385_v9 = vrot.slane %v7595_v38, %v8429_v54  ;;  %v3644_v28 = vadd.f32 %v3085_v50, %v2561_v48  ;;  %v2563_v56 = vpop.f32.mrb[61].mxu0  ;;  %v4098_v52 = vpack.c.bf16 %v3918_v0, %v3914_v26  ;;  %v3710_v30 = vadd.f32 %v3349_v51, %v8497_v40  ;;  %4448 = vmatmul.mubr.bf16.gmra.mrb[160].mxu1 %v7712_v27  ;;  %v8499_v0 = vld [vmem:[#allocation49_spill] sm:$0xff] }
 0x3c6   :  { %v3919_v36 = vmax.f32 %v3791_v58, 0.0  ;;  %v7820_v10 = vpack.c.bf16 %v3989_v39, %v3985_v63  ;;  %v3645_v16 = vadd.f32 %v3089_v12, %v2563_v56  ;;  %v2565_v44 = vpop.f32.mrb[62].mxu0  ;;  %v3856_v17 = vadd.f32 %v7323_v43, %v3706_v37  ;;  %4455 = vmatprep.mubr.bf16.mxu1 %v7722_v29 }
 0x3c7   :  { %v3715_v49 = vadd.f32 %v3369_v15, %v8498_v7  ;;  %v3794_v50 = vadd.f32 %v8483_v35, %v3644_v28  ;;  %v3648_v26 = vadd.f32 %v3101_v32, %v2565_v44  ;;  %v2567_v63 = vpop.f32.mrb[63].mxu0  ;;  %v3860_v27 = vadd.f32 %v7323_v43, %v3710_v30 }
 0x3c8   :  { %v4099_v58 = vpack.c.bf16 %v3919_v36, %v3915_v61  ;;  %v3719_v45 = vadd.f32 %v3385_v9, %v8499_v0  ;;  %v3795_v12 = vadd.f32 %v8484_v34, %v3645_v16  ;;  %v3649_v39 = vadd.f32 %v3105_v20, %v2567_v63  ;;  %v8500_v0 = vld [vmem:[#allocation46_spill] sm:$0xff] }
 0x3c9   :  { %v3984_v51 = vmax.f32 %v3856_v17, 0.0  ;;  %v3865_v15 = vadd.f32 %v7320_v24, %v3715_v49  ;;  %v3798_v29 = vadd.f32 %v8483_v35, %v3648_v26  ;;  %v3137_v61 = vrot.slane %v7420_v8, %v8462_v18 }
 0x3ca   :  { %4560 = vmatprep.mubr.bf16.mxu0 %v4099_v58  ;;  %v3988_v4 = vmax.f32 %v3860_v27, 0.0  ;;  %v3869_v32 = vadd.f32 %v7320_v24, %v3719_v45  ;;  %v3799_v36 = vadd.f32 %v8484_v34, %v3649_v39  ;;  %v3149_v48 = vrot.slane %v7521_v22, %v8461_v19 }
 0x3cb   :  { %4561 = vmatmul.mubr.bf16.gmra.mrb[120].mxu0 %v4098_v52  ;;  %v3153_v20 = vrot.slane %v7521_v22, %v8462_v18  ;;  %v3993_v37 = vmax.f32 %v3865_v15, 0.0  ;;  %v3922_v9 = vmax.f32 %v3794_v50, 0.0  ;;  %v3926_v49 = vmax.f32 %v3798_v29, 0.0 }
 0x3cc   :  { %v7847_v28 = vpack.c.bf16 %v3988_v4, %v3984_v51  ;;  %v3997_v56 = vmax.f32 %v3869_v32, 0.0  ;;  %v3923_v52 = vmax.f32 %v3795_v12, 0.0  ;;  %v3927_v40 = vmax.f32 %v3799_v36, 0.0  ;;  %v2571_v30 = vpop.f32.mrb[64].mxu0  ;;  %v8501_v12 = vld [vmem:[#allocation48_spill] sm:$0xff] }
 0x3cd   :  { %v3365_v16 = vrot.slane %v7564_v42, %v8430_v53  ;;  %v3381_v44 = vrot.slane %v7595_v38, %v8430_v53  ;;  %v3652_v58 = vadd.f32 %v3117_v1, %v2571_v30  ;;  %v2573_v22 = vpop.f32.mrb[65].mxu0  ;;  %v4102_v17 = vpack.c.bf16 %v3926_v49, %v3922_v9  ;;  %4456 = vmatmul.mubr.bf16.gmra.mrb[164].mxu1 %v7725_v31  ;;  %v8503_v9 = vld [vmem:[#allocation51_spill] sm:$0xff] }
 0x3ce   :  { %v7856_v7 = vpack.c.bf16 %v3997_v56, %v3993_v37  ;;  %v7860_v50 = vcombine.high %v7564_v42, %v7564_v42  ;;  %v3653_v26 = vadd.f32 %v3121_v47, %v2573_v22  ;;  %v2575_v63 = vpop.f32.mrb[66].mxu0  ;;  %v4103_v27 = vpack.c.bf16 %v3927_v40, %v3923_v52  ;;  %4463 = vmatprep.mubr.bf16.mxu1 %v7763_v55 }
 0x3cf   :  { %v3714_v45 = vadd.f32 %v3365_v16, %v8500_v0  ;;  %v3718_v39 = vadd.f32 %v3381_v44, %v8501_v12  ;;  %v3802_v3 = vadd.f32 %v8483_v35, %v3652_v58  ;;  %v8502_v1 = vrot.slane %v7420_v8, %v8461_v19  ;;  %v2577_v15 = vpop.f32.mrb[67].mxu0  ;;  %v8504_v44 = vld [vmem:[#allocation53_spill] sm:$0xff] }
 0x3d0   :  { %v7872_v29 = vcombine.high %v7595_v38, %v7595_v38  ;;  %v3401_v31 = vrot.slane %v7860_v50, %v8429_v54  ;;  %v3803_v47 = vadd.f32 %v8484_v34, %v3653_v26  ;;  %v3657_v4 = vadd.f32 %v3137_v61, %v2577_v15  ;;  %4568 = vmatprep.mubr.bf16.mxu0 %v4103_v27 }
 0x3d1   :  { %v3656_v51 = vadd.f32 %v8502_v1, %v2575_v63  ;;  %v3864_v55 = vadd.f32 %v7323_v43, %v3714_v45  ;;  %v3868_v32 = vadd.f32 %v7323_v43, %v3718_v39  ;;  %v3165_v8 = vrot.slane %v7525_v33, %v8461_v19 }
 0x3d2   :  { %v3417_v37 = vrot.slane %v7872_v29, %v8429_v54  ;;  %v3723_v49 = vadd.f32 %v3401_v31, %v8503_v9  ;;  %v3807_v56 = vadd.f32 %v8484_v34, %v3657_v4  ;;  %v3169_v61 = vrot.slane %v7525_v33, %v8462_v18 }
 0x3d3   :  { %v3806_v36 = vadd.f32 %v8483_v35, %v3656_v51  ;;  %4569 = vmatmul.mubr.bf16.gmra.mrb[124].mxu0 %v4102_v17  ;;  %v3992_v52 = vmax.f32 %v3864_v55, 0.0  ;;  %v3996_v40 = vmax.f32 %v3868_v32, 0.0  ;;  %v3930_v30 = vmax.f32 %v3802_v3, 0.0 }
 0x3d4   :  { %v3727_v58 = vadd.f32 %v3417_v37, %v8504_v44  ;;  %v3873_v22 = vadd.f32 %v7320_v24, %v3723_v49  ;;  %v3931_v17 = vmax.f32 %v3803_v47, 0.0  ;;  %v3935_v26 = vmax.f32 %v3807_v56, 0.0  ;;  %v2581_v63 = vpop.f32.mrb[68].mxu0  ;;  %v8505_v37 = vld [vmem:[#allocation50_spill] sm:$0xff]  ;;  %v8506_v56 = vld [vmem:[#allocation52_spill] sm:$0xff] }
 0x3d5   :  { %v3934_v16 = vmax.f32 %v3806_v36, 0.0  ;;  %v3181_v27 = vrot.slane %v7407_v6, %v8461_v19  ;;  %v7892_v0 = vpack.c.bf16 %v3996_v40, %v3992_v52  ;;  %v3660_v45 = vadd.f32 %v3149_v48, %v2581_v63  ;;  %v2583_v12 = vpop.f32.mrb[69].mxu0  ;;  %4464 = vmatmul.mubr.bf16.gmra.mrb[168].mxu1 %v7798_v2 }
 0x3d6   :  { %v3877_v33 = vadd.f32 %v7320_v24, %v3727_v58  ;;  %v4001_v1 = vmax.f32 %v3873_v22, 0.0  ;;  %v3661_v3 = vadd.f32 %v3153_v20, %v2583_v12  ;;  %v2585_v51 = vpop.f32.mrb[70].mxu0  ;;  %v4107_v15 = vpack.c.bf16 %v3935_v26, %v3931_v17  ;;  %4471 = vmatprep.mubr.bf16.mxu1 %v7820_v10  ;;  %v8507_v17 = vld [vmem:[#allocation55_spill] sm:$0xff] }
 0x3d7   :  { %v4106_v39 = vpack.c.bf16 %v3934_v16, %v3930_v30  ;;  %v3185_v31 = vrot.slane %v7407_v6, %v8462_v18  ;;  %v3397_v47 = vrot.slane %v7860_v50, %v8430_v53  ;;  %v3810_v48 = vadd.f32 %v8483_v35, %v3660_v45  ;;  %v2587_v55 = vpop.f32.mrb[71].mxu0 }
 0x3d8   :  { %v3664_v4 = vadd.f32 %v3165_v8, %v2585_v51  ;;  %v4005_v32 = vmax.f32 %v3877_v33, 0.0  ;;  %v3413_v36 = vrot.slane %v7872_v29, %v8430_v53  ;;  %v3811_v2 = vadd.f32 %v8484_v34, %v3661_v3  ;;  %4576 = vmatprep.mubr.bf16.mxu0 %v4107_v15  ;;  %v8508_v33 = vld [vmem:[#allocation57_spill] sm:$0xff] }
 0x3d9   :  { %v3665_v20 = vadd.f32 %v3169_v61, %v2587_v55  ;;  %v3722_v9 = vadd.f32 %v3397_v47, %v8505_v37  ;;  %v3433_v6 = vrot.slane %v7578_v23, %v8429_v54  ;;  %v3197_v10 = vrot.slane %v7423_v41, %v8461_v19 }
 0x3da   :  { %v3814_v49 = vadd.f32 %v8483_v35, %v3664_v4  ;;  %v7911_v8 = vpack.c.bf16 %v4005_v32, %v4001_v1  ;;  %v3726_v52 = vadd.f32 %v3413_v36, %v8506_v56  ;;  %v3201_v61 = vrot.slane %v7423_v41, %v8462_v18 }
 0x3db   :  { %4577 = vmatmul.mubr.bf16.gmra.mrb[128].mxu0 %v4106_v39  ;;  %v3815_v40 = vadd.f32 %v8484_v34, %v3665_v20  ;;  %v3872_v30 = vadd.f32 %v7323_v43, %v3722_v9  ;;  %v3449_v16 = vrot.slane %v7614_v11, %v8429_v54  ;;  %v3938_v44 = vmax.f32 %v3810_v48, 0.0 }
 0x3dc   :  { %v3942_v58 = vmax.f32 %v3814_v49, 0.0  ;;  %v3876_v22 = vadd.f32 %v7323_v43, %v3726_v52  ;;  %v3731_v26 = vadd.f32 %v3433_v6, %v8507_v17  ;;  %v3939_v63 = vmax.f32 %v3811_v2, 0.0  ;;  %v2591_v12 = vpop.f32.mrb[72].mxu0 }
 0x3dd   :  { %v3943_v45 = vmax.f32 %v3815_v40, 0.0  ;;  %v4000_v39 = vmax.f32 %v3872_v30, 0.0  ;;  %v3735_v1 = vadd.f32 %v3449_v16, %v8508_v33  ;;  %v3668_v3 = vadd.f32 %v3181_v27, %v2591_v12  ;;  %v2593_v51 = vpop.f32.mrb[73].mxu0  ;;  %4472 = vmatmul.mubr.bf16.gmra.mrb[172].mxu1 %v7847_v28 }
 0x3de   :  { %v4110_v41 = vpack.c.bf16 %v3942_v58, %v3938_v44  ;;  %v4004_v15 = vmax.f32 %v3876_v22, 0.0  ;;  %v3881_v47 = vadd.f32 %v7320_v24, %v3731_v26  ;;  %v3669_v48 = vadd.f32 %v3185_v31, %v2593_v51  ;;  %v2595_v4 = vpop.f32.mrb[74].mxu0  ;;  %4479 = vmatprep.mubr.bf16.mxu1 %v7856_v7  ;;  %v8509_v44 = vld [vmem:[#allocation54_spill] sm:$0xff]  ;;  %v8510_v22 = vld [vmem:[#allocation56_spill] sm:$0xff] }
 0x3df   :  { %v4111_v55 = vpack.c.bf16 %v3943_v45, %v3939_v63  ;;  %v3213_v32 = vrot.slane %v7588_v57, %v8461_v19  ;;  %v3885_v36 = vadd.f32 %v7320_v24, %v3735_v1  ;;  %v3818_v2 = vadd.f32 %v8483_v35, %v3668_v3  ;;  %v2597_v20 = vpop.f32.mrb[75].mxu0 }
 0x3e0   :  { %v3672_v27 = vadd.f32 %v3197_v10, %v2595_v4  ;;  %v7930_v37 = vpack.c.bf16 %v4004_v15, %v4000_v39  ;;  %v4009_v9 = vmax.f32 %v3881_v47, 0.0  ;;  %v3819_v6 = vadd.f32 %v8484_v34, %v3669_v48 }
 0x3e1   :  { %v3673_v28 = vadd.f32 %v3201_v61, %v2597_v20  ;;  %4584 = vmatprep.mubr.bf16.mxu0 %v4111_v55  ;;  %v3217_v31 = vrot.slane %v7588_v57, %v8462_v18  ;;  %v4013_v49 = vmax.f32 %v3885_v36, 0.0  ;;  %v3229_v7 = vrot.slane %v7601_v14, %v8461_v19  ;;  %v8511_v36 = vld [vmem:[#allocation59_spill] sm:$0xff] }
 0x3e2   :  { %v3822_v56 = vadd.f32 %v8483_v35, %v3672_v27  ;;  %v3429_v10 = vrot.slane %v7578_v23, %v8430_v53  ;;  %v3445_v52 = vrot.slane %v7614_v11, %v8430_v53  ;;  %v3946_v40 = vmax.f32 %v3818_v2, 0.0 }
 0x3e3   :  { %4585 = vmatmul.mubr.bf16.gmra.mrb[132].mxu0 %v4110_v41  ;;  %v3823_v61 = vadd.f32 %v8484_v34, %v3673_v28  ;;  %v4145_v30 = vpack.c.bf16 %v4013_v49, %v4009_v9  ;;  %v7945_v57 = vcombine.high %v7578_v23, %v7578_v23  ;;  %v7951_v26 = vcombine.high %v7614_v11, %v7614_v11 }
 0x3e4   :  { %v3950_v16 = vmax.f32 %v3822_v56, 0.0  ;;  %v3730_v58 = vadd.f32 %v3429_v10, %v8509_v44  ;;  %v3734_v17 = vadd.f32 %v3445_v52, %v8510_v22  ;;  %v3947_v63 = vmax.f32 %v3819_v6, 0.0  ;;  %v2601_v12 = vpop.f32.mrb[76].mxu0 }
 0x3e5   :  { %v3951_v45 = vmax.f32 %v3823_v61, 0.0  ;;  %v3233_v39 = vrot.slane %v7601_v14, %v8462_v18  ;;  %v3465_v33 = vrot.slane %v7945_v57, %v8429_v54  ;;  %v3676_v1 = vadd.f32 %v3213_v32, %v2601_v12  ;;  %v2603_v3 = vpop.f32.mrb[77].mxu0  ;;  %4480 = vmatmul.mubr.bf16.gmra.mrb[176].mxu1 %v7892_v0  ;;  %v8512_v0 = vld [vmem:[#allocation61_spill] sm:$0xff] }
 0x3e6   :  { %v4114_v51 = vpack.c.bf16 %v3950_v16, %v3946_v40  ;;  %v3880_v41 = vadd.f32 %v7323_v43, %v3730_v58  ;;  %v3884_v15 = vadd.f32 %v7323_v43, %v3734_v17  ;;  %v3677_v47 = vadd.f32 %v3217_v31, %v2603_v3  ;;  %v2605_v48 = vpop.f32.mrb[78].mxu0  ;;  %4487 = vmatprep.mubr.bf16.mxu1 %v7911_v8  ;;  %v8514_v3 = vld [vmem:[#allocation60_spill] sm:$0xff] }
 0x3e7   :  { %v4115_v4 = vpack.c.bf16 %v3951_v45, %v3947_v63  ;;  %v3481_v55 = vrot.slane %v7951_v26, %v8429_v54  ;;  %v3739_v14 = vadd.f32 %v3465_v33, %v8511_v36  ;;  %v3826_v32 = vadd.f32 %v8483_v35, %v3676_v1  ;;  %v2607_v27 = vpop.f32.mrb[79].mxu0 }
 0x3e8   :  { %v3680_v2 = vadd.f32 %v3229_v7, %v2605_v48  ;;  %v4008_v20 = vmax.f32 %v3880_v41, 0.0  ;;  %v4012_v9 = vmax.f32 %v3884_v15, 0.0  ;;  %v3827_v6 = vadd.f32 %v8484_v34, %v3677_v47 }
 0x3e9   :  { %v3681_v28 = vadd.f32 %v3233_v39, %v2607_v27  ;;  %4592 = vmatprep.mubr.bf16.mxu0 %v4115_v4  ;;  %v3743_v31 = vadd.f32 %v3481_v55, %v8512_v0  ;;  %v3889_v49 = vadd.f32 %v7320_v24, %v3739_v14  ;;  %v3245_v8 = vrot.slane %v8466_v13, %v8461_v19 }
 0x3ea   :  { %v3830_v54 = vadd.f32 %v8483_v35, %v3680_v2  ;;  %v4144_v56 = vpack.c.bf16 %v4012_v9, %v4008_v20  ;;  %v3249_v10 = vrot.slane %v8466_v13, %v8462_v18  ;;  %v3954_v61 = vmax.f32 %v3826_v32, 0.0 }
 0x3eb   :  { %4593 = vmatmul.mubr.bf16.gmra.mrb[136].mxu0 %v4114_v51  ;;  %v3831_v7 = vadd.f32 %v8484_v34, %v3681_v28  ;;  %v3893_v52 = vadd.f32 %v7320_v24, %v3743_v31  ;;  %v4017_v40 = vmax.f32 %v3889_v49, 0.0  ;;  %v3461_v44 = vrot.slane %v7945_v57, %v8430_v53  ;;  %v8513_v24 = vld [vmem:[#allocation58_spill] sm:$0xff] }
 0x3ec   :  { %v3958_v16 = vmax.f32 %v3830_v54, 0.0  ;;  %v3477_v58 = vrot.slane %v7951_v26, %v8430_v53  ;;  %v3955_v22 = vmax.f32 %v3827_v6, 0.0  ;;  %v2611_v63 = vpop.f32.mrb[80].mxu0  ;;  %v3261_v45 = vrot.slane %v7543_v62, %v8461_v19 }
 0x3ed   :  { %v3959_v17 = vmax.f32 %v3831_v7, 0.0  ;;  %v4021_v12 = vmax.f32 %v3893_v52, 0.0  ;;  %v3684_v39 = vadd.f32 %v3245_v8, %v2611_v63  ;;  %v2613_v13 = vpop.f32.mrb[81].mxu0  ;;  %v3738_v1 = vadd.f32 %v3461_v44, %v8513_v24  ;;  %4488 = vmatmul.mubr.bf16.gmra.mrb[180].mxu1 %v7930_v37 }
 0x3ee   :  { %v4118_v33 = vpack.c.bf16 %v3958_v16, %v3954_v61  ;;  %v3742_v51 = vadd.f32 %v3477_v58, %v8514_v3  ;;  %v3685_v41 = vadd.f32 %v3249_v10, %v2613_v13  ;;  %v2615_v15 = vpop.f32.mrb[82].mxu0  ;;  %v3265_v53 = vrot.slane %v7543_v62, %v8462_v18  ;;  %4495 = vmatprep.mubr.bf16.mxu1 %v4145_v30 }
 0x3ef   :  { %v4119_v47 = vpack.c.bf16 %v3959_v17, %v3955_v22  ;;  %v4149_v48 = vpack.c.bf16 %v4021_v12, %v4017_v40  ;;  %v3834_v4 = vadd.f32 %v8483_v35, %v3684_v39  ;;  %v3688_v55 = vadd.f32 %v3261_v45, %v2615_v15  ;;  %v2617_v36 = vpop.f32.mrb[83].mxu0 }
 0x3f0   :  { %v3888_v14 = vadd.f32 %v7323_v43, %v3738_v1  ;;  %v3892_v32 = vadd.f32 %v7323_v43, %v3742_v51  ;;  %v3835_v2 = vadd.f32 %v8484_v34, %v3685_v41  ;;  %v3689_v27 = vadd.f32 %v3265_v53, %v2617_v36 }
 0x3f1   :  { %4600 = vmatprep.mubr.bf16.mxu0 %v4119_v47  ;;  %v3838_v37 = vadd.f32 %v8483_v35, %v3688_v55  ;;  %v3962_v30 = vmax.f32 %v3834_v4, 0.0  ;;  %v3277_v28 = vrot.slane %v7666_v5, %v8461_v19  ;;  %v3281_v54 = vrot.slane %v7666_v5, %v8462_v18 }
 0x3f2   :  { %v4016_v20 = vmax.f32 %v3888_v14, 0.0  ;;  %v4020_v62 = vmax.f32 %v3892_v32, 0.0  ;;  %v3839_v9 = vadd.f32 %v8484_v34, %v3689_v27  ;;  %v3963_v31 = vmax.f32 %v3835_v2, 0.0 }
 0x3f3   :  { %4601 = vmatmul.mubr.bf16.gmra.mrb[140].mxu0 %v4118_v33  ;;  %v3966_v6 = vmax.f32 %v3838_v37, 0.0  ;;  %v3293_v10 = vrot.slane %v7670_v46, %v8461_v19  ;;  %v3297_v16 = vrot.slane %v7670_v46, %v8462_v18  ;;  %v3309_v46 = vrot.slane %v8482_v60, %v8461_v19 }
 0x3f4   :  { %v4148_v0 = vpack.c.bf16 %v4020_v62, %v4016_v20  ;;  %v3967_v49 = vmax.f32 %v3839_v9, 0.0  ;;  %v2621_v43 = vpop.f32.mrb[84].mxu0  ;;  %v3313_v1 = vrot.slane %v8482_v60, %v8462_v18  ;;  %v3325_v41 = vrot.slane %v7558_v21, %v8461_v19 }
 0x3f5   :  { %v3692_v8 = vadd.f32 %v3277_v28, %v2621_v43  ;;  %v2623_v7 = vpop.f32.mrb[85].mxu0  ;;  %v4122_v52 = vpack.c.bf16 %v3966_v6, %v3962_v30  ;;  %4496 = vmatmul.mubr.bf16.gmra.mrb[184].mxu1 %v4144_v56  ;;  %v3341_v62 = vrot.slane %v7760_v25, %v8461_v19  ;;  %v3345_v6 = vrot.slane %v7760_v25, %v8462_v18 }
 0x3f6   :  { %v3693_v40 = vadd.f32 %v3281_v54, %v2623_v7  ;;  %v2625_v61 = vpop.f32.mrb[86].mxu0  ;;  %v4123_v44 = vpack.c.bf16 %v3967_v49, %v3963_v31  ;;  %4503 = vmatprep.mubr.bf16.mxu1 %v4149_v48  ;;  %v3329_v48 = vrot.slane %v7558_v21, %v8462_v18  ;;  %v3357_v31 = vrot.slane %v7769_v59, %v8461_v19 }
 0x3f7   :  { %v3842_v58 = vadd.f32 %v8483_v35, %v3692_v8  ;;  %v3696_v22 = vadd.f32 %v3293_v10, %v2625_v61  ;;  %v2627_v17 = vpop.f32.mrb[87].mxu0  ;;  %v3361_v8 = vrot.slane %v7769_v59, %v8462_v18 }
 0x3f8   :  { %v3843_v5 = vadd.f32 %v8484_v34, %v3693_v40  ;;  %v3697_v63 = vadd.f32 %v3297_v16, %v2627_v17  ;;  %4608 = vmatprep.mubr.bf16.mxu0 %v4123_v44  ;;  %v3373_v17 = vrot.slane %v7564_v42, %v8461_v19 }
 0x3f9   :  { %v3846_v45 = vadd.f32 %v8483_v35, %v3696_v22  ;;  %v3970_v12 = vmax.f32 %v3842_v58, 0.0 }
 0x3fa   :  { %v3847_v56 = vadd.f32 %v8484_v34, %v3697_v63  ;;  %v3971_v13 = vmax.f32 %v3843_v5, 0.0 }
 0x3fb   :  { %4609 = vmatmul.mubr.bf16.gmra.mrb[144].mxu0 %v4122_v52  ;;  %v3974_v39 = vmax.f32 %v3846_v45, 0.0  ;;  %v3377_v45 = vrot.slane %v7564_v42, %v8462_v18 }
 0x3fc   :  { %v3975_v33 = vmax.f32 %v3847_v56, 0.0  ;;  %v2631_v24 = vpop.f32.mrb[88].mxu0 }
 0x3fd   :  { %v3700_v3 = vadd.f32 %v3309_v46, %v2631_v24  ;;  %v2633_v51 = vpop.f32.mrb[89].mxu0  ;;  %v4126_v15 = vpack.c.bf16 %v3974_v39, %v3970_v12  ;;  %4504 = vmatmul.mubr.bf16.gmra.mrb[188].mxu1 %v4148_v0  ;;  %v3389_v39 = vrot.slane %v7595_v38, %v8461_v19  ;;  %v3393_v24 = vrot.slane %v7595_v38, %v8462_v18 }
 0x3fe   :  { %v3701_v53 = vadd.f32 %v3313_v1, %v2633_v51  ;;  %v2635_v47 = vpop.f32.mrb[90].mxu0  ;;  %v4127_v4 = vpack.c.bf16 %v3975_v33, %v3971_v13 }
 0x3ff   :  { %v3850_v55 = vadd.f32 %v8483_v35, %v3700_v3  ;;  %v3704_v36 = vadd.f32 %v3325_v41, %v2635_v47  ;;  %v2637_v14 = vpop.f32.mrb[91].mxu0 }
 0x400   :  { %v3851_v32 = vadd.f32 %v8484_v34, %v3701_v53  ;;  %v3705_v60 = vadd.f32 %v3329_v48, %v2637_v14  ;;  %4616 = vmatprep.mubr.bf16.mxu0 %v4127_v4 }
 0x401   :  { %v3854_v2 = vadd.f32 %v8483_v35, %v3704_v36  ;;  %v3978_v37 = vmax.f32 %v3850_v55, 0.0  ;;  %v3405_v55 = vrot.slane %v7860_v50, %v8461_v19 }
 0x402   :  { %v3855_v27 = vadd.f32 %v8484_v34, %v3705_v60  ;;  %v3979_v21 = vmax.f32 %v3851_v32, 0.0  ;;  %v3409_v32 = vrot.slane %v7860_v50, %v8462_v18 }
 0x403   :  { %4617 = vmatmul.mubr.bf16.gmra.mrb[148].mxu0 %v4126_v15  ;;  %v3982_v20 = vmax.f32 %v3854_v2, 0.0 }
 0x404   :  { %v3983_v9 = vmax.f32 %v3855_v27, 0.0  ;;  %v2641_v30 = vpop.f32.mrb[92].mxu0  ;;  %v3421_v27 = vrot.slane %v7872_v29, %v8461_v19 }
 0x405   :  { %v3708_v28 = vadd.f32 %v3341_v62, %v2641_v30  ;;  %v2643_v0 = vpop.f32.mrb[93].mxu0  ;;  %v4130_v49 = vpack.c.bf16 %v3982_v20, %v3978_v37 }
 0x406   :  { %v3709_v43 = vadd.f32 %v3345_v6, %v2643_v0  ;;  %v2645_v54 = vpop.f32.mrb[94].mxu0  ;;  %v4131_v7 = vpack.c.bf16 %v3983_v9, %v3979_v21  ;;  %v3425_v21 = vrot.slane %v7872_v29, %v8462_v18 }
 0x407   :  { %v3858_v10 = vadd.f32 %v8483_v35, %v3708_v28  ;;  %v3712_v52 = vadd.f32 %v3357_v31, %v2645_v54  ;;  %v2647_v40 = vpop.f32.mrb[95].mxu0 }
 0x408   :  { %v3859_v61 = vadd.f32 %v8484_v34, %v3709_v43  ;;  %v3713_v16 = vadd.f32 %v3361_v8, %v2647_v40  ;;  %4624 = vmatprep.mubr.bf16.mxu0 %v4131_v7  ;;  %v3437_v8 = vrot.slane %v7578_v23, %v8461_v19 }
 0x409   :  { %v3862_v25 = vadd.f32 %v8483_v35, %v3712_v52  ;;  %v3986_v58 = vmax.f32 %v3858_v10, 0.0  ;;  %v3441_v52 = vrot.slane %v7578_v23, %v8462_v18 }
 0x40a   :  { %v3863_v44 = vadd.f32 %v8484_v34, %v3713_v16  ;;  %v3987_v59 = vmax.f32 %v3859_v61, 0.0  ;;  %v3453_v16 = vrot.slane %v7614_v11, %v8461_v19 }
 0x40b   :  { %4625 = vmatmul.mubr.bf16.gmra.mrb[152].mxu0 %v4130_v49  ;;  %v3990_v22 = vmax.f32 %v3862_v25, 0.0 }
 0x40c   :  { %v3991_v5 = vmax.f32 %v3863_v44, 0.0  ;;  %v2651_v63 = vpop.f32.mrb[96].mxu0 }
 0x40d   :  { %v3716_v56 = vadd.f32 %v3373_v17, %v2651_v63  ;;  %v2653_v12 = vpop.f32.mrb[97].mxu0  ;;  %v4134_v46 = vpack.c.bf16 %v3990_v22, %v3986_v58  ;;  %v3457_v22 = vrot.slane %v7614_v11, %v8462_v18 }
 0x40e   :  { %v3717_v13 = vadd.f32 %v3377_v45, %v2653_v12  ;;  %v2655_v33 = vpop.f32.mrb[98].mxu0  ;;  %v4135_v1 = vpack.c.bf16 %v3991_v5, %v3987_v59 }
 0x40f   :  { %v3866_v3 = vadd.f32 %v8483_v35, %v3716_v56  ;;  %v3720_v51 = vadd.f32 %v3389_v39, %v2655_v33  ;;  %v2657_v41 = vpop.f32.mrb[99].mxu0 }
 0x410   :  { %v3867_v15 = vadd.f32 %v8484_v34, %v3717_v13  ;;  %v3721_v53 = vadd.f32 %v3393_v24, %v2657_v41  ;;  %4632 = vmatprep.mubr.bf16.mxu0 %v4135_v1  ;;  %v3469_v13 = vrot.slane %v7945_v57, %v8461_v19  ;;  %v3473_v1 = vrot.slane %v7945_v57, %v8462_v18 }
 0x411   :  { %v3870_v42 = vadd.f32 %v8483_v35, %v3720_v51  ;;  %v3994_v48 = vmax.f32 %v3866_v3, 0.0 }
 0x412   :  { %v3871_v47 = vadd.f32 %v8484_v34, %v3721_v53  ;;  %v3995_v38 = vmax.f32 %v3867_v15, 0.0  ;;  %v3485_v15 = vrot.slane %v7951_v26, %v8461_v19 }
 0x413   :  { %4633 = vmatmul.mubr.bf16.gmra.mrb[156].mxu0 %v4134_v46  ;;  %v3998_v4 = vmax.f32 %v3870_v42, 0.0 }
 0x414   :  { %v3999_v36 = vmax.f32 %v3871_v47, 0.0  ;;  %v2661_v14 = vpop.f32.mrb[100].mxu0  ;;  %v3489_v47 = vrot.slane %v7951_v26, %v8462_v18 }
 0x415   :  { %v3724_v60 = vadd.f32 %v3405_v55, %v2661_v14  ;;  %v2663_v2 = vpop.f32.mrb[101].mxu0  ;;  %v4138_v37 = vpack.c.bf16 %v3998_v4, %v3994_v48 }
 0x416   :  { %v3725_v20 = vadd.f32 %v3409_v32, %v2663_v2  ;;  %v2665_v62 = vpop.f32.mrb[102].mxu0  ;;  %v4139_v9 = vpack.c.bf16 %v3999_v36, %v3995_v38 }
 0x417   :  { %v3874_v30 = vadd.f32 %v8483_v35, %v3724_v60  ;;  %v3728_v6 = vadd.f32 %v3421_v27, %v2665_v62  ;;  %v2667_v28 = vpop.f32.mrb[103].mxu0 }
 0x418   :  { %v3875_v0 = vadd.f32 %v8484_v34, %v3725_v20  ;;  %v3729_v31 = vadd.f32 %v3425_v21, %v2667_v28  ;;  %4640 = vmatprep.mubr.bf16.mxu0 %v4139_v9 }
 0x419   :  { %v3878_v50 = vadd.f32 %v8483_v35, %v3728_v6  ;;  %v4002_v43 = vmax.f32 %v3874_v30, 0.0 }
 0x41a   :  { %v3879_v49 = vadd.f32 %v8484_v34, %v3729_v31  ;;  %v4003_v29 = vmax.f32 %v3875_v0, 0.0 }
 0x41b   :  { %4641 = vmatmul.mubr.bf16.gmra.mrb[160].mxu0 %v4138_v37  ;;  %v4006_v54 = vmax.f32 %v3878_v50, 0.0 }
 0x41c   :  { %v4007_v7 = vmax.f32 %v3879_v49, 0.0  ;;  %v2671_v10 = vpop.f32.mrb[104].mxu0 }
 0x41d   :  { %v3732_v40 = vadd.f32 %v3437_v8, %v2671_v10  ;;  %v2673_v61 = vpop.f32.mrb[105].mxu0  ;;  %v4142_v25 = vpack.c.bf16 %v4006_v54, %v4002_v43 }
 0x41e   :  { %v3733_v44 = vadd.f32 %v3441_v52, %v2673_v61  ;;  %v2675_v58 = vpop.f32.mrb[106].mxu0  ;;  %v4143_v17 = vpack.c.bf16 %v4007_v7, %v4003_v29 }
 0x41f   :  { %v3882_v59 = vadd.f32 %v8483_v35, %v3732_v40  ;;  %v3736_v5 = vadd.f32 %v3453_v16, %v2675_v58  ;;  %v2677_v63 = vpop.f32.mrb[107].mxu0 }
 0x420   :  { %v3883_v45 = vadd.f32 %v8484_v34, %v3733_v44  ;;  %v3737_v56 = vadd.f32 %v3457_v22, %v2677_v63  ;;  %4648 = vmatprep.mubr.bf16.mxu0 %v4143_v17 }
 0x421   :  { %v3886_v23 = vadd.f32 %v8483_v35, %v3736_v5  ;;  %v4010_v39 = vmax.f32 %v3882_v59, 0.0 }
 0x422   :  { %v3887_v12 = vadd.f32 %v8484_v34, %v3737_v56  ;;  %v4011_v11 = vmax.f32 %v3883_v45, 0.0 }
 0x423   :  { %4649 = vmatmul.mubr.bf16.gmra.mrb[164].mxu0 %v4142_v25  ;;  %v4014_v46 = vmax.f32 %v3886_v23, 0.0 }
 0x424   :  { %v4015_v33 = vmax.f32 %v3887_v12, 0.0  ;;  %v2681_v24 = vpop.f32.mrb[108].mxu0 }
 0x425   :  { %v4146_v3 = vpack.c.bf16 %v4014_v46, %v4010_v39  ;;  %v3740_v51 = vadd.f32 %v3469_v13, %v2681_v24  ;;  %v2683_v41 = vpop.f32.mrb[109].mxu0  ;;  %v8095_v13 = vld [vmem:[%s8282_s9] ss:$0 sm:$0xff]  ;;  %s6039_s9 = smov [#allocation7]  }
 0x426   :  { %v3741_v53 = vadd.f32 %v3473_v1, %v2683_v41  ;;  %v2685_v42 = vpop.f32.mrb[110].mxu0  ;;  %v4147_v48 = vpack.c.bf16 %v4015_v33, %v4011_v11  ;;  %s5104_s21 = sshll.u32 %s6039_s9, 4  ;;  %s5105_s21 = int_to_ptr.vmem [resolvable:$true] %s5104_s21 }
 0x427   :  { %v3890_v4 = vadd.f32 %v8483_v35, %v3740_v51  ;;  %v3744_v55 = vadd.f32 %v3485_v15, %v2685_v42  ;;  %v2687_v38 = vpop.f32.mrb[111].mxu0  ;;  %s6002_s22 = scalar_lea.vmem %s5105_s21, 256  ;;  %p6007_p3 = scmp.lt.s32.totalorder %s5105_s21, %s5105_s21 }
 0x428   :  { %v3891_v36 = vadd.f32 %v8484_v34, %v3741_v53  ;;  %v3745_v14 = vadd.f32 %v3489_v47, %v2687_v38  ;;  %4656 = vmatprep.mubr.bf16.mxu1 %v4147_v48  ;;  %p6003_p2 = scmp.ne.s32.totalorder %s5105_s21, %s6002_s22  ;;  %p6008_p4 = scmp.lt.s32.totalorder %s6002_s22, %s6002_s22 }
 0x429   :  { %v3894_v57 = vadd.f32 %v8483_v35, %v3744_v55  ;;  %4657 = vmatmul.mubr.bf16.vlgmr.msra.gmra.mrb[192].mxu1 %v4146_v3  ;;  %v4018_v19 = vmax.f32 %v3890_v4, 0.0 }
 0x42a   :  { %v3895_v32 = vadd.f32 %v8484_v34, %v3745_v14  ;;  %v4019_v2 = vmax.f32 %v3891_v36, 0.0  ;;  %p6009_p5 = por %p6008_p4, %p6007_p3 }
 0x42b   :  { %v4022_v60 = vmax.f32 %v3894_v57, 0.0 }
 0x42c   :  { %v4023_v27 = vmax.f32 %v3895_v32, 0.0  ;;  %p6010_p6 = pnand %p6009_p5, %p6003_p2 }
 0x42d   :  { %v4150_v37 = vpack.c.bf16 %v4022_v60, %v4018_v19 }
 0x42e   :  { %v4151_v18 = vpack.c.bf16 %v4023_v27, %v4019_v2 }
 0x430   :  { %4664 = vmatprep.mubr.bf16.mxu1 %v4151_v18 }
 0x431   :  { %4665 = vmatmul.mubr.bf16.gmra.mrb[196].mxu1 %v4150_v37 }
 0x458   :  { %v5424_v26 = vpop.f32.mrb[128].mxu1 }
 0x459   :  { %v5425_v20 = vpop.f32.mrb[129].mxu1 }
 0x45a   :  { %v5426_v62 = vadd.f32 %v5425_v20, %v5424_v26  ;;  %v5427_v21 = vpop.f32.mrb[130].mxu1 }
 0x45b   :  { %v5428_v9 = vpop.f32.mrb[131].mxu1 }
 0x45c   :  { %v5429_v30 = vadd.f32 %v5428_v9, %v5427_v21  ;;  %v4386_v41 = vadd.f32 %v5426_v62, %v8095_v13 }
 0x45e   :  { %v4389_v47 = vadd.f32 %v5429_v30, %v8095_v13 }
 0x460   :  { %v5430_v6 = vpop.f32.mrb[132].mxu1 }
 0x461   :  { %v5431_v28 = vpop.f32.mrb[133].mxu1 }
 0x462   :  { %v5432_v35 = vadd.f32 %v5431_v28, %v5430_v6  ;;  %v5433_v0 = vpop.f32.mrb[134].mxu1 }
 0x463   :  { %v5434_v31 = vpop.f32.mrb[135].mxu1 }
 0x464   :  { %v5435_v34 = vadd.f32 %v5434_v31, %v5433_v0  ;;  %v4394_v62 = vadd.f32 %v5432_v35, %v8095_v13 }
 0x466   :  { %v4397_v0 = vadd.f32 %v5435_v34, %v8095_v13 }
 0x468   :  { %v5436_v50 = vpop.f32.mrb[136].mxu1 }
 0x469   :  { %v5437_v49 = vpop.f32.mrb[137].mxu1 }
 0x46a   :  { %v8076_v43 = vadd.f32 %v5437_v49, %v5436_v50  ;;  %v5439_v54 = vpop.f32.mrb[138].mxu1 }
 0x46b   :  { %v5440_v8 = vpop.f32.mrb[139].mxu1 }
 0x46c   :  { %v8078_v29 = vadd.f32 %v5440_v8, %v5439_v54 }
 0x470   :  { %v5442_v7 = vpop.f32.mrb[140].mxu1 }
 0x471   :  { %v5443_v10 = vpop.f32.mrb[141].mxu1 }
 0x472   :  { %v8080_v52 = vadd.f32 %v5443_v10, %v5442_v7  ;;  %v5445_v40 = vpop.f32.mrb[142].mxu1 }
 0x473   :  { %v5446_v61 = vpop.f32.mrb[143].mxu1 }
 0x474   :  { %v8082_v16 = vadd.f32 %v5446_v61, %v5445_v40 }
 0x478   :  { %v5448_v25 = vpop.f32.mrb[144].mxu1 }
 0x479   :  { %v5449_v44 = vpop.f32.mrb[145].mxu1 }
 0x47a   :  { %v8084_v58 = vadd.f32 %v5449_v44, %v5448_v25  ;;  %v5451_v22 = vpop.f32.mrb[146].mxu1 }
 0x47b   :  { %v5452_v17 = vpop.f32.mrb[147].mxu1 }
 0x47c   :  { %v8086_v59 = vadd.f32 %v5452_v17, %v5451_v22 }
 0x480   :  { %v5454_v5 = vpop.f32.mrb[148].mxu1 }
 0x481   :  { %v5455_v63 = vpop.f32.mrb[149].mxu1 }
 0x482   :  { %v8088_v45 = vadd.f32 %v5455_v63, %v5454_v5  ;;  %v5457_v56 = vpop.f32.mrb[150].mxu1 }
 0x483   :  { %v5458_v23 = vpop.f32.mrb[151].mxu1 }
 0x484   :  { %v8090_v12 = vadd.f32 %v5458_v23, %v5457_v56 }
 0x488   :  { %v5460_v39 = vpop.f32.mrb[152].mxu1 }
 0x489   :  { %v5461_v46 = vpop.f32.mrb[153].mxu1 }
 0x48a   :  { %v8097_v11 = vadd.f32 %v5461_v46, %v5460_v39  ;;  %v5463_v33 = vpop.f32.mrb[154].mxu1  ;;  %v4402_v46 = vadd.f32 %v8076_v43, %v8095_v13 }
 0x48b   :  { %v5464_v24 = vpop.f32.mrb[155].mxu1 }
 0x48c   :  { %v5536_v1 = vpop.f32.mrb[112].mxu0  ;;  %v8099_v3 = vadd.f32 %v5464_v24, %v5463_v33 }
 0x48d   :  { %v5537_v51 = vpop.f32.mrb[113].mxu0 }
 0x48e   :  { %v5538_v15 = vadd.f32 %v5537_v51, %v5536_v1  ;;  %v5539_v53 = vpop.f32.mrb[114].mxu0 }
 0x48f   :  { %v5540_v42 = vpop.f32.mrb[115].mxu0 }
 0x490   :  { %v4547_v48 = vadd.f32 %v5538_v15, %v4386_v41  ;;  %v5541_v4 = vadd.f32 %v5540_v42, %v5539_v53  ;;  %v5466_v55 = vpop.f32.mrb[156].mxu1 }
 0x491   :  { %v5467_v36 = vpop.f32.mrb[157].mxu1 }
 0x492   :  { %v4674_v38 = vsel %vm4673_vm10, %v4547_v48, -inf  ;;  %v4550_v14 = vadd.f32 %v5541_v4, %v4389_v47  ;;  %v8104_v32 = vadd.f32 %v5467_v36, %v5466_v55  ;;  %v5469_v19 = vpop.f32.mrb[158].mxu1  ;;  %v4405_v47 = vadd.f32 %v8078_v29, %v8095_v13 }
 0x493   :  { %v4675_v57 = vrot.slane %v4674_v38, 4  ;;  %v5470_v2 = vpop.f32.mrb[159].mxu1 }
 0x494   :  { %v4681_v60 = vsel %vm4673_vm10, %v4550_v14, -inf  ;;  %v8107_v26 = vadd.f32 %v5470_v2, %v5469_v19 }
 0x495   :  { %v5542_v27 = vpop.f32.mrb[116].mxu0  ;;  %v4676_v37 = vmax.f32 %v4674_v38, %v4675_v57  ;;  %v4682_v18 = vrot.slane %v4681_v60, 4 }
 0x496   :  { %v5543_v20 = vpop.f32.mrb[117].mxu0 }
 0x497   :  { %v5544_v21 = vadd.f32 %v5543_v20, %v5542_v27  ;;  %v5545_v9 = vpop.f32.mrb[118].mxu0  ;;  %v4677_v30 = vrot.slane %v4676_v37, 2  ;;  %v4683_v6 = vmax.f32 %v4681_v60, %v4682_v18 }
 0x498   :  { %v5546_v28 = vpop.f32.mrb[119].mxu0  ;;  %v5472_v8 = vpop.f32.mrb[160].mxu1 }
 0x499   :  { %v4555_v31 = vadd.f32 %v5544_v21, %v4394_v62  ;;  %v5547_v50 = vadd.f32 %v5546_v28, %v5545_v9  ;;  %v4678_v49 = vmax.f32 %v4676_v37, %v4677_v30  ;;  %v4684_v54 = vrot.slane %v4683_v6, 2  ;;  %v5473_v10 = vpop.f32.mrb[161].mxu1 }
 0x49a   :  { %v8112_v35 = vadd.f32 %v5473_v10, %v5472_v8  ;;  %v5475_v22 = vpop.f32.mrb[162].mxu1 }
 0x49b   :  { %v4688_v7 = vsel %vm4673_vm10, %v4555_v31, -inf  ;;  %v4558_v40 = vadd.f32 %v5547_v50, %v4397_v0  ;;  %v4679_v61 = vrot.slane %v4678_v49, 1  ;;  %v4685_v25 = vmax.f32 %v4683_v6, %v4684_v54  ;;  %v5476_v5 = vpop.f32.mrb[163].mxu1 }
 0x49c   :  { %v4689_v44 = vrot.slane %v4688_v7, 4  ;;  %v8117_v24 = vadd.f32 %v5476_v5, %v5475_v22  ;;  %v4410_v6 = vadd.f32 %v8080_v52, %v8095_v13 }
 0x49d   :  { %v4695_v17 = vsel %vm4673_vm10, %v4558_v40, -inf  ;;  %v4680_v34 = vmax.f32 %v4678_v49, %v4679_v61  ;;  %v4686_v56 = vrot.slane %v4685_v25, 1 }
 0x49e   :  { %v5548_v63 = vpop.f32.mrb[120].mxu0  ;;  %v4690_v23 = vmax.f32 %v4688_v7, %v4689_v44  ;;  %v4696_v33 = vrot.slane %v4695_v17, 4 }
 0x49f   :  { %v5549_v39 = vpop.f32.mrb[121].mxu0  ;;  %v5359_v41 = vpack.c.bf16 %v4680_v34, %v4680_v34  ;;  %v4687_v15 = vmax.f32 %v4685_v25, %v4686_v56  ;;  %v4413_v56 = vadd.f32 %v8082_v16, %v8095_v13  ;;  %v4418_v16 = vadd.f32 %v8084_v58, %v8095_v13 }
 0x4a0   :  { %v5550_v1 = vadd.f32 %v5549_v39, %v5548_v63  ;;  %v5551_v51 = vpop.f32.mrb[122].mxu0  ;;  %v4691_v53 = vrot.slane %v4690_v23, 2  ;;  %v4697_v48 = vmax.f32 %v4695_v17, %v4696_v33  ;;  %v5478_v14 = vpop.f32.mrb[164].mxu1 }
 0x4a1   :  { %v5552_v42 = vpop.f32.mrb[123].mxu0  ;;  %v5360_v38 = vpack.c.bf16 %v4687_v15, %v4687_v15  ;;  %v5026_v57 = vunpack.c.l.b16 %v5359_v41  ;;  %v5479_v60 = vpop.f32.mrb[165].mxu1 }
 0x4a2   :  { %v4563_v4 = vadd.f32 %v5550_v1, %v4402_v46  ;;  %v5553_v55 = vadd.f32 %v5552_v42, %v5551_v51  ;;  %v4692_v36 = vmax.f32 %v4690_v23, %v4691_v53  ;;  %v4698_v43 = vrot.slane %v4697_v48, 2  ;;  %v5481_v62 = vpop.f32.mrb[166].mxu1 }
 0x4a3   :  { %v5027_v27 = vunpack.c.l.b16 %v5360_v38  ;;  %v8122_v20 = vadd.f32 %v5479_v60, %v5478_v14  ;;  %v5482_v9 = vpop.f32.mrb[167].mxu1 }
 0x4a4   :  { %v4702_v19 = vsel %vm4673_vm10, %v4563_v4, -inf  ;;  %v4566_v2 = vadd.f32 %v5553_v55, %v4405_v47  ;;  %v4693_v37 = vrot.slane %v4692_v36, 1  ;;  %v4699_v21 = vmax.f32 %v4697_v48, %v4698_v43 }
 0x4a5   :  { %v4703_v18 = vrot.slane %v4702_v19, 4  ;;  %v5058_v28 = vsel %vm1391_vm3, %v5027_v27, %v5026_v57  ;;  %v8128_v8 = vadd.f32 %v5482_v9, %v5481_v62 }
 0x4a6   :  { %v4709_v29 = vsel %vm4673_vm10, %v4566_v2, -inf  ;;  %v5554_v30 = vpop.f32.mrb[124].mxu0  ;;  %v4694_v0 = vmax.f32 %v4692_v36, %v4693_v37  ;;  %v4700_v49 = vrot.slane %v4699_v21, 1 }
 0x4a7   :  { %v4704_v31 = vmax.f32 %v4702_v19, %v4703_v18  ;;  %v5555_v50 = vpop.f32.mrb[125].mxu0  ;;  %v4710_v54 = vrot.slane %v4709_v29, 4 }
 0x4a8   :  { %v5556_v7 = vadd.f32 %v5555_v50, %v5554_v30  ;;  %v5557_v10 = vpop.f32.mrb[126].mxu0  ;;  %v5361_v40 = vpack.c.bf16 %v4694_v0, %v4694_v0  ;;  %v4701_v44 = vmax.f32 %v4699_v21, %v4700_v49  ;;  %v5484_v52 = vpop.f32.mrb[168].mxu1 }
 0x4a9   :  { %v4705_v61 = vrot.slane %v4704_v31, 2  ;;  %v5558_v25 = vpop.f32.mrb[127].mxu0  ;;  %v4711_v22 = vmax.f32 %v4709_v29, %v4710_v54  ;;  %v5485_v33 = vpop.f32.mrb[169].mxu1  ;;  %v4421_v29 = vadd.f32 %v8086_v59, %v8095_v13 }
 0x4aa   :  { %v4571_v17 = vadd.f32 %v5556_v7, %v4410_v6  ;;  %v5028_v5 = vunpack.c.l.b16 %v5361_v40  ;;  %v5559_v34 = vadd.f32 %v5558_v25, %v5557_v10  ;;  %v5362_v23 = vpack.c.bf16 %v4701_v44, %v4701_v44  ;;  %v5487_v53 = vpop.f32.mrb[170].mxu1 }
 0x4ab   :  { %v4706_v63 = vmax.f32 %v4704_v31, %v4705_v61  ;;  %v4712_v39 = vrot.slane %v4711_v22, 2  ;;  %v8134_v15 = vadd.f32 %v5485_v33, %v5484_v52  ;;  %v5488_v4 = vpop.f32.mrb[171].mxu1 }
 0x4ac   :  { %v4716_v46 = vsel %vm4673_vm10, %v4571_v17, -inf  ;;  %v5059_v1 = vsel %vm1393_vm4, %v5028_v5, %v5058_v28  ;;  %v5029_v42 = vunpack.c.l.b16 %v5362_v23  ;;  %v4574_v48 = vadd.f32 %v5559_v34, %v4413_v56 }
 0x4ad   :  { %v4707_v51 = vrot.slane %v4706_v63, 1  ;;  %v4717_v41 = vrot.slane %v4716_v46, 4  ;;  %v4713_v47 = vmax.f32 %v4711_v22, %v4712_v39  ;;  %v8138_v14 = vadd.f32 %v5488_v4, %v5487_v53 }
 0x4ae   :  { %v5560_v55 = vpop.f32.mrb[128].mxu0  ;;  %v5060_v43 = vsel %vm1395_vm5, %v5029_v42, %v5059_v1  ;;  %v4723_v60 = vsel %vm4673_vm10, %v4574_v48, -inf }
 0x4af   :  { %v4708_v38 = vmax.f32 %v4706_v63, %v4707_v51  ;;  %v4718_v36 = vmax.f32 %v4716_v46, %v4717_v41  ;;  %v5561_v57 = vpop.f32.mrb[129].mxu0  ;;  %v4714_v19 = vrot.slane %v4713_v47, 1  ;;  %v4724_v62 = vrot.slane %v4723_v60, 4 }
 0x4b0   :  { %v5562_v2 = vadd.f32 %v5561_v57, %v5560_v55  ;;  %v5563_v27 = vpop.f32.mrb[130].mxu0  ;;  %v5490_v31 = vpop.f32.mrb[172].mxu1  ;;  %v4426_v46 = vadd.f32 %v8088_v45, %v8095_v13  ;;  %v4429_v55 = vadd.f32 %v8090_v12, %v8095_v13  ;;  %v4434_v12 = vadd.f32 %v8097_v11, %v8095_v13 }
 0x4b1   :  { %v5363_v37 = vpack.c.bf16 %v4708_v38, %v4708_v38  ;;  %v4719_v18 = vrot.slane %v4718_v36, 2  ;;  %v5564_v21 = vpop.f32.mrb[131].mxu0  ;;  %v4715_v58 = vmax.f32 %v4713_v47, %v4714_v19  ;;  %v4725_v0 = vmax.f32 %v4723_v60, %v4724_v62  ;;  %v5491_v54 = vpop.f32.mrb[173].mxu1 }
 0x4b2   :  { %v4579_v9 = vadd.f32 %v5562_v2, %v4418_v16  ;;  %v5565_v30 = vadd.f32 %v5564_v21, %v5563_v27  ;;  %v5493_v44 = vpop.f32.mrb[174].mxu1  ;;  %v8146_v59 = vadd.f32 %v5491_v54, %v5490_v31 }
 0x4b3   :  { %v5030_v6 = vunpack.c.l.b16 %v5363_v37  ;;  %v4720_v28 = vmax.f32 %v4718_v36, %v4719_v18  ;;  %v5364_v50 = vpack.c.bf16 %v4715_v58, %v4715_v58  ;;  %v4726_v61 = vrot.slane %v4725_v0, 2  ;;  %v5494_v5 = vpop.f32.mrb[175].mxu1 }
 0x4b4   :  { %v4730_v49 = vsel %vm4673_vm10, %v4579_v9, -inf  ;;  %v4582_v7 = vadd.f32 %v5565_v30, %v4421_v29  ;;  %v8152_v1 = vadd.f32 %v5494_v5, %v5493_v44 }
 0x4b5   :  { %v5061_v10 = vsel %vm1397_vm6, %v5030_v6, %v5060_v43  ;;  %v4721_v40 = vrot.slane %v4720_v28, 1  ;;  %v4731_v25 = vrot.slane %v4730_v49, 4  ;;  %v5031_v22 = vunpack.c.l.b16 %v5364_v50 }
 0x4b6   :  { %v4737_v17 = vsel %vm4673_vm10, %v4582_v7, -inf  ;;  %v5566_v63 = vpop.f32.mrb[132].mxu0  ;;  %v4727_v34 = vmax.f32 %v4725_v0, %v4726_v61 }
 0x4b7   :  { %v4722_v52 = vmax.f32 %v4720_v28, %v4721_v40  ;;  %v4732_v56 = vmax.f32 %v4730_v49, %v4731_v25  ;;  %v4738_v23 = vrot.slane %v4737_v17, 4  ;;  %v5567_v39 = vpop.f32.mrb[133].mxu0  ;;  %v5062_v33 = vsel %vm1399_vm7, %v5031_v22, %v5061_v10 }
 0x4b8   :  { %v5568_v51 = vadd.f32 %v5567_v39, %v5566_v63  ;;  %v5569_v41 = vpop.f32.mrb[134].mxu0  ;;  %v4728_v42 = vrot.slane %v4727_v34, 1  ;;  %v5496_v19 = vpop.f32.mrb[176].mxu1 }
 0x4b9   :  { %v5365_v53 = vpack.c.bf16 %v4722_v52, %v4722_v52  ;;  %v4733_v47 = vrot.slane %v4732_v56, 2  ;;  %v4739_v48 = vmax.f32 %v4737_v17, %v4738_v23  ;;  %v5570_v4 = vpop.f32.mrb[135].mxu0  ;;  %v5497_v2 = vpop.f32.mrb[177].mxu1 }
 0x4ba   :  { %v4587_v16 = vadd.f32 %v5568_v51, %v4426_v46  ;;  %v5571_v38 = vadd.f32 %v5570_v4, %v5569_v41  ;;  %v4729_v57 = vmax.f32 %v4727_v34, %v4728_v42  ;;  %v5499_v29 = vpop.f32.mrb[178].mxu1  ;;  %v8160_v9 = vadd.f32 %v5497_v2, %v5496_v19 }
 0x4bb   :  { %v5032_v36 = vunpack.c.l.b16 %v5365_v53  ;;  %v4734_v43 = vmax.f32 %v4732_v56, %v4733_v47  ;;  %v4740_v45 = vrot.slane %v4739_v48, 2  ;;  %v5500_v6 = vpop.f32.mrb[179].mxu1  ;;  %v4437_v46 = vadd.f32 %v8099_v3, %v8095_v13 }
 0x4bc   :  { %v4744_v60 = vsel %vm4673_vm10, %v4587_v16, -inf  ;;  %v4590_v27 = vadd.f32 %v5571_v38, %v4429_v55  ;;  %v5366_v18 = vpack.c.bf16 %v4729_v57, %v4729_v57  ;;  %v8163_v10 = vadd.f32 %v5500_v6, %v5499_v29 }
 0x4bd   :  { %v5063_v37 = vsel %vm1401_vm8, %v5032_v36, %v5062_v33  ;;  %v4735_v62 = vrot.slane %v4734_v43, 1  ;;  %v4741_v21 = vmax.f32 %v4739_v48, %v4740_v45  ;;  %v4745_v58 = vrot.slane %v4744_v60, 4 }
 0x4be   :  { %v4751_v30 = vsel %vm4673_vm10, %v4590_v27, -inf  ;;  %v5572_v28 = vpop.f32.mrb[136].mxu0  ;;  %v5033_v0 = vunpack.c.l.b16 %v5366_v18  ;;  %v4442_v3 = vadd.f32 %v8104_v32, %v8095_v13 }
 0x4bf   :  { %v4736_v31 = vmax.f32 %v4734_v43, %v4735_v62  ;;  %v4742_v50 = vrot.slane %v4741_v21, 1  ;;  %v4752_v49 = vrot.slane %v4751_v30, 4  ;;  %v5573_v54 = vpop.f32.mrb[137].mxu0  ;;  %v4746_v7 = vmax.f32 %v4744_v60, %v4745_v58 }
 0x4c0   :  { %v5574_v40 = vadd.f32 %v5573_v54, %v5572_v28  ;;  %v5575_v61 = vpop.f32.mrb[138].mxu0  ;;  %v5064_v11 = vsel %vm1403_vm9, %v5033_v0, %v5063_v37  ;;  %v5502_v23 = vpop.f32.mrb[180].mxu1 }
 0x4c1   :  { %v5367_v25 = vpack.c.bf16 %v4736_v31, %v4736_v31  ;;  %v4743_v44 = vmax.f32 %v4741_v21, %v4742_v50  ;;  %v4753_v22 = vmax.f32 %v4751_v30, %v4752_v49  ;;  %v5576_v17 = vpop.f32.mrb[139].mxu0  ;;  %v5086_v5 = vpack.c.b16 %v5064_v11, %v5064_v11  ;;  %v5503_v53 = vpop.f32.mrb[181].mxu1 }
 0x4c2   :  { %v4747_v63 = vrot.slane %v4746_v7, 2  ;;  %v4595_v52 = vadd.f32 %v5574_v40, %v4434_v12  ;;  %v5577_v39 = vadd.f32 %v5576_v17, %v5575_v61  ;;  %v8170_v4 = vadd.f32 %v5503_v53, %v5502_v23  ;;  %v5505_v55 = vpop.f32.mrb[182].mxu1 }
 0x4c3   :  { %v5368_v34 = vpack.c.bf16 %v4743_v44, %v4743_v44  ;;  %v4754_v56 = vrot.slane %v4753_v22, 2  ;;  %v5034_v33 = vunpack.c.l.b16 %v5367_v25  ;;  %5095 = vst.msk [vmem:[#allocation7] sm:$0xf] %vm5094_vm11, %v5086_v5  ;;  %v5506_v36 = vpop.f32.mrb[183].mxu1  ;;  %v4445_v30 = vadd.f32 %v8107_v26, %v8095_v13 }
 0x4c4   :  { %v4748_v51 = vmax.f32 %v4746_v7, %v4747_v63  ;;  %v4758_v41 = vsel %vm4673_vm10, %v4595_v52, -inf  ;;  %v4598_v38 = vadd.f32 %v5577_v39, %v4437_v46  ;;  %v8176_v37 = vadd.f32 %v5506_v36, %v5505_v55 }
 0x4c5   :  { %v5035_v42 = vunpack.c.l.b16 %v5368_v34  ;;  %v4755_v47 = vmax.f32 %v4753_v22, %v4754_v56  ;;  %v4759_v48 = vrot.slane %v4758_v41, 4  ;;  %v4453_v36 = vadd.f32 %v8117_v24, %v8095_v13 }
 0x4c6   :  { %v4749_v16 = vrot.slane %v4748_v51, 1  ;;  %v5578_v57 = vpop.f32.mrb[140].mxu0  ;;  %v4765_v27 = vsel %vm4673_vm10, %v4598_v38, -inf }
 0x4c7   :  { %v5065_v43 = vsel %vm1391_vm3, %v5035_v42, %v5034_v33  ;;  %v4756_v45 = vrot.slane %v4755_v47, 1  ;;  %v4760_v19 = vmax.f32 %v4758_v41, %v4759_v48  ;;  %v5579_v60 = vpop.f32.mrb[141].mxu0  ;;  %v4766_v12 = vrot.slane %v4765_v27, 4 }
 0x4c8   :  { %v4750_v2 = vmax.f32 %v4748_v51, %v4749_v16  ;;  %v5580_v18 = vadd.f32 %v5579_v60, %v5578_v57  ;;  %v5581_v62 = vpop.f32.mrb[142].mxu0  ;;  %v5508_v49 = vpop.f32.mrb[184].mxu1  ;;  %v4450_v51 = vadd.f32 %v8112_v35, %v8095_v13 }
 0x4c9   :  { %v4757_v21 = vmax.f32 %v4755_v47, %v4756_v45  ;;  %v4761_v29 = vrot.slane %v4760_v19, 2  ;;  %v5582_v58 = vpop.f32.mrb[143].mxu0  ;;  %v4767_v50 = vmax.f32 %v4765_v27, %v4766_v12  ;;  %v5509_v40 = vpop.f32.mrb[185].mxu1 }
 0x4ca   :  { %v5369_v32 = vpack.c.bf16 %v4750_v2, %v4750_v2  ;;  %v4603_v6 = vadd.f32 %v5580_v18, %v4442_v3  ;;  %v5583_v28 = vadd.f32 %v5582_v58, %v5581_v62  ;;  %v5511_v17 = vpop.f32.mrb[186].mxu1  ;;  %v8182_v26 = vadd.f32 %v5509_v40, %v5508_v49 }
 0x4cb   :  { %v5370_v0 = vpack.c.bf16 %v4757_v21, %v4757_v21  ;;  %v4762_v31 = vmax.f32 %v4760_v19, %v4761_v29  ;;  %v4768_v44 = vrot.slane %v4767_v50, 2  ;;  %v5512_v52 = vpop.f32.mrb[187].mxu1  ;;  %v4458_v40 = vadd.f32 %v8122_v20, %v8095_v13 }
 0x4cc   :  { %v5036_v54 = vunpack.c.l.b16 %v5369_v32  ;;  %v4772_v7 = vsel %vm4673_vm10, %v4603_v6, -inf  ;;  %v4606_v61 = vadd.f32 %v5583_v28, %v4445_v30  ;;  %v8188_v53 = vadd.f32 %v5512_v52, %v5511_v17 }
 0x4cd   :  { %v5037_v11 = vunpack.c.l.b16 %v5370_v0  ;;  %v4763_v25 = vrot.slane %v4762_v31, 1  ;;  %v4773_v22 = vrot.slane %v4772_v7, 4  ;;  %v4769_v39 = vmax.f32 %v4767_v50, %v4768_v44 }
 0x4ce   :  { %v5066_v5 = vsel %vm1393_vm4, %v5036_v54, %v5065_v43  ;;  %v4779_v63 = vsel %vm4673_vm10, %v4606_v61, -inf  ;;  %v5584_v34 = vpop.f32.mrb[144].mxu0 }
 0x4cf   :  { %v5067_v56 = vsel %vm1395_vm5, %v5037_v11, %v5066_v5  ;;  %v4764_v23 = vmax.f32 %v4762_v31, %v4763_v25  ;;  %v4774_v46 = vmax.f32 %v4772_v7, %v4773_v22  ;;  %v5585_v33 = vpop.f32.mrb[145].mxu0  ;;  %v4780_v41 = vrot.slane %v4779_v63, 4 }
 0x4d0   :  { %v5586_v42 = vadd.f32 %v5585_v33, %v5584_v34  ;;  %v5587_v47 = vpop.f32.mrb[146].mxu0  ;;  %v4770_v55 = vrot.slane %v4769_v39, 1  ;;  %v5514_v2 = vpop.f32.mrb[188].mxu1  ;;  %v4461_v34 = vadd.f32 %v8128_v8, %v8095_v13 }
 0x4d1   :  { %v5371_v48 = vpack.c.bf16 %v4764_v23, %v4764_v23  ;;  %v4775_v16 = vrot.slane %v4774_v46, 2  ;;  %v5588_v38 = vpop.f32.mrb[147].mxu0  ;;  %v4781_v57 = vmax.f32 %v4779_v63, %v4780_v41  ;;  %v5515_v18 = vpop.f32.mrb[189].mxu1 }
 0x4d2   :  { %v4611_v3 = vadd.f32 %v5586_v42, %v4450_v51  ;;  %v5589_v43 = vadd.f32 %v5588_v38, %v5587_v47  ;;  %v4771_v19 = vmax.f32 %v4769_v39, %v4770_v55  ;;  %v5517_v30 = vpop.f32.mrb[190].mxu1  ;;  %v8194_v24 = vadd.f32 %v5515_v18, %v5514_v2 }
 0x4d3   :  { %v5038_v45 = vunpack.c.l.b16 %v5371_v48  ;;  %v4776_v60 = vmax.f32 %v4774_v46, %v4775_v16  ;;  %v4782_v35 = vrot.slane %v4781_v57, 2  ;;  %v5518_v28 = vpop.f32.mrb[191].mxu1 }
 0x4d4   :  { %v4786_v27 = vsel %vm4673_vm10, %v4611_v3, -inf  ;;  %v4614_v62 = vadd.f32 %v5589_v43, %v4453_v36  ;;  %v5372_v29 = vpack.c.bf16 %v4771_v19, %v4771_v19  ;;  %v8199_v11 = vadd.f32 %v5518_v28, %v5517_v30 }
 0x4d5   :  { %v5068_v21 = vsel %vm1397_vm6, %v5038_v45, %v5067_v56  ;;  %v4777_v12 = vrot.slane %v4776_v60, 1  ;;  %v4787_v58 = vrot.slane %v4786_v27, 4  ;;  %v4783_v32 = vmax.f32 %v4781_v57, %v4782_v35 }
 0x4d6   :  { %v4793_v6 = vsel %vm4673_vm10, %v4614_v62, -inf  ;;  %v5590_v0 = vpop.f32.mrb[148].mxu0  ;;  %v5039_v31 = vunpack.c.l.b16 %v5372_v29 }
 0x4d7   :  { %v4778_v50 = vmax.f32 %v4776_v60, %v4777_v12  ;;  %v4788_v49 = vmax.f32 %v4786_v27, %v4787_v58  ;;  %v4794_v54 = vrot.slane %v4793_v6, 4  ;;  %v5591_v7 = vpop.f32.mrb[149].mxu0  ;;  %v4784_v61 = vrot.slane %v4783_v32, 1 }
 0x4d8   :  { %v5592_v25 = vadd.f32 %v5591_v7, %v5590_v0  ;;  %v5593_v44 = vpop.f32.mrb[150].mxu0  ;;  %v5069_v22 = vsel %vm1399_vm7, %v5039_v31, %v5068_v21  ;;  %v4466_v60 = vadd.f32 %v8134_v15, %v8095_v13  ;;  %v4469_v58 = vadd.f32 %v8138_v14, %v8095_v13 }
 0x4d9   :  { %v5373_v17 = vpack.c.bf16 %v4778_v50, %v4778_v50  ;;  %v4789_v5 = vrot.slane %v4788_v49, 2  ;;  %v4795_v63 = vmax.f32 %v4793_v6, %v4794_v54  ;;  %v5594_v52 = vpop.f32.mrb[151].mxu0  ;;  %v4785_v56 = vmax.f32 %v4783_v32, %v4784_v61 }
 0x4da   :  { %v4619_v23 = vadd.f32 %v5592_v25, %v4458_v40  ;;  %v5595_v39 = vadd.f32 %v5594_v52, %v5593_v44  ;;  %v4474_v52 = vadd.f32 %v8146_v59, %v8095_v13 }
 0x4db   :  { %v5040_v46 = vunpack.c.l.b16 %v5373_v17  ;;  %v4790_v33 = vmax.f32 %v4788_v49, %v4789_v5  ;;  %v4796_v20 = vrot.slane %v4795_v63, 2  ;;  %v5374_v51 = vpack.c.bf16 %v4785_v56, %v4785_v56 }
 0x4dc   :  { %v4800_v41 = vsel %vm4673_vm10, %v4619_v23, -inf  ;;  %v4622_v42 = vadd.f32 %v5595_v39, %v4461_v34 }
 0x4dd   :  { %v5070_v47 = vsel %vm1401_vm8, %v5040_v46, %v5069_v22  ;;  %v4791_v48 = vrot.slane %v4790_v33, 1  ;;  %v4797_v55 = vmax.f32 %v4795_v63, %v4796_v20  ;;  %v4801_v16 = vrot.slane %v4800_v41, 4 }
 0x4de   :  { %v5041_v38 = vunpack.c.l.b16 %v5374_v51  ;;  %v4807_v36 = vsel %vm4673_vm10, %v4622_v42, -inf  ;;  %v5596_v57 = vpop.f32.mrb[152].mxu0  ;;  %v4477_v51 = vadd.f32 %v8152_v1, %v8095_v13 }
 0x4df   :  { %v4792_v8 = vmax.f32 %v4790_v33, %v4791_v48  ;;  %v4798_v3 = vrot.slane %v4797_v55, 1  ;;  %v4802_v43 = vmax.f32 %v4800_v41, %v4801_v16  ;;  %v4808_v45 = vrot.slane %v4807_v36, 4  ;;  %v5597_v19 = vpop.f32.mrb[153].mxu0 }
 0x4e0   :  { %v5071_v2 = vsel %vm1403_vm9, %v5041_v38, %v5070_v47  ;;  %v5598_v35 = vadd.f32 %v5597_v19, %v5596_v57  ;;  %v5599_v27 = vpop.f32.mrb[154].mxu0 }
 0x4e1   :  { %v5087_v18 = vpack.c.b16 %v5071_v2, %v5071_v2  ;;  %v5375_v62 = vpack.c.bf16 %v4792_v8, %v4792_v8  ;;  %v4799_v21 = vmax.f32 %v4797_v55, %v4798_v3  ;;  %v4803_v29 = vrot.slane %v4802_v43, 2  ;;  %v5600_v12 = vpop.f32.mrb[155].mxu0 }
 0x4e2   :  { %v4809_v30 = vmax.f32 %v4807_v36, %v4808_v45  ;;  %v4627_v32 = vadd.f32 %v5598_v35, %v4466_v60  ;;  %v5601_v6 = vadd.f32 %v5600_v12, %v5599_v27 }
 0x4e3   :  { %v5376_v28 = vpack.c.bf16 %v4799_v21, %v4799_v21  ;;  %v4804_v0 = vmax.f32 %v4802_v43, %v4803_v29  ;;  %5096 = vst.msk [vmem:[#allocation7 + $0x4] sm:$0xf] %vm5094_vm11, %v5087_v18  ;;  %v5042_v49 = vunpack.c.l.b16 %v5375_v62  ;;  %v4482_v62 = vadd.f32 %v8160_v9, %v8095_v13 }
 0x4e4   :  { %v4810_v15 = vrot.slane %v4809_v30, 2  ;;  %v4814_v31 = vsel %vm4673_vm10, %v4627_v32, -inf  ;;  %v4630_v50 = vadd.f32 %v5601_v6, %v4469_v58 }
 0x4e5   :  { %v5043_v54 = vunpack.c.l.b16 %v5376_v28  ;;  %v4805_v7 = vrot.slane %v4804_v0, 1  ;;  %v4815_v40 = vrot.slane %v4814_v31, 4 }
 0x4e6   :  { %v4811_v61 = vmax.f32 %v4809_v30, %v4810_v15  ;;  %v4821_v25 = vsel %vm4673_vm10, %v4630_v50, -inf  ;;  %v5602_v44 = vpop.f32.mrb[156].mxu0 }
 0x4e7   :  { %v5072_v14 = vsel %vm1391_vm3, %v5043_v54, %v5042_v49  ;;  %v4806_v22 = vmax.f32 %v4804_v0, %v4805_v7  ;;  %v4816_v17 = vmax.f32 %v4814_v31, %v4815_v40  ;;  %v4822_v5 = vrot.slane %v4821_v25, 4  ;;  %v5603_v63 = vpop.f32.mrb[157].mxu0 }
 0x4e8   :  { %v4812_v34 = vrot.slane %v4811_v61, 1  ;;  %v5604_v56 = vadd.f32 %v5603_v63, %v5602_v44  ;;  %v5605_v23 = vpop.f32.mrb[158].mxu0  ;;  %v4485_v0 = vadd.f32 %v8163_v10, %v8095_v13 }
 0x4e9   :  { %v5377_v39 = vpack.c.bf16 %v4806_v22, %v4806_v22  ;;  %v4817_v46 = vrot.slane %v4816_v17, 2  ;;  %v4823_v33 = vmax.f32 %v4821_v25, %v4822_v5  ;;  %v5606_v20 = vpop.f32.mrb[159].mxu0 }
 0x4ea   :  { %v4813_v41 = vmax.f32 %v4811_v61, %v4812_v34  ;;  %v4635_v42 = vadd.f32 %v5604_v56, %v4474_v52  ;;  %v5607_v47 = vadd.f32 %v5606_v20, %v5605_v23  ;;  %v4490_v23 = vadd.f32 %v8170_v4, %v8095_v13 }
 0x4eb   :  { %v5044_v48 = vunpack.c.l.b16 %v5377_v39  ;;  %v4818_v55 = vmax.f32 %v4816_v17, %v4817_v46  ;;  %v4824_v16 = vrot.slane %v4823_v33, 2 }
 0x4ec   :  { %v5378_v38 = vpack.c.bf16 %v4813_v41, %v4813_v41  ;;  %v4828_v36 = vsel %vm4673_vm10, %v4635_v42, -inf  ;;  %v4638_v59 = vadd.f32 %v5607_v47, %v4477_v51  ;;  %v4493_v47 = vadd.f32 %v8176_v37, %v8095_v13 }
 0x4ed   :  { %v5073_v57 = vsel %vm1393_vm4, %v5044_v48, %v5072_v14  ;;  %v4819_v8 = vrot.slane %v4818_v55, 1  ;;  %v4825_v3 = vmax.f32 %v4823_v33, %v4824_v16  ;;  %v4829_v43 = vrot.slane %v4828_v36, 4 }
 0x4ee   :  { %v5045_v45 = vunpack.c.l.b16 %v5378_v38  ;;  %v4835_v19 = vsel %vm4673_vm10, %v4638_v59, -inf  ;;  %v5608_v60 = vpop.f32.mrb[160].mxu0 }
 0x4ef   :  { %v4820_v1 = vmax.f32 %v4818_v55, %v4819_v8  ;;  %v4826_v2 = vrot.slane %v4825_v3, 1  ;;  %v4830_v35 = vmax.f32 %v4828_v36, %v4829_v43  ;;  %v4836_v27 = vrot.slane %v4835_v19, 4  ;;  %v5609_v18 = vpop.f32.mrb[161].mxu0 }
 0x4f0   :  { %v5074_v21 = vsel %vm1395_vm5, %v5045_v45, %v5073_v57  ;;  %v5610_v29 = vadd.f32 %v5609_v18, %v5608_v60  ;;  %v5611_v12 = vpop.f32.mrb[162].mxu0 }
 0x4f1   :  { %v5379_v58 = vpack.c.bf16 %v4820_v1, %v4820_v1  ;;  %v4827_v30 = vmax.f32 %v4825_v3, %v4826_v2  ;;  %v4831_v32 = vrot.slane %v4830_v35, 2  ;;  %v4837_v6 = vmax.f32 %v4835_v19, %v4836_v27  ;;  %v5612_v28 = vpop.f32.mrb[163].mxu0 }
 0x4f2   :  { %v4643_v15 = vadd.f32 %v5610_v29, %v4482_v62  ;;  %v5613_v31 = vadd.f32 %v5612_v28, %v5611_v12 }
 0x4f3   :  { %v5046_v50 = vunpack.c.l.b16 %v5379_v58  ;;  %v5380_v49 = vpack.c.bf16 %v4827_v30, %v4827_v30  ;;  %v4832_v54 = vmax.f32 %v4830_v35, %v4831_v32  ;;  %v4838_v7 = vrot.slane %v4837_v6, 2 }
 0x4f4   :  { %v4842_v9 = vsel %vm4673_vm10, %v4643_v15, -inf  ;;  %v4646_v40 = vadd.f32 %v5613_v31, %v4485_v0  ;;  %v4501_v15 = vadd.f32 %v8188_v53, %v8095_v13 }
 0x4f5   :  { %v5075_v61 = vsel %vm1397_vm6, %v5046_v50, %v5074_v21  ;;  %v5047_v25 = vunpack.c.l.b16 %v5380_v49  ;;  %v4833_v44 = vrot.slane %v4832_v54, 1  ;;  %v4839_v14 = vmax.f32 %v4837_v6, %v4838_v7 }
 0x4f6   :  { %v4843_v22 = vrot.slane %v4842_v9, 4  ;;  %v4849_v17 = vsel %vm4673_vm10, %v4646_v40, -inf  ;;  %v5614_v5 = vpop.f32.mrb[164].mxu0  ;;  %v4498_v21 = vadd.f32 %v8182_v26, %v8095_v13 }
 0x4f7   :  { %v5076_v10 = vsel %vm1399_vm7, %v5047_v25, %v5075_v61  ;;  %v4834_v63 = vmax.f32 %v4832_v54, %v4833_v44  ;;  %v4840_v52 = vrot.slane %v4839_v14, 1  ;;  %v4850_v34 = vrot.slane %v4849_v17, 4  ;;  %v5615_v56 = vpop.f32.mrb[165].mxu0 }
 0x4f8   :  { %v4844_v39 = vmax.f32 %v4842_v9, %v4843_v22  ;;  %v5616_v46 = vadd.f32 %v5615_v56, %v5614_v5  ;;  %v5617_v33 = vpop.f32.mrb[166].mxu0  ;;  %v4506_v56 = vadd.f32 %v8194_v24, %v8095_v13 }
 0x4f9   :  { %v5381_v20 = vpack.c.bf16 %v4834_v63, %v4834_v63  ;;  %v4841_v51 = vmax.f32 %v4839_v14, %v4840_v52  ;;  %v4851_v41 = vmax.f32 %v4849_v17, %v4850_v34  ;;  %v5618_v42 = vpop.f32.mrb[167].mxu0 }
 0x4fa   :  { %v4845_v48 = vrot.slane %v4844_v39, 2  ;;  %v4651_v55 = vadd.f32 %v5616_v46, %v4490_v23  ;;  %v5619_v16 = vadd.f32 %v5618_v42, %v5617_v33  ;;  %v4509_v42 = vadd.f32 %v8199_v11, %v8095_v13 }
 0x4fb   :  { %v5048_v38 = vunpack.c.l.b16 %v5381_v20  ;;  %v5382_v36 = vpack.c.bf16 %v4841_v51, %v4841_v51  ;;  %v4852_v59 = vrot.slane %v4851_v41, 2 }
 0x4fc   :  { %v4846_v57 = vmax.f32 %v4844_v39, %v4845_v48  ;;  %v4856_v8 = vsel %vm4673_vm10, %v4651_v55, -inf  ;;  %v4654_v4 = vadd.f32 %v5619_v16, %v4493_v47  ;;  %v5620_v2 = vpop.f32.mrb[192].mxu1 }
 0x4fd   :  { %v5077_v3 = vsel %vm1401_vm8, %v5048_v38, %v5076_v10  ;;  %v5049_v43 = vunpack.c.l.b16 %v5382_v36  ;;  %v4853_v45 = vmax.f32 %v4851_v41, %v4852_v59  ;;  %v4857_v19 = vrot.slane %v4856_v8, 4  ;;  %v5621_v62 = vpop.f32.mrb[193].mxu1 }
 0x4fe   :  { %v4847_v60 = vrot.slane %v4846_v57, 1  ;;  %v4863_v1 = vsel %vm4673_vm10, %v4654_v4, -inf  ;;  %v5622_v58 = vadd.f32 %v5621_v62, %v5620_v2  ;;  %v5623_v30 = vpop.f32.mrb[194].mxu1 }
 0x4ff   :  { %v5078_v37 = vsel %vm1403_vm9, %v5049_v43, %v5077_v3  ;;  %v4854_v35 = vrot.slane %v4853_v45, 1  ;;  %v4858_v27 = vmax.f32 %v4856_v8, %v4857_v19  ;;  %v4864_v18 = vrot.slane %v4863_v1, 4  ;;  %v5624_v0 = vpop.f32.mrb[195].mxu1 }
 0x500   :  { %v5088_v29 = vpack.c.b16 %v5078_v37, %v5078_v37  ;;  %v4848_v12 = vmax.f32 %v4846_v57, %v4847_v60  ;;  %v4659_v50 = vadd.f32 %v5622_v58, %v4498_v21  ;;  %v5625_v49 = vadd.f32 %v5624_v0, %v5623_v30 }
 0x501   :  { %v4855_v32 = vmax.f32 %v4853_v45, %v4854_v35  ;;  %v4859_v6 = vrot.slane %v4858_v27, 2  ;;  %v4865_v28 = vmax.f32 %v4863_v1, %v4864_v18 }
 0x502   :  { %v5383_v31 = vpack.c.bf16 %v4848_v12, %v4848_v12  ;;  %5097 = vst.msk [vmem:[#allocation7 + $0x8] sm:$0xf] %vm5094_vm11, %v5088_v29  ;;  %v4870_v40 = vsel %vm4673_vm10, %v4659_v50, -inf  ;;  %v4662_v61 = vadd.f32 %v5625_v49, %v4501_v15 }
 0x503   :  { %v5384_v54 = vpack.c.bf16 %v4855_v32, %v4855_v32  ;;  %v4860_v7 = vmax.f32 %v4858_v27, %v4859_v6  ;;  %v4866_v9 = vrot.slane %v4865_v28, 2  ;;  %v4871_v22 = vrot.slane %v4870_v40, 4 }
 0x504   :  { %v5050_v26 = vunpack.c.l.b16 %v5383_v31  ;;  %v4877_v17 = vsel %vm4673_vm10, %v4662_v61, -inf  ;;  %v5626_v5 = vpop.f32.mrb[196].mxu1 }
 0x505   :  { %v5051_v25 = vunpack.c.l.b16 %v5384_v54  ;;  %v4861_v44 = vrot.slane %v4860_v7, 1  ;;  %v4867_v14 = vmax.f32 %v4865_v28, %v4866_v9  ;;  %v4872_v52 = vmax.f32 %v4870_v40, %v4871_v22  ;;  %v5627_v34 = vpop.f32.mrb[197].mxu1 }
 0x506   :  { %v4878_v23 = vrot.slane %v4877_v17, 4  ;;  %v5628_v39 = vadd.f32 %v5627_v34, %v5626_v5  ;;  %v5629_v46 = vpop.f32.mrb[198].mxu1 }
 0x507   :  { %v5079_v53 = vsel %vm1391_vm3, %v5051_v25, %v5050_v26  ;;  %v4862_v10 = vmax.f32 %v4860_v7, %v4861_v44  ;;  %v4868_v63 = vrot.slane %v4867_v14, 1  ;;  %v4873_v51 = vrot.slane %v4872_v52, 2  ;;  %v5630_v41 = vpop.f32.mrb[199].mxu1 }
 0x508   :  { %v4879_v47 = vmax.f32 %v4877_v17, %v4878_v23  ;;  %v4667_v48 = vadd.f32 %v5628_v39, %v4506_v56  ;;  %v5631_v55 = vadd.f32 %v5630_v41, %v5629_v46 }
 0x509   :  { %v5385_v33 = vpack.c.bf16 %v4862_v10, %v4862_v10  ;;  %v4869_v20 = vmax.f32 %v4867_v14, %v4868_v63  ;;  %v4874_v36 = vmax.f32 %v4872_v52, %v4873_v51 }
 0x50a   :  { %v4880_v59 = vrot.slane %v4879_v47, 2  ;;  %v4884_v57 = vsel %vm4673_vm10, %v4667_v48, -inf  ;;  %v4670_v24 = vadd.f32 %v5631_v55, %v4509_v42 }
 0x50b   :  { %v5052_v16 = vunpack.c.l.b16 %v5385_v33  ;;  %v5386_v38 = vpack.c.bf16 %v4869_v20, %v4869_v20  ;;  %v4875_v3 = vrot.slane %v4874_v36, 1  ;;  %v4885_v43 = vrot.slane %v4884_v57, 4 }
 0x50c   :  { %v4881_v45 = vmax.f32 %v4879_v47, %v4880_v59  ;;  %v4891_v19 = vsel %vm4673_vm10, %v4670_v24, -inf }
 0x50d   :  { %v5080_v8 = vsel %vm1393_vm4, %v5052_v16, %v5079_v53  ;;  %v5053_v4 = vunpack.c.l.b16 %v5386_v38  ;;  %v4876_v11 = vmax.f32 %v4874_v36, %v4875_v3  ;;  %v4886_v60 = vmax.f32 %v4884_v57, %v4885_v43 }
 0x50e   :  { %v4892_v1 = vrot.slane %v4891_v19, 4  ;;  %v4882_v2 = vrot.slane %v4881_v45, 1 }
 0x50f   :  { %v5081_v13 = vsel %vm1395_vm5, %v5053_v4, %v5080_v8  ;;  %v5387_v37 = vpack.c.bf16 %v4876_v11, %v4876_v11  ;;  %v4887_v35 = vrot.slane %v4886_v60, 2 }
 0x510   :  { %v4893_v27 = vmax.f32 %v4891_v19, %v4892_v1  ;;  %v4883_v18 = vmax.f32 %v4881_v45, %v4882_v2 }
 0x511   :  { %v5054_v62 = vunpack.c.l.b16 %v5387_v37  ;;  %v4888_v21 = vmax.f32 %v4886_v60, %v4887_v35 }
 0x512   :  { %v4894_v29 = vrot.slane %v4893_v27, 2  ;;  %v5388_v12 = vpack.c.bf16 %v4883_v18, %v4883_v18 }
 0x513   :  { %v5082_v58 = vsel %vm1397_vm6, %v5054_v62, %v5081_v13  ;;  %v4889_v30 = vrot.slane %v4888_v21, 1 }
 0x514   :  { %v4895_v32 = vmax.f32 %v4893_v27, %v4894_v29  ;;  %v5055_v6 = vunpack.c.l.b16 %v5388_v12 }
 0x515   :  { %v4890_v28 = vmax.f32 %v4888_v21, %v4889_v30 }
 0x516   :  { %v4896_v0 = vrot.slane %v4895_v32, 1  ;;  %v5083_v15 = vsel %vm1399_vm7, %v5055_v6, %v5082_v58 }
 0x517   :  { %v5389_v31 = vpack.c.bf16 %v4890_v28, %v4890_v28 }
 0x518   :  { %v4897_v50 = vmax.f32 %v4895_v32, %v4896_v0 }
 0x519   :  { %v5056_v49 = vunpack.c.l.b16 %v5389_v31 }
 0x51a   :  { %v5390_v54 = vpack.c.bf16 %v4897_v50, %v4897_v50 }
 0x51b   :  { %v5084_v7 = vsel %vm1401_vm8, %v5056_v49, %v5083_v15 }
 0x51c   :  { %v5057_v9 = vunpack.c.l.b16 %v5390_v54 }
 0x51e   :  { %v5085_v26 = vsel %vm1403_vm9, %v5057_v9, %v5084_v7 }
 0x51f   :  { %v5089_v40 = vpack.c.b16 %v5085_v26, %v5085_v26 }
 0x521   :  { %5098 = vst.msk [vmem:[#allocation7 + $0xc] sm:$0xf] %vm5094_vm11, %v5089_v40 }
 0x522   :  { %6013 = shalt.err (!%p6010_p6)
}
 0x523   :  { %s6014_s24 = scalar_lea.hbm %s8283_s10, 256 }
 0x524   :  { %p6015_p7 = scmp.ne.s32.totalorder %s8283_s10, %s6014_s24  ;;  %p6018_p8 = scmp.lt.u32.totalorder %s6014_s24, %s8283_s10 }
 0x526   :  { %p6020_p9 = pnand %p6018_p8, %p6015_p7 }
 0x528   :  { %6023 = shalt.err (!%p6020_p9)
}
 0x529   :  { %s6040_s27 = smov 64   ;;  %s6041_s28 = smov 4  }
 0x52a   :  { %5110 = dma.vmem_to_hbm [thread:$0]  %s5105_s21, 256, %s8283_s10, [#allocation4], %s6040_s27, %s6040_s27, %s6041_s28  }
 0x52b   :  { %6028 = dma.done.wait [#allocation4], 256  }
 0x52c   :  { %6029 = vsyncadd [#allocation4], 4294967040 }
 0x52d   :  { %5114 = vsyncpa [#allocation3], 1 }
 0x52e   :  { %5115 = vsyncpa [#allocation6], 1 }
 0x52f   :  { %5116 = vsyncpa [#allocation4], 1 }

</bundles_post_ra>
